<compile_context>
chip_gen: v7x
topology: tpu7x:2x2x1
jax: 0.10.0
libtpu: 0.0.40
codegen_flags: <defaults>
</compile_context>

<pallas_src>
import jax
import jax.numpy as jnp
from jax.experimental import pallas as pl
from jax.experimental.pallas import tpu as pltpu

# ----------------------------- config ---------------------------------------
B, N = 2, 8                 # batch, sequence length
HIDDEN = 128                # self.dim analogue (scaled down from 768)
NUM_HEADS = 4
HEAD_DIM = HIDDEN // NUM_HEADS
INTERMEDIATE = 512
NUM_LAYERS = 2              # emb_args.layers
OUTPUT_SIZE = 64            # sent_proj output size (use_sent_proj=True)
VOCAB = 50
MAX_POS = 16
TYPE_VOCAB = 2
LN_EPS = 1e-12
PAD_ID = 0
LANE = 128                  # lane-dense width for the padded sent_proj output


# ----------------------------- fused encoder kernel -------------------------
def _encoder_kernel(
    emb_ref, bias_ref,                      # flattened activations + (BN,BN) attn bias
    emb_ln_g_ref, emb_ln_b_ref,             # embedding LayerNorm
    wqkv_ref, bqkv_ref,                     # fused QKV proj, stacked over layers
    wo_ref, bo_ref, attn_ln_g_ref, attn_ln_b_ref,
    wff1_ref, bff1_ref, wff2_ref, bff2_ref, ffn_ln_g_ref, ffn_ln_b_ref,
    sent_w_ref, sent_b_ref,                 # sentence projection (lane-padded to 128)
    out_ref,
):
    bn = emb_ref.shape[0]                   # B*N (static)
    scale = 1.0 / float(HEAD_DIM) ** 0.5

    def layer_norm(h, g, b):                # f32 elementwise path (v5e-safe)
        mean = jnp.mean(h, axis=-1, keepdims=True)
        c = h - mean
        var = jnp.mean(c * c, axis=-1, keepdims=True)
        return c * jax.lax.rsqrt(var + LN_EPS) * g + b

    def dense(h, w, b):                     # bf16 MXU operands, f32 accumulation
        return jnp.dot(h.astype(jnp.bfloat16), w,
                       preferred_element_type=jnp.float32) + b

    # --- BERT embeddings LayerNorm ---
    x = layer_norm(emb_ref[...], emb_ln_g_ref[...], emb_ln_b_ref[...])   # (BN, H) f32
    attn_bias = bias_ref[...]               # (BN, BN): block-diag batch + pad-key mask

    # --- truncated BERT encoder, fully unrolled (NUM_LAYERS is small & static) ---
    for l in range(NUM_LAYERS):
        qkv = dense(x, wqkv_ref[l], bqkv_ref[l])          # (BN, 3H) fused Q|K|V, f32
        qkv16 = qkv.astype(jnp.bfloat16)                  # one cast, sliced per head
        wo_l = wo_ref[l]                                  # (H, H) bf16, loaded once

        attn_out = jnp.zeros((bn, HIDDEN), jnp.float32)
        for h in range(NUM_HEADS):                        # static per-head lane slices
            lo = h * HEAD_DIM
            q = qkv16[:, lo:lo + HEAD_DIM]                             # (BN, hd) bf16
            k = qkv16[:, HIDDEN + lo:HIDDEN + lo + HEAD_DIM]           # (BN, hd) bf16
            v = qkv16[:, 2 * HIDDEN + lo:2 * HIDDEN + lo + HEAD_DIM]   # (BN, hd) bf16
            # q @ k^T without an explicit transpose (contract last dims), f32 accumulate
            s = jax.lax.dot_general(q, k, (((1,), (1,)), ((), ())),
                                    preferred_element_type=jnp.float32)
            s = s * scale + attn_bias                     # (BN, BN)
            m = jnp.max(s, axis=-1, keepdims=True)
            e = jnp.exp(s - m)
            p = e * pl.reciprocal(jnp.sum(e, axis=-1, keepdims=True), approx=True)
            ctx = jnp.dot(p.astype(jnp.bfloat16), v,
                          preferred_element_type=jnp.float32)          # (BN, hd) f32
            # fused output projection: accumulate against sublane-aligned Wo row slice
            attn_out = attn_out + jnp.dot(ctx.astype(jnp.bfloat16),
                                          wo_l[lo:lo + HEAD_DIM, :],
                                          preferred_element_type=jnp.float32)
        attn_out = attn_out + bo_ref[l]
        x = layer_norm(attn_out + x, attn_ln_g_ref[l], attn_ln_b_ref[l])

        inter = dense(x, wff1_ref[l], bff1_ref[l])
        inter = 0.5 * inter * (1.0 + jax.lax.erf(inter * 0.7071067811865476))  # exact GELU
        ffn_out = dense(inter, wff2_ref[l], bff2_ref[l])
        x = layer_norm(ffn_out + x, ffn_ln_g_ref[l], ffn_ln_b_ref[l])

    # --- sentence projection (use_sent_proj=True), 128-lane-dense store ---
    out_ref[...] = dense(x, sent_w_ref[...], sent_b_ref[...]).astype(out_ref.dtype)


def _whole_spec(shape):
    """Whole-array VMEM block (single grid step -> constant block index)."""
    nd = len(shape)
    return pl.BlockSpec(shape, lambda i, _nd=nd: (0,) * _nd)


# ----------------------------- parameters -----------------------------------
def init_params(key):
    keys = iter(jax.random.split(key, 16))

    def w(*shape):
        return jax.random.normal(next(keys), shape, jnp.float32) * 0.02

    return {
        "word_emb": w(VOCAB, HIDDEN),
        "pos_emb": w(MAX_POS, HIDDEN),
        "type_emb": w(TYPE_VOCAB, HIDDEN),
        "emb_ln_g": jnp.ones((1, HIDDEN), jnp.float32),
        "emb_ln_b": jnp.zeros((1, HIDDEN), jnp.float32),
        # per-layer weights stacked on a leading layer axis; Q/K/V fused to (H, 3H)
        "wqkv": w(NUM_LAYERS, HIDDEN, 3 * HIDDEN),
        "bqkv": jnp.zeros((NUM_LAYERS, 1, 3 * HIDDEN), jnp.float32),
        "wo": w(NUM_LAYERS, HIDDEN, HIDDEN),
        "bo": jnp.zeros((NUM_LAYERS, 1, HIDDEN), jnp.float32),
        "attn_ln_g": jnp.ones((NUM_LAYERS, 1, HIDDEN), jnp.float32),
        "attn_ln_b": jnp.zeros((NUM_LAYERS, 1, HIDDEN), jnp.float32),
        "wff1": w(NUM_LAYERS, HIDDEN, INTERMEDIATE),
        "bff1": jnp.zeros((NUM_LAYERS, 1, INTERMEDIATE), jnp.float32),
        "wff2": w(NUM_LAYERS, INTERMEDIATE, HIDDEN),
        "bff2": jnp.zeros((NUM_LAYERS, 1, HIDDEN), jnp.float32),
        "ffn_ln_g": jnp.ones((NUM_LAYERS, 1, HIDDEN), jnp.float32),
        "ffn_ln_b": jnp.zeros((NUM_LAYERS, 1, HIDDEN), jnp.float32),
        "sent_w": w(HIDDEN, OUTPUT_SIZE),
        "sent_b": jnp.zeros((1, OUTPUT_SIZE), jnp.float32),
    }


# ----------------------------- forward pass ----------------------------------
def bert_encoder_forward(params, entity_cand_eid, token_ids):
    """Mirrors BertEncoder.forward (emb_objs empty, frozen -> eval, no dropout)."""
    del entity_cand_eid  # self.emb_objs is empty; no entity embeddings fed through BERT
    B_, N_ = token_ids.shape
    BN = B_ * N_

    token_type_ids = jnp.zeros_like(token_ids)
    attention_mask = token_ids != PAD_ID                              # (B, N) bool

    # --- BERT embedding gathers: pure JAX glue, flattened to (B*N, H) ---
    word = jnp.take(params["word_emb"], token_ids, axis=0)            # (B, N, H)
    pos = params["pos_emb"][:N_][None, :, :]                          # (1, N, H)
    typ = jnp.take(params["type_emb"], token_type_ids, axis=0)        # (B, N, H)
    emb = (word + pos + typ).reshape(BN, HIDDEN)                      # (B*N, H) f32

    # Block-diagonal additive attention bias over flattened tokens:
    #   0 where (same batch) and (key is not pad), else -10000 (BERT's extended mask).
    key_ok = attention_mask.reshape(BN)
    batch_idx = jnp.repeat(jnp.arange(B_), N_)
    allowed = (batch_idx[:, None] == batch_idx[None, :]) & key_ok[None, :]
    bias = jnp.where(allowed, 0.0, -10000.0).astype(jnp.float32)      # (BN, BN)

    # Lane-dense sent_proj: zero-pad output lanes to 128, slice back after the call.
    sent_w_pad = jnp.zeros((HIDDEN, LANE), jnp.float32).at[:, :OUTPUT_SIZE].set(
        params["sent_w"])
    sent_b_pad = jnp.zeros((1, LANE), jnp.float32).at[:, :OUTPUT_SIZE].set(
        params["sent_b"])

    bf16 = lambda a: a.astype(jnp.bfloat16)
    weight_args = (
        params["emb_ln_g"], params["emb_ln_b"],
        bf16(params["wqkv"]), params["bqkv"],
        bf16(params["wo"]), params["bo"],
        params["attn_ln_g"], params["attn_ln_b"],
        bf16(params["wff1"]), params["bff1"],
        bf16(params["wff2"]), params["bff2"],
        params["ffn_ln_g"], params["ffn_ln_b"],
        bf16(sent_w_pad), sent_b_pad,
    )

    args = (emb, bias) + weight_args
    in_specs = [_whole_spec(a.shape) for a in args]

    sent_pad = pl.pallas_call(
        _encoder_kernel,
        out_shape=jax.ShapeDtypeStruct((BN, LANE), jnp.float32),
        grid=(1,),                                   # whole batch in one step
        in_specs=in_specs,
        out_specs=_whole_spec((BN, LANE)),
        compiler_params=pltpu.CompilerParams(
            dimension_semantics=("arbitrary",)),     # single step; no megacore split here
    )(*args)

    downstream_output = sent_pad.reshape(B_, N_, LANE)[..., :OUTPUT_SIZE]
    downstream_mask = token_ids == PAD_ID            # matches torch reference polarity
    return downstream_output, downstream_mask


# ----------------------------- main ------------------------------------------
if __name__ == "__main__":
    key = jax.random.PRNGKey(0)
    pkey, tkey = jax.random.split(key)
    params = init_params(pkey)

    token_ids = jax.random.randint(tkey, (B, N), 1, VOCAB, dtype=jnp.int32)
    token_ids = token_ids.at[1, -2:].set(PAD_ID)             # a couple of pad tokens
    entity_cand_eid = jnp.zeros((B, 3, 4), dtype=jnp.int32)  # unused (emb_objs empty)

    out, mask = jax.jit(bert_encoder_forward)(params, entity_cand_eid, token_ids)
    jax.block_until_ready((out, mask))

    assert out.shape == (B, N, OUTPUT_SIZE) and out.dtype == jnp.float32
    assert mask.shape == (B, N) and mask.dtype == jnp.bool_
    assert bool(jnp.isfinite(out).all())
    print("KERNEL_OK")
</pallas_src>

<mosaic_0001>
module attributes {stable_mosaic.version = 11 : i64} {
  func.func @_encoder_kernel(%arg0: i32, %arg1: memref<16x128xf32, #tpu.memory_space<vmem>>, %arg2: memref<16x16xf32, #tpu.memory_space<vmem>>, %arg3: memref<1x128xf32, #tpu.memory_space<vmem>>, %arg4: memref<1x128xf32, #tpu.memory_space<vmem>>, %arg5: memref<2x128x384xbf16, #tpu.memory_space<vmem>>, %arg6: memref<2x1x384xf32, #tpu.memory_space<vmem>>, %arg7: memref<2x128x128xbf16, #tpu.memory_space<vmem>>, %arg8: memref<2x1x128xf32, #tpu.memory_space<vmem>>, %arg9: memref<2x1x128xf32, #tpu.memory_space<vmem>>, %arg10: memref<2x1x128xf32, #tpu.memory_space<vmem>>, %arg11: memref<2x128x512xbf16, #tpu.memory_space<vmem>>, %arg12: memref<2x1x512xf32, #tpu.memory_space<vmem>>, %arg13: memref<2x512x128xbf16, #tpu.memory_space<vmem>>, %arg14: memref<2x1x128xf32, #tpu.memory_space<vmem>>, %arg15: memref<2x1x128xf32, #tpu.memory_space<vmem>>, %arg16: memref<2x1x128xf32, #tpu.memory_space<vmem>>, %arg17: memref<128x128xbf16, #tpu.memory_space<vmem>>, %arg18: memref<1x128xf32, #tpu.memory_space<vmem>>, %arg19: memref<16x128xf32, #tpu.memory_space<vmem>>) attributes {dimension_semantics = [#tpu.dimension_semantics<arbitrary>], iteration_bounds = array<i64: 1>, scalar_prefetch = 0 : i64, scratch_operands = 0 : i64, tpu.core_type = #tpu.core_type<tc>, window_params = [{pipeline_mode = #tpu.pipeline_mode<synchronous>, transform_indices = @transform_0, window_bounds = array<i64: 16, 128>}, {pipeline_mode = #tpu.pipeline_mode<synchronous>, transform_indices = @transform_1, window_bounds = array<i64: 16, 16>}, {pipeline_mode = #tpu.pipeline_mode<synchronous>, transform_indices = @transform_2, window_bounds = array<i64: 1, 128>}, {pipeline_mode = #tpu.pipeline_mode<synchronous>, transform_indices = @transform_3, window_bounds = array<i64: 1, 128>}, {pipeline_mode = #tpu.pipeline_mode<synchronous>, transform_indices = @transform_4, window_bounds = array<i64: 2, 128, 384>}, {pipeline_mode = #tpu.pipeline_mode<synchronous>, transform_indices = @transform_5, window_bounds = array<i64: 2, 1, 384>}, {pipeline_mode = #tpu.pipeline_mode<synchronous>, transform_indices = @transform_6, window_bounds = array<i64: 2, 128, 128>}, {pipeline_mode = #tpu.pipeline_mode<synchronous>, transform_indices = @transform_7, window_bounds = array<i64: 2, 1, 128>}, {pipeline_mode = #tpu.pipeline_mode<synchronous>, transform_indices = @transform_8, window_bounds = array<i64: 2, 1, 128>}, {pipeline_mode = #tpu.pipeline_mode<synchronous>, transform_indices = @transform_9, window_bounds = array<i64: 2, 1, 128>}, {pipeline_mode = #tpu.pipeline_mode<synchronous>, transform_indices = @transform_10, window_bounds = array<i64: 2, 128, 512>}, {pipeline_mode = #tpu.pipeline_mode<synchronous>, transform_indices = @transform_11, window_bounds = array<i64: 2, 1, 512>}, {pipeline_mode = #tpu.pipeline_mode<synchronous>, transform_indices = @transform_12, window_bounds = array<i64: 2, 512, 128>}, {pipeline_mode = #tpu.pipeline_mode<synchronous>, transform_indices = @transform_13, window_bounds = array<i64: 2, 1, 128>}, {pipeline_mode = #tpu.pipeline_mode<synchronous>, transform_indices = @transform_14, window_bounds = array<i64: 2, 1, 128>}, {pipeline_mode = #tpu.pipeline_mode<synchronous>, transform_indices = @transform_15, window_bounds = array<i64: 2, 1, 128>}, {pipeline_mode = #tpu.pipeline_mode<synchronous>, transform_indices = @transform_16, window_bounds = array<i64: 128, 128>}, {pipeline_mode = #tpu.pipeline_mode<synchronous>, transform_indices = @transform_17, window_bounds = array<i64: 1, 128>}, {pipeline_mode = #tpu.pipeline_mode<synchronous>, transform_indices = @transform_18, window_bounds = array<i64: 16, 128>}]} {
    %c0 = arith.constant 0 : index
    %c0_0 = arith.constant 0 : index
    %0 = vector.load %arg1[%c0, %c0_0] : memref<16x128xf32, #tpu.memory_space<vmem>>, vector<16x128xf32>
    %c0_1 = arith.constant 0 : index
    %c0_2 = arith.constant 0 : index
    %1 = vector.load %arg3[%c0_1, %c0_2] : memref<1x128xf32, #tpu.memory_space<vmem>>, vector<1x128xf32>
    %c0_3 = arith.constant 0 : index
    %c0_4 = arith.constant 0 : index
    %2 = vector.load %arg4[%c0_3, %c0_4] : memref<1x128xf32, #tpu.memory_space<vmem>>, vector<1x128xf32>
    %cst = arith.constant dense<0.000000e+00> : vector<16xf32>
    %3 = vector.multi_reduction <add>, %0, %cst [1] : vector<16x128xf32> to vector<16xf32>
    %4 = vector.shape_cast %3 : vector<16xf32> to vector<16x1xf32>
    %cst_5 = arith.constant 1.280000e+02 : f32
    %5 = vector.broadcast %cst_5 : f32 to vector<16x1xf32>
    %6 = arith.divf %4, %5 : vector<16x1xf32>
    %7 = vector.broadcast %6 : vector<16x1xf32> to vector<16x128xf32>
    %8 = arith.subf %0, %7 : vector<16x128xf32>
    %9 = arith.mulf %8, %8 : vector<16x128xf32>
    %cst_6 = arith.constant dense<0.000000e+00> : vector<16xf32>
    %10 = vector.multi_reduction <add>, %9, %cst_6 [1] : vector<16x128xf32> to vector<16xf32>
    %11 = vector.shape_cast %10 : vector<16xf32> to vector<16x1xf32>
    %cst_7 = arith.constant 1.280000e+02 : f32
    %12 = vector.broadcast %cst_7 : f32 to vector<16x1xf32>
    %13 = arith.divf %11, %12 : vector<16x1xf32>
    %cst_8 = arith.constant 9.99999996E-13 : f32
    %14 = vector.broadcast %cst_8 : f32 to vector<16x1xf32>
    %15 = arith.addf %13, %14 : vector<16x1xf32>
    %16 = math.rsqrt %15 : vector<16x1xf32>
    %17 = vector.broadcast %16 : vector<16x1xf32> to vector<16x128xf32>
    %18 = arith.mulf %8, %17 : vector<16x128xf32>
    %19 = vector.broadcast %1 : vector<1x128xf32> to vector<16x128xf32>
    %20 = arith.mulf %18, %19 : vector<16x128xf32>
    %21 = vector.broadcast %2 : vector<1x128xf32> to vector<16x128xf32>
    %22 = arith.addf %20, %21 : vector<16x128xf32>
    %c0_9 = arith.constant 0 : index
    %c0_10 = arith.constant 0 : index
    %23 = vector.load %arg2[%c0_9, %c0_10] : memref<16x16xf32, #tpu.memory_space<vmem>>, vector<16x16xf32>
    %c0_11 = arith.constant 0 : index
    %c0_12 = arith.constant 0 : index
    %c0_13 = arith.constant 0 : index
    %24 = vector.load %arg5[%c0_11, %c0_12, %c0_13] : memref<2x128x384xbf16, #tpu.memory_space<vmem>>, vector<1x128x384xbf16>
    %25 = vector.shape_cast %24 : vector<1x128x384xbf16> to vector<128x384xbf16>
    %c0_14 = arith.constant 0 : index
    %c0_15 = arith.constant 0 : index
    %c0_16 = arith.constant 0 : index
    %26 = vector.load %arg6[%c0_14, %c0_15, %c0_16] : memref<2x1x384xf32, #tpu.memory_space<vmem>>, vector<1x1x384xf32>
    %27 = vector.shape_cast %26 : vector<1x1x384xf32> to vector<1x384xf32>
    %28 = arith.truncf %22 : vector<16x128xf32> to vector<16x128xbf16>
    %cst_17 = arith.constant dense<0.000000e+00> : vector<16x384xf32>
    %29 = tpu.matmul %28, %25, %cst_17 {dimension_numbers = #tpu.dot_dimension_numbers<[1], [0], [0], [1], [0, 0, 1, 1], [], []>} : vector<16x128xbf16>, vector<128x384xbf16>, vector<16x384xf32> -> vector<16x384xf32>
    %30 = vector.broadcast %27 : vector<1x384xf32> to vector<16x384xf32>
    %31 = arith.addf %29, %30 : vector<16x384xf32>
    %32 = arith.truncf %31 : vector<16x384xf32> to vector<16x384xbf16>
    %c0_18 = arith.constant 0 : index
    %c0_19 = arith.constant 0 : index
    %c0_20 = arith.constant 0 : index
    %33 = vector.load %arg7[%c0_18, %c0_19, %c0_20] : memref<2x128x128xbf16, #tpu.memory_space<vmem>>, vector<1x128x128xbf16>
    %34 = vector.shape_cast %33 : vector<1x128x128xbf16> to vector<128x128xbf16>
    %cst_21 = arith.constant 0.000000e+00 : f32
    %35 = vector.broadcast %cst_21 : f32 to vector<16x128xf32>
    %36 = vector.extract_strided_slice %32 {offsets = [0, 0], sizes = [16, 32], strides = [1, 1]} : vector<16x384xbf16> to vector<16x32xbf16>
    %37 = vector.extract_strided_slice %32 {offsets = [0, 128], sizes = [16, 32], strides = [1, 1]} : vector<16x384xbf16> to vector<16x32xbf16>
    %38 = vector.extract_strided_slice %32 {offsets = [0, 256], sizes = [16, 32], strides = [1, 1]} : vector<16x384xbf16> to vector<16x32xbf16>
    %cst_22 = arith.constant dense<0.000000e+00> : vector<16x16xf32>
    %39 = tpu.matmul %36, %37, %cst_22 {dimension_numbers = #tpu.dot_dimension_numbers<[1], [1], [0], [0], [0, 0, 1, 0], [], []>} : vector<16x32xbf16>, vector<16x32xbf16>, vector<16x16xf32> -> vector<16x16xf32>
    %cst_23 = arith.constant 0.176776692 : f32
    %40 = vector.broadcast %cst_23 : f32 to vector<16x16xf32>
    %41 = arith.mulf %39, %40 : vector<16x16xf32>
    %42 = arith.addf %41, %23 : vector<16x16xf32>
    %cst_24 = arith.constant dense<0xFF800000> : vector<16xf32>
    %43 = vector.multi_reduction <maximumf>, %42, %cst_24 [1] : vector<16x16xf32> to vector<16xf32>
    %44 = vector.shape_cast %43 : vector<16xf32> to vector<16x1xf32>
    %45 = vector.broadcast %44 : vector<16x1xf32> to vector<16x16xf32>
    %46 = arith.subf %42, %45 : vector<16x16xf32>
    %47 = math.exp %46 : vector<16x16xf32>
    %cst_25 = arith.constant dense<0.000000e+00> : vector<16xf32>
    %48 = vector.multi_reduction <add>, %47, %cst_25 [1] : vector<16x16xf32> to vector<16xf32>
    %49 = vector.shape_cast %48 : vector<16xf32> to vector<16x1xf32>
    %50 = tpu.reciprocal %49 {approx = true} : vector<16x1xf32> -> vector<16x1xf32>
    %51 = vector.broadcast %50 : vector<16x1xf32> to vector<16x16xf32>
    %52 = arith.mulf %47, %51 : vector<16x16xf32>
    %53 = arith.truncf %52 : vector<16x16xf32> to vector<16x16xbf16>
    %cst_26 = arith.constant dense<0.000000e+00> : vector<16x32xf32>
    %54 = tpu.matmul %53, %38, %cst_26 {dimension_numbers = #tpu.dot_dimension_numbers<[1], [0], [0], [1], [0, 0, 1, 1], [], []>} : vector<16x16xbf16>, vector<16x32xbf16>, vector<16x32xf32> -> vector<16x32xf32>
    %55 = arith.truncf %54 : vector<16x32xf32> to vector<16x32xbf16>
    %56 = vector.extract_strided_slice %34 {offsets = [0, 0], sizes = [32, 128], strides = [1, 1]} : vector<128x128xbf16> to vector<32x128xbf16>
    %cst_27 = arith.constant dense<0.000000e+00> : vector<16x128xf32>
    %57 = tpu.matmul %55, %56, %cst_27 {dimension_numbers = #tpu.dot_dimension_numbers<[1], [0], [0], [1], [0, 0, 1, 1], [], []>} : vector<16x32xbf16>, vector<32x128xbf16>, vector<16x128xf32> -> vector<16x128xf32>
    %58 = arith.addf %35, %57 : vector<16x128xf32>
    %59 = vector.extract_strided_slice %32 {offsets = [0, 32], sizes = [16, 32], strides = [1, 1]} : vector<16x384xbf16> to vector<16x32xbf16>
    %60 = vector.extract_strided_slice %32 {offsets = [0, 160], sizes = [16, 32], strides = [1, 1]} : vector<16x384xbf16> to vector<16x32xbf16>
    %61 = vector.extract_strided_slice %32 {offsets = [0, 288], sizes = [16, 32], strides = [1, 1]} : vector<16x384xbf16> to vector<16x32xbf16>
    %cst_28 = arith.constant dense<0.000000e+00> : vector<16x16xf32>
    %62 = tpu.matmul %59, %60, %cst_28 {dimension_numbers = #tpu.dot_dimension_numbers<[1], [1], [0], [0], [0, 0, 1, 0], [], []>} : vector<16x32xbf16>, vector<16x32xbf16>, vector<16x16xf32> -> vector<16x16xf32>
    %cst_29 = arith.constant 0.176776692 : f32
    %63 = vector.broadcast %cst_29 : f32 to vector<16x16xf32>
    %64 = arith.mulf %62, %63 : vector<16x16xf32>
    %65 = arith.addf %64, %23 : vector<16x16xf32>
    %cst_30 = arith.constant dense<0xFF800000> : vector<16xf32>
    %66 = vector.multi_reduction <maximumf>, %65, %cst_30 [1] : vector<16x16xf32> to vector<16xf32>
    %67 = vector.shape_cast %66 : vector<16xf32> to vector<16x1xf32>
    %68 = vector.broadcast %67 : vector<16x1xf32> to vector<16x16xf32>
    %69 = arith.subf %65, %68 : vector<16x16xf32>
    %70 = math.exp %69 : vector<16x16xf32>
    %cst_31 = arith.constant dense<0.000000e+00> : vector<16xf32>
    %71 = vector.multi_reduction <add>, %70, %cst_31 [1] : vector<16x16xf32> to vector<16xf32>
    %72 = vector.shape_cast %71 : vector<16xf32> to vector<16x1xf32>
    %73 = tpu.reciprocal %72 {approx = true} : vector<16x1xf32> -> vector<16x1xf32>
    %74 = vector.broadcast %73 : vector<16x1xf32> to vector<16x16xf32>
    %75 = arith.mulf %70, %74 : vector<16x16xf32>
    %76 = arith.truncf %75 : vector<16x16xf32> to vector<16x16xbf16>
    %cst_32 = arith.constant dense<0.000000e+00> : vector<16x32xf32>
    %77 = tpu.matmul %76, %61, %cst_32 {dimension_numbers = #tpu.dot_dimension_numbers<[1], [0], [0], [1], [0, 0, 1, 1], [], []>} : vector<16x16xbf16>, vector<16x32xbf16>, vector<16x32xf32> -> vector<16x32xf32>
    %78 = arith.truncf %77 : vector<16x32xf32> to vector<16x32xbf16>
    %79 = vector.extract_strided_slice %34 {offsets = [32, 0], sizes = [32, 128], strides = [1, 1]} : vector<128x128xbf16> to vector<32x128xbf16>
    %cst_33 = arith.constant dense<0.000000e+00> : vector<16x128xf32>
    %80 = tpu.matmul %78, %79, %cst_33 {dimension_numbers = #tpu.dot_dimension_numbers<[1], [0], [0], [1], [0, 0, 1, 1], [], []>} : vector<16x32xbf16>, vector<32x128xbf16>, vector<16x128xf32> -> vector<16x128xf32>
    %81 = arith.addf %58, %80 : vector<16x128xf32>
    %82 = vector.extract_strided_slice %32 {offsets = [0, 64], sizes = [16, 32], strides = [1, 1]} : vector<16x384xbf16> to vector<16x32xbf16>
    %83 = vector.extract_strided_slice %32 {offsets = [0, 192], sizes = [16, 32], strides = [1, 1]} : vector<16x384xbf16> to vector<16x32xbf16>
    %84 = vector.extract_strided_slice %32 {offsets = [0, 320], sizes = [16, 32], strides = [1, 1]} : vector<16x384xbf16> to vector<16x32xbf16>
    %cst_34 = arith.constant dense<0.000000e+00> : vector<16x16xf32>
    %85 = tpu.matmul %82, %83, %cst_34 {dimension_numbers = #tpu.dot_dimension_numbers<[1], [1], [0], [0], [0, 0, 1, 0], [], []>} : vector<16x32xbf16>, vector<16x32xbf16>, vector<16x16xf32> -> vector<16x16xf32>
    %cst_35 = arith.constant 0.176776692 : f32
    %86 = vector.broadcast %cst_35 : f32 to vector<16x16xf32>
    %87 = arith.mulf %85, %86 : vector<16x16xf32>
    %88 = arith.addf %87, %23 : vector<16x16xf32>
    %cst_36 = arith.constant dense<0xFF800000> : vector<16xf32>
    %89 = vector.multi_reduction <maximumf>, %88, %cst_36 [1] : vector<16x16xf32> to vector<16xf32>
    %90 = vector.shape_cast %89 : vector<16xf32> to vector<16x1xf32>
    %91 = vector.broadcast %90 : vector<16x1xf32> to vector<16x16xf32>
    %92 = arith.subf %88, %91 : vector<16x16xf32>
    %93 = math.exp %92 : vector<16x16xf32>
    %cst_37 = arith.constant dense<0.000000e+00> : vector<16xf32>
    %94 = vector.multi_reduction <add>, %93, %cst_37 [1] : vector<16x16xf32> to vector<16xf32>
    %95 = vector.shape_cast %94 : vector<16xf32> to vector<16x1xf32>
    %96 = tpu.reciprocal %95 {approx = true} : vector<16x1xf32> -> vector<16x1xf32>
    %97 = vector.broadcast %96 : vector<16x1xf32> to vector<16x16xf32>
    %98 = arith.mulf %93, %97 : vector<16x16xf32>
    %99 = arith.truncf %98 : vector<16x16xf32> to vector<16x16xbf16>
    %cst_38 = arith.constant dense<0.000000e+00> : vector<16x32xf32>
    %100 = tpu.matmul %99, %84, %cst_38 {dimension_numbers = #tpu.dot_dimension_numbers<[1], [0], [0], [1], [0, 0, 1, 1], [], []>} : vector<16x16xbf16>, vector<16x32xbf16>, vector<16x32xf32> -> vector<16x32xf32>
    %101 = arith.truncf %100 : vector<16x32xf32> to vector<16x32xbf16>
    %102 = vector.extract_strided_slice %34 {offsets = [64, 0], sizes = [32, 128], strides = [1, 1]} : vector<128x128xbf16> to vector<32x128xbf16>
    %cst_39 = arith.constant dense<0.000000e+00> : vector<16x128xf32>
    %103 = tpu.matmul %101, %102, %cst_39 {dimension_numbers = #tpu.dot_dimension_numbers<[1], [0], [0], [1], [0, 0, 1, 1], [], []>} : vector<16x32xbf16>, vector<32x128xbf16>, vector<16x128xf32> -> vector<16x128xf32>
    %104 = arith.addf %81, %103 : vector<16x128xf32>
    %105 = vector.extract_strided_slice %32 {offsets = [0, 96], sizes = [16, 32], strides = [1, 1]} : vector<16x384xbf16> to vector<16x32xbf16>
    %106 = vector.extract_strided_slice %32 {offsets = [0, 224], sizes = [16, 32], strides = [1, 1]} : vector<16x384xbf16> to vector<16x32xbf16>
    %107 = vector.extract_strided_slice %32 {offsets = [0, 352], sizes = [16, 32], strides = [1, 1]} : vector<16x384xbf16> to vector<16x32xbf16>
    %cst_40 = arith.constant dense<0.000000e+00> : vector<16x16xf32>
    %108 = tpu.matmul %105, %106, %cst_40 {dimension_numbers = #tpu.dot_dimension_numbers<[1], [1], [0], [0], [0, 0, 1, 0], [], []>} : vector<16x32xbf16>, vector<16x32xbf16>, vector<16x16xf32> -> vector<16x16xf32>
    %cst_41 = arith.constant 0.176776692 : f32
    %109 = vector.broadcast %cst_41 : f32 to vector<16x16xf32>
    %110 = arith.mulf %108, %109 : vector<16x16xf32>
    %111 = arith.addf %110, %23 : vector<16x16xf32>
    %cst_42 = arith.constant dense<0xFF800000> : vector<16xf32>
    %112 = vector.multi_reduction <maximumf>, %111, %cst_42 [1] : vector<16x16xf32> to vector<16xf32>
    %113 = vector.shape_cast %112 : vector<16xf32> to vector<16x1xf32>
    %114 = vector.broadcast %113 : vector<16x1xf32> to vector<16x16xf32>
    %115 = arith.subf %111, %114 : vector<16x16xf32>
    %116 = math.exp %115 : vector<16x16xf32>
    %cst_43 = arith.constant dense<0.000000e+00> : vector<16xf32>
    %117 = vector.multi_reduction <add>, %116, %cst_43 [1] : vector<16x16xf32> to vector<16xf32>
    %118 = vector.shape_cast %117 : vector<16xf32> to vector<16x1xf32>
    %119 = tpu.reciprocal %118 {approx = true} : vector<16x1xf32> -> vector<16x1xf32>
    %120 = vector.broadcast %119 : vector<16x1xf32> to vector<16x16xf32>
    %121 = arith.mulf %116, %120 : vector<16x16xf32>
    %122 = arith.truncf %121 : vector<16x16xf32> to vector<16x16xbf16>
    %cst_44 = arith.constant dense<0.000000e+00> : vector<16x32xf32>
    %123 = tpu.matmul %122, %107, %cst_44 {dimension_numbers = #tpu.dot_dimension_numbers<[1], [0], [0], [1], [0, 0, 1, 1], [], []>} : vector<16x16xbf16>, vector<16x32xbf16>, vector<16x32xf32> -> vector<16x32xf32>
    %124 = arith.truncf %123 : vector<16x32xf32> to vector<16x32xbf16>
    %125 = vector.extract_strided_slice %34 {offsets = [96, 0], sizes = [32, 128], strides = [1, 1]} : vector<128x128xbf16> to vector<32x128xbf16>
    %cst_45 = arith.constant dense<0.000000e+00> : vector<16x128xf32>
    %126 = tpu.matmul %124, %125, %cst_45 {dimension_numbers = #tpu.dot_dimension_numbers<[1], [0], [0], [1], [0, 0, 1, 1], [], []>} : vector<16x32xbf16>, vector<32x128xbf16>, vector<16x128xf32> -> vector<16x128xf32>
    %127 = arith.addf %104, %126 : vector<16x128xf32>
    %c0_46 = arith.constant 0 : index
    %c0_47 = arith.constant 0 : index
    %c0_48 = arith.constant 0 : index
    %128 = vector.load %arg8[%c0_46, %c0_47, %c0_48] : memref<2x1x128xf32, #tpu.memory_space<vmem>>, vector<1x1x128xf32>
    %129 = vector.shape_cast %128 : vector<1x1x128xf32> to vector<1x128xf32>
    %130 = vector.broadcast %129 : vector<1x128xf32> to vector<16x128xf32>
    %131 = arith.addf %127, %130 : vector<16x128xf32>
    %132 = arith.addf %131, %22 : vector<16x128xf32>
    %c0_49 = arith.constant 0 : index
    %c0_50 = arith.constant 0 : index
    %c0_51 = arith.constant 0 : index
    %133 = vector.load %arg9[%c0_49, %c0_50, %c0_51] : memref<2x1x128xf32, #tpu.memory_space<vmem>>, vector<1x1x128xf32>
    %134 = vector.shape_cast %133 : vector<1x1x128xf32> to vector<1x128xf32>
    %c0_52 = arith.constant 0 : index
    %c0_53 = arith.constant 0 : index
    %c0_54 = arith.constant 0 : index
    %135 = vector.load %arg10[%c0_52, %c0_53, %c0_54] : memref<2x1x128xf32, #tpu.memory_space<vmem>>, vector<1x1x128xf32>
    %136 = vector.shape_cast %135 : vector<1x1x128xf32> to vector<1x128xf32>
    %cst_55 = arith.constant dense<0.000000e+00> : vector<16xf32>
    %137 = vector.multi_reduction <add>, %132, %cst_55 [1] : vector<16x128xf32> to vector<16xf32>
    %138 = vector.shape_cast %137 : vector<16xf32> to vector<16x1xf32>
    %cst_56 = arith.constant 1.280000e+02 : f32
    %139 = vector.broadcast %cst_56 : f32 to vector<16x1xf32>
    %140 = arith.divf %138, %139 : vector<16x1xf32>
    %141 = vector.broadcast %140 : vector<16x1xf32> to vector<16x128xf32>
    %142 = arith.subf %132, %141 : vector<16x128xf32>
    %143 = arith.mulf %142, %142 : vector<16x128xf32>
    %cst_57 = arith.constant dense<0.000000e+00> : vector<16xf32>
    %144 = vector.multi_reduction <add>, %143, %cst_57 [1] : vector<16x128xf32> to vector<16xf32>
    %145 = vector.shape_cast %144 : vector<16xf32> to vector<16x1xf32>
    %cst_58 = arith.constant 1.280000e+02 : f32
    %146 = vector.broadcast %cst_58 : f32 to vector<16x1xf32>
    %147 = arith.divf %145, %146 : vector<16x1xf32>
    %cst_59 = arith.constant 9.99999996E-13 : f32
    %148 = vector.broadcast %cst_59 : f32 to vector<16x1xf32>
    %149 = arith.addf %147, %148 : vector<16x1xf32>
    %150 = math.rsqrt %149 : vector<16x1xf32>
    %151 = vector.broadcast %150 : vector<16x1xf32> to vector<16x128xf32>
    %152 = arith.mulf %142, %151 : vector<16x128xf32>
    %153 = vector.broadcast %134 : vector<1x128xf32> to vector<16x128xf32>
    %154 = arith.mulf %152, %153 : vector<16x128xf32>
    %155 = vector.broadcast %136 : vector<1x128xf32> to vector<16x128xf32>
    %156 = arith.addf %154, %155 : vector<16x128xf32>
    %c0_60 = arith.constant 0 : index
    %c0_61 = arith.constant 0 : index
    %c0_62 = arith.constant 0 : index
    %157 = vector.load %arg11[%c0_60, %c0_61, %c0_62] : memref<2x128x512xbf16, #tpu.memory_space<vmem>>, vector<1x128x512xbf16>
    %158 = vector.shape_cast %157 : vector<1x128x512xbf16> to vector<128x512xbf16>
    %c0_63 = arith.constant 0 : index
    %c0_64 = arith.constant 0 : index
    %c0_65 = arith.constant 0 : index
    %159 = vector.load %arg12[%c0_63, %c0_64, %c0_65] : memref<2x1x512xf32, #tpu.memory_space<vmem>>, vector<1x1x512xf32>
    %160 = vector.shape_cast %159 : vector<1x1x512xf32> to vector<1x512xf32>
    %161 = arith.truncf %156 : vector<16x128xf32> to vector<16x128xbf16>
    %cst_66 = arith.constant dense<0.000000e+00> : vector<16x512xf32>
    %162 = tpu.matmul %161, %158, %cst_66 {dimension_numbers = #tpu.dot_dimension_numbers<[1], [0], [0], [1], [0, 0, 1, 1], [], []>} : vector<16x128xbf16>, vector<128x512xbf16>, vector<16x512xf32> -> vector<16x512xf32>
    %163 = vector.broadcast %160 : vector<1x512xf32> to vector<16x512xf32>
    %164 = arith.addf %162, %163 : vector<16x512xf32>
    %cst_67 = arith.constant 5.000000e-01 : f32
    %165 = vector.broadcast %cst_67 : f32 to vector<16x512xf32>
    %166 = arith.mulf %165, %164 : vector<16x512xf32>
    %cst_68 = arith.constant 0.707106769 : f32
    %167 = vector.broadcast %cst_68 : f32 to vector<16x512xf32>
    %168 = arith.mulf %164, %167 : vector<16x512xf32>
    %169 = math.erf %168 : vector<16x512xf32>
    %cst_69 = arith.constant 1.000000e+00 : f32
    %170 = vector.broadcast %cst_69 : f32 to vector<16x512xf32>
    %171 = arith.addf %170, %169 : vector<16x512xf32>
    %172 = arith.mulf %166, %171 : vector<16x512xf32>
    %c0_70 = arith.constant 0 : index
    %c0_71 = arith.constant 0 : index
    %c0_72 = arith.constant 0 : index
    %173 = vector.load %arg13[%c0_70, %c0_71, %c0_72] : memref<2x512x128xbf16, #tpu.memory_space<vmem>>, vector<1x512x128xbf16>
    %174 = vector.shape_cast %173 : vector<1x512x128xbf16> to vector<512x128xbf16>
    %c0_73 = arith.constant 0 : index
    %c0_74 = arith.constant 0 : index
    %c0_75 = arith.constant 0 : index
    %175 = vector.load %arg14[%c0_73, %c0_74, %c0_75] : memref<2x1x128xf32, #tpu.memory_space<vmem>>, vector<1x1x128xf32>
    %176 = vector.shape_cast %175 : vector<1x1x128xf32> to vector<1x128xf32>
    %177 = arith.truncf %172 : vector<16x512xf32> to vector<16x512xbf16>
    %cst_76 = arith.constant dense<0.000000e+00> : vector<16x128xf32>
    %178 = tpu.matmul %177, %174, %cst_76 {dimension_numbers = #tpu.dot_dimension_numbers<[1], [0], [0], [1], [0, 0, 1, 1], [], []>} : vector<16x512xbf16>, vector<512x128xbf16>, vector<16x128xf32> -> vector<16x128xf32>
    %179 = vector.broadcast %176 : vector<1x128xf32> to vector<16x128xf32>
    %180 = arith.addf %178, %179 : vector<16x128xf32>
    %181 = arith.addf %180, %156 : vector<16x128xf32>
    %c0_77 = arith.constant 0 : index
    %c0_78 = arith.constant 0 : index
    %c0_79 = arith.constant 0 : index
    %182 = vector.load %arg15[%c0_77, %c0_78, %c0_79] : memref<2x1x128xf32, #tpu.memory_space<vmem>>, vector<1x1x128xf32>
    %183 = vector.shape_cast %182 : vector<1x1x128xf32> to vector<1x128xf32>
    %c0_80 = arith.constant 0 : index
    %c0_81 = arith.constant 0 : index
    %c0_82 = arith.constant 0 : index
    %184 = vector.load %arg16[%c0_80, %c0_81, %c0_82] : memref<2x1x128xf32, #tpu.memory_space<vmem>>, vector<1x1x128xf32>
    %185 = vector.shape_cast %184 : vector<1x1x128xf32> to vector<1x128xf32>
    %cst_83 = arith.constant dense<0.000000e+00> : vector<16xf32>
    %186 = vector.multi_reduction <add>, %181, %cst_83 [1] : vector<16x128xf32> to vector<16xf32>
    %187 = vector.shape_cast %186 : vector<16xf32> to vector<16x1xf32>
    %cst_84 = arith.constant 1.280000e+02 : f32
    %188 = vector.broadcast %cst_84 : f32 to vector<16x1xf32>
    %189 = arith.divf %187, %188 : vector<16x1xf32>
    %190 = vector.broadcast %189 : vector<16x1xf32> to vector<16x128xf32>
    %191 = arith.subf %181, %190 : vector<16x128xf32>
    %192 = arith.mulf %191, %191 : vector<16x128xf32>
    %cst_85 = arith.constant dense<0.000000e+00> : vector<16xf32>
    %193 = vector.multi_reduction <add>, %192, %cst_85 [1] : vector<16x128xf32> to vector<16xf32>
    %194 = vector.shape_cast %193 : vector<16xf32> to vector<16x1xf32>
    %cst_86 = arith.constant 1.280000e+02 : f32
    %195 = vector.broadcast %cst_86 : f32 to vector<16x1xf32>
    %196 = arith.divf %194, %195 : vector<16x1xf32>
    %cst_87 = arith.constant 9.99999996E-13 : f32
    %197 = vector.broadcast %cst_87 : f32 to vector<16x1xf32>
    %198 = arith.addf %196, %197 : vector<16x1xf32>
    %199 = math.rsqrt %198 : vector<16x1xf32>
    %200 = vector.broadcast %199 : vector<16x1xf32> to vector<16x128xf32>
    %201 = arith.mulf %191, %200 : vector<16x128xf32>
    %202 = vector.broadcast %183 : vector<1x128xf32> to vector<16x128xf32>
    %203 = arith.mulf %201, %202 : vector<16x128xf32>
    %204 = vector.broadcast %185 : vector<1x128xf32> to vector<16x128xf32>
    %205 = arith.addf %203, %204 : vector<16x128xf32>
    %c1 = arith.constant 1 : index
    %c0_88 = arith.constant 0 : index
    %c0_89 = arith.constant 0 : index
    %206 = vector.load %arg5[%c1, %c0_88, %c0_89] : memref<2x128x384xbf16, #tpu.memory_space<vmem>>, vector<1x128x384xbf16>
    %207 = vector.shape_cast %206 : vector<1x128x384xbf16> to vector<128x384xbf16>
    %c1_90 = arith.constant 1 : index
    %c0_91 = arith.constant 0 : index
    %c0_92 = arith.constant 0 : index
    %208 = vector.load %arg6[%c1_90, %c0_91, %c0_92] : memref<2x1x384xf32, #tpu.memory_space<vmem>>, vector<1x1x384xf32>
    %209 = vector.shape_cast %208 : vector<1x1x384xf32> to vector<1x384xf32>
    %210 = arith.truncf %205 : vector<16x128xf32> to vector<16x128xbf16>
    %cst_93 = arith.constant dense<0.000000e+00> : vector<16x384xf32>
    %211 = tpu.matmul %210, %207, %cst_93 {dimension_numbers = #tpu.dot_dimension_numbers<[1], [0], [0], [1], [0, 0, 1, 1], [], []>} : vector<16x128xbf16>, vector<128x384xbf16>, vector<16x384xf32> -> vector<16x384xf32>
    %212 = vector.broadcast %209 : vector<1x384xf32> to vector<16x384xf32>
    %213 = arith.addf %211, %212 : vector<16x384xf32>
    %214 = arith.truncf %213 : vector<16x384xf32> to vector<16x384xbf16>
    %c1_94 = arith.constant 1 : index
    %c0_95 = arith.constant 0 : index
    %c0_96 = arith.constant 0 : index
    %215 = vector.load %arg7[%c1_94, %c0_95, %c0_96] : memref<2x128x128xbf16, #tpu.memory_space<vmem>>, vector<1x128x128xbf16>
    %216 = vector.shape_cast %215 : vector<1x128x128xbf16> to vector<128x128xbf16>
    %cst_97 = arith.constant 0.000000e+00 : f32
    %217 = vector.broadcast %cst_97 : f32 to vector<16x128xf32>
    %218 = vector.extract_strided_slice %214 {offsets = [0, 0], sizes = [16, 32], strides = [1, 1]} : vector<16x384xbf16> to vector<16x32xbf16>
    %219 = vector.extract_strided_slice %214 {offsets = [0, 128], sizes = [16, 32], strides = [1, 1]} : vector<16x384xbf16> to vector<16x32xbf16>
    %220 = vector.extract_strided_slice %214 {offsets = [0, 256], sizes = [16, 32], strides = [1, 1]} : vector<16x384xbf16> to vector<16x32xbf16>
    %cst_98 = arith.constant dense<0.000000e+00> : vector<16x16xf32>
    %221 = tpu.matmul %218, %219, %cst_98 {dimension_numbers = #tpu.dot_dimension_numbers<[1], [1], [0], [0], [0, 0, 1, 0], [], []>} : vector<16x32xbf16>, vector<16x32xbf16>, vector<16x16xf32> -> vector<16x16xf32>
    %cst_99 = arith.constant 0.176776692 : f32
    %222 = vector.broadcast %cst_99 : f32 to vector<16x16xf32>
    %223 = arith.mulf %221, %222 : vector<16x16xf32>
    %224 = arith.addf %223, %23 : vector<16x16xf32>
    %cst_100 = arith.constant dense<0xFF800000> : vector<16xf32>
    %225 = vector.multi_reduction <maximumf>, %224, %cst_100 [1] : vector<16x16xf32> to vector<16xf32>
    %226 = vector.shape_cast %225 : vector<16xf32> to vector<16x1xf32>
    %227 = vector.broadcast %226 : vector<16x1xf32> to vector<16x16xf32>
    %228 = arith.subf %224, %227 : vector<16x16xf32>
    %229 = math.exp %228 : vector<16x16xf32>
    %cst_101 = arith.constant dense<0.000000e+00> : vector<16xf32>
    %230 = vector.multi_reduction <add>, %229, %cst_101 [1] : vector<16x16xf32> to vector<16xf32>
    %231 = vector.shape_cast %230 : vector<16xf32> to vector<16x1xf32>
    %232 = tpu.reciprocal %231 {approx = true} : vector<16x1xf32> -> vector<16x1xf32>
    %233 = vector.broadcast %232 : vector<16x1xf32> to vector<16x16xf32>
    %234 = arith.mulf %229, %233 : vector<16x16xf32>
    %235 = arith.truncf %234 : vector<16x16xf32> to vector<16x16xbf16>
    %cst_102 = arith.constant dense<0.000000e+00> : vector<16x32xf32>
    %236 = tpu.matmul %235, %220, %cst_102 {dimension_numbers = #tpu.dot_dimension_numbers<[1], [0], [0], [1], [0, 0, 1, 1], [], []>} : vector<16x16xbf16>, vector<16x32xbf16>, vector<16x32xf32> -> vector<16x32xf32>
    %237 = arith.truncf %236 : vector<16x32xf32> to vector<16x32xbf16>
    %238 = vector.extract_strided_slice %216 {offsets = [0, 0], sizes = [32, 128], strides = [1, 1]} : vector<128x128xbf16> to vector<32x128xbf16>
    %cst_103 = arith.constant dense<0.000000e+00> : vector<16x128xf32>
    %239 = tpu.matmul %237, %238, %cst_103 {dimension_numbers = #tpu.dot_dimension_numbers<[1], [0], [0], [1], [0, 0, 1, 1], [], []>} : vector<16x32xbf16>, vector<32x128xbf16>, vector<16x128xf32> -> vector<16x128xf32>
    %240 = arith.addf %217, %239 : vector<16x128xf32>
    %241 = vector.extract_strided_slice %214 {offsets = [0, 32], sizes = [16, 32], strides = [1, 1]} : vector<16x384xbf16> to vector<16x32xbf16>
    %242 = vector.extract_strided_slice %214 {offsets = [0, 160], sizes = [16, 32], strides = [1, 1]} : vector<16x384xbf16> to vector<16x32xbf16>
    %243 = vector.extract_strided_slice %214 {offsets = [0, 288], sizes = [16, 32], strides = [1, 1]} : vector<16x384xbf16> to vector<16x32xbf16>
    %cst_104 = arith.constant dense<0.000000e+00> : vector<16x16xf32>
    %244 = tpu.matmul %241, %242, %cst_104 {dimension_numbers = #tpu.dot_dimension_numbers<[1], [1], [0], [0], [0, 0, 1, 0], [], []>} : vector<16x32xbf16>, vector<16x32xbf16>, vector<16x16xf32> -> vector<16x16xf32>
    %cst_105 = arith.constant 0.176776692 : f32
    %245 = vector.broadcast %cst_105 : f32 to vector<16x16xf32>
    %246 = arith.mulf %244, %245 : vector<16x16xf32>
    %247 = arith.addf %246, %23 : vector<16x16xf32>
    %cst_106 = arith.constant dense<0xFF800000> : vector<16xf32>
    %248 = vector.multi_reduction <maximumf>, %247, %cst_106 [1] : vector<16x16xf32> to vector<16xf32>
    %249 = vector.shape_cast %248 : vector<16xf32> to vector<16x1xf32>
    %250 = vector.broadcast %249 : vector<16x1xf32> to vector<16x16xf32>
    %251 = arith.subf %247, %250 : vector<16x16xf32>
    %252 = math.exp %251 : vector<16x16xf32>
    %cst_107 = arith.constant dense<0.000000e+00> : vector<16xf32>
    %253 = vector.multi_reduction <add>, %252, %cst_107 [1] : vector<16x16xf32> to vector<16xf32>
    %254 = vector.shape_cast %253 : vector<16xf32> to vector<16x1xf32>
    %255 = tpu.reciprocal %254 {approx = true} : vector<16x1xf32> -> vector<16x1xf32>
    %256 = vector.broadcast %255 : vector<16x1xf32> to vector<16x16xf32>
    %257 = arith.mulf %252, %256 : vector<16x16xf32>
    %258 = arith.truncf %257 : vector<16x16xf32> to vector<16x16xbf16>
    %cst_108 = arith.constant dense<0.000000e+00> : vector<16x32xf32>
    %259 = tpu.matmul %258, %243, %cst_108 {dimension_numbers = #tpu.dot_dimension_numbers<[1], [0], [0], [1], [0, 0, 1, 1], [], []>} : vector<16x16xbf16>, vector<16x32xbf16>, vector<16x32xf32> -> vector<16x32xf32>
    %260 = arith.truncf %259 : vector<16x32xf32> to vector<16x32xbf16>
    %261 = vector.extract_strided_slice %216 {offsets = [32, 0], sizes = [32, 128], strides = [1, 1]} : vector<128x128xbf16> to vector<32x128xbf16>
    %cst_109 = arith.constant dense<0.000000e+00> : vector<16x128xf32>
    %262 = tpu.matmul %260, %261, %cst_109 {dimension_numbers = #tpu.dot_dimension_numbers<[1], [0], [0], [1], [0, 0, 1, 1], [], []>} : vector<16x32xbf16>, vector<32x128xbf16>, vector<16x128xf32> -> vector<16x128xf32>
    %263 = arith.addf %240, %262 : vector<16x128xf32>
    %264 = vector.extract_strided_slice %214 {offsets = [0, 64], sizes = [16, 32], strides = [1, 1]} : vector<16x384xbf16> to vector<16x32xbf16>
    %265 = vector.extract_strided_slice %214 {offsets = [0, 192], sizes = [16, 32], strides = [1, 1]} : vector<16x384xbf16> to vector<16x32xbf16>
    %266 = vector.extract_strided_slice %214 {offsets = [0, 320], sizes = [16, 32], strides = [1, 1]} : vector<16x384xbf16> to vector<16x32xbf16>
    %cst_110 = arith.constant dense<0.000000e+00> : vector<16x16xf32>
    %267 = tpu.matmul %264, %265, %cst_110 {dimension_numbers = #tpu.dot_dimension_numbers<[1], [1], [0], [0], [0, 0, 1, 0], [], []>} : vector<16x32xbf16>, vector<16x32xbf16>, vector<16x16xf32> -> vector<16x16xf32>
    %cst_111 = arith.constant 0.176776692 : f32
    %268 = vector.broadcast %cst_111 : f32 to vector<16x16xf32>
    %269 = arith.mulf %267, %268 : vector<16x16xf32>
    %270 = arith.addf %269, %23 : vector<16x16xf32>
    %cst_112 = arith.constant dense<0xFF800000> : vector<16xf32>
    %271 = vector.multi_reduction <maximumf>, %270, %cst_112 [1] : vector<16x16xf32> to vector<16xf32>
    %272 = vector.shape_cast %271 : vector<16xf32> to vector<16x1xf32>
    %273 = vector.broadcast %272 : vector<16x1xf32> to vector<16x16xf32>
    %274 = arith.subf %270, %273 : vector<16x16xf32>
    %275 = math.exp %274 : vector<16x16xf32>
    %cst_113 = arith.constant dense<0.000000e+00> : vector<16xf32>
    %276 = vector.multi_reduction <add>, %275, %cst_113 [1] : vector<16x16xf32> to vector<16xf32>
    %277 = vector.shape_cast %276 : vector<16xf32> to vector<16x1xf32>
    %278 = tpu.reciprocal %277 {approx = true} : vector<16x1xf32> -> vector<16x1xf32>
    %279 = vector.broadcast %278 : vector<16x1xf32> to vector<16x16xf32>
    %280 = arith.mulf %275, %279 : vector<16x16xf32>
    %281 = arith.truncf %280 : vector<16x16xf32> to vector<16x16xbf16>
    %cst_114 = arith.constant dense<0.000000e+00> : vector<16x32xf32>
    %282 = tpu.matmul %281, %266, %cst_114 {dimension_numbers = #tpu.dot_dimension_numbers<[1], [0], [0], [1], [0, 0, 1, 1], [], []>} : vector<16x16xbf16>, vector<16x32xbf16>, vector<16x32xf32> -> vector<16x32xf32>
    %283 = arith.truncf %282 : vector<16x32xf32> to vector<16x32xbf16>
    %284 = vector.extract_strided_slice %216 {offsets = [64, 0], sizes = [32, 128], strides = [1, 1]} : vector<128x128xbf16> to vector<32x128xbf16>
    %cst_115 = arith.constant dense<0.000000e+00> : vector<16x128xf32>
    %285 = tpu.matmul %283, %284, %cst_115 {dimension_numbers = #tpu.dot_dimension_numbers<[1], [0], [0], [1], [0, 0, 1, 1], [], []>} : vector<16x32xbf16>, vector<32x128xbf16>, vector<16x128xf32> -> vector<16x128xf32>
    %286 = arith.addf %263, %285 : vector<16x128xf32>
    %287 = vector.extract_strided_slice %214 {offsets = [0, 96], sizes = [16, 32], strides = [1, 1]} : vector<16x384xbf16> to vector<16x32xbf16>
    %288 = vector.extract_strided_slice %214 {offsets = [0, 224], sizes = [16, 32], strides = [1, 1]} : vector<16x384xbf16> to vector<16x32xbf16>
    %289 = vector.extract_strided_slice %214 {offsets = [0, 352], sizes = [16, 32], strides = [1, 1]} : vector<16x384xbf16> to vector<16x32xbf16>
    %cst_116 = arith.constant dense<0.000000e+00> : vector<16x16xf32>
    %290 = tpu.matmul %287, %288, %cst_116 {dimension_numbers = #tpu.dot_dimension_numbers<[1], [1], [0], [0], [0, 0, 1, 0], [], []>} : vector<16x32xbf16>, vector<16x32xbf16>, vector<16x16xf32> -> vector<16x16xf32>
    %cst_117 = arith.constant 0.176776692 : f32
    %291 = vector.broadcast %cst_117 : f32 to vector<16x16xf32>
    %292 = arith.mulf %290, %291 : vector<16x16xf32>
    %293 = arith.addf %292, %23 : vector<16x16xf32>
    %cst_118 = arith.constant dense<0xFF800000> : vector<16xf32>
    %294 = vector.multi_reduction <maximumf>, %293, %cst_118 [1] : vector<16x16xf32> to vector<16xf32>
    %295 = vector.shape_cast %294 : vector<16xf32> to vector<16x1xf32>
    %296 = vector.broadcast %295 : vector<16x1xf32> to vector<16x16xf32>
    %297 = arith.subf %293, %296 : vector<16x16xf32>
    %298 = math.exp %297 : vector<16x16xf32>
    %cst_119 = arith.constant dense<0.000000e+00> : vector<16xf32>
    %299 = vector.multi_reduction <add>, %298, %cst_119 [1] : vector<16x16xf32> to vector<16xf32>
    %300 = vector.shape_cast %299 : vector<16xf32> to vector<16x1xf32>
    %301 = tpu.reciprocal %300 {approx = true} : vector<16x1xf32> -> vector<16x1xf32>
    %302 = vector.broadcast %301 : vector<16x1xf32> to vector<16x16xf32>
    %303 = arith.mulf %298, %302 : vector<16x16xf32>
    %304 = arith.truncf %303 : vector<16x16xf32> to vector<16x16xbf16>
    %cst_120 = arith.constant dense<0.000000e+00> : vector<16x32xf32>
    %305 = tpu.matmul %304, %289, %cst_120 {dimension_numbers = #tpu.dot_dimension_numbers<[1], [0], [0], [1], [0, 0, 1, 1], [], []>} : vector<16x16xbf16>, vector<16x32xbf16>, vector<16x32xf32> -> vector<16x32xf32>
    %306 = arith.truncf %305 : vector<16x32xf32> to vector<16x32xbf16>
    %307 = vector.extract_strided_slice %216 {offsets = [96, 0], sizes = [32, 128], strides = [1, 1]} : vector<128x128xbf16> to vector<32x128xbf16>
    %cst_121 = arith.constant dense<0.000000e+00> : vector<16x128xf32>
    %308 = tpu.matmul %306, %307, %cst_121 {dimension_numbers = #tpu.dot_dimension_numbers<[1], [0], [0], [1], [0, 0, 1, 1], [], []>} : vector<16x32xbf16>, vector<32x128xbf16>, vector<16x128xf32> -> vector<16x128xf32>
    %309 = arith.addf %286, %308 : vector<16x128xf32>
    %c1_122 = arith.constant 1 : index
    %c0_123 = arith.constant 0 : index
    %c0_124 = arith.constant 0 : index
    %310 = vector.load %arg8[%c1_122, %c0_123, %c0_124] : memref<2x1x128xf32, #tpu.memory_space<vmem>>, vector<1x1x128xf32>
    %311 = vector.shape_cast %310 : vector<1x1x128xf32> to vector<1x128xf32>
    %312 = vector.broadcast %311 : vector<1x128xf32> to vector<16x128xf32>
    %313 = arith.addf %309, %312 : vector<16x128xf32>
    %314 = arith.addf %313, %205 : vector<16x128xf32>
    %c1_125 = arith.constant 1 : index
    %c0_126 = arith.constant 0 : index
    %c0_127 = arith.constant 0 : index
    %315 = vector.load %arg9[%c1_125, %c0_126, %c0_127] : memref<2x1x128xf32, #tpu.memory_space<vmem>>, vector<1x1x128xf32>
    %316 = vector.shape_cast %315 : vector<1x1x128xf32> to vector<1x128xf32>
    %c1_128 = arith.constant 1 : index
    %c0_129 = arith.constant 0 : index
    %c0_130 = arith.constant 0 : index
    %317 = vector.load %arg10[%c1_128, %c0_129, %c0_130] : memref<2x1x128xf32, #tpu.memory_space<vmem>>, vector<1x1x128xf32>
    %318 = vector.shape_cast %317 : vector<1x1x128xf32> to vector<1x128xf32>
    %cst_131 = arith.constant dense<0.000000e+00> : vector<16xf32>
    %319 = vector.multi_reduction <add>, %314, %cst_131 [1] : vector<16x128xf32> to vector<16xf32>
    %320 = vector.shape_cast %319 : vector<16xf32> to vector<16x1xf32>
    %cst_132 = arith.constant 1.280000e+02 : f32
    %321 = vector.broadcast %cst_132 : f32 to vector<16x1xf32>
    %322 = arith.divf %320, %321 : vector<16x1xf32>
    %323 = vector.broadcast %322 : vector<16x1xf32> to vector<16x128xf32>
    %324 = arith.subf %314, %323 : vector<16x128xf32>
    %325 = arith.mulf %324, %324 : vector<16x128xf32>
    %cst_133 = arith.constant dense<0.000000e+00> : vector<16xf32>
    %326 = vector.multi_reduction <add>, %325, %cst_133 [1] : vector<16x128xf32> to vector<16xf32>
    %327 = vector.shape_cast %326 : vector<16xf32> to vector<16x1xf32>
    %cst_134 = arith.constant 1.280000e+02 : f32
    %328 = vector.broadcast %cst_134 : f32 to vector<16x1xf32>
    %329 = arith.divf %327, %328 : vector<16x1xf32>
    %cst_135 = arith.constant 9.99999996E-13 : f32
    %330 = vector.broadcast %cst_135 : f32 to vector<16x1xf32>
    %331 = arith.addf %329, %330 : vector<16x1xf32>
    %332 = math.rsqrt %331 : vector<16x1xf32>
    %333 = vector.broadcast %332 : vector<16x1xf32> to vector<16x128xf32>
    %334 = arith.mulf %324, %333 : vector<16x128xf32>
    %335 = vector.broadcast %316 : vector<1x128xf32> to vector<16x128xf32>
    %336 = arith.mulf %334, %335 : vector<16x128xf32>
    %337 = vector.broadcast %318 : vector<1x128xf32> to vector<16x128xf32>
    %338 = arith.addf %336, %337 : vector<16x128xf32>
    %c1_136 = arith.constant 1 : index
    %c0_137 = arith.constant 0 : index
    %c0_138 = arith.constant 0 : index
    %339 = vector.load %arg11[%c1_136, %c0_137, %c0_138] : memref<2x128x512xbf16, #tpu.memory_space<vmem>>, vector<1x128x512xbf16>
    %340 = vector.shape_cast %339 : vector<1x128x512xbf16> to vector<128x512xbf16>
    %c1_139 = arith.constant 1 : index
    %c0_140 = arith.constant 0 : index
    %c0_141 = arith.constant 0 : index
    %341 = vector.load %arg12[%c1_139, %c0_140, %c0_141] : memref<2x1x512xf32, #tpu.memory_space<vmem>>, vector<1x1x512xf32>
    %342 = vector.shape_cast %341 : vector<1x1x512xf32> to vector<1x512xf32>
    %343 = arith.truncf %338 : vector<16x128xf32> to vector<16x128xbf16>
    %cst_142 = arith.constant dense<0.000000e+00> : vector<16x512xf32>
    %344 = tpu.matmul %343, %340, %cst_142 {dimension_numbers = #tpu.dot_dimension_numbers<[1], [0], [0], [1], [0, 0, 1, 1], [], []>} : vector<16x128xbf16>, vector<128x512xbf16>, vector<16x512xf32> -> vector<16x512xf32>
    %345 = vector.broadcast %342 : vector<1x512xf32> to vector<16x512xf32>
    %346 = arith.addf %344, %345 : vector<16x512xf32>
    %cst_143 = arith.constant 5.000000e-01 : f32
    %347 = vector.broadcast %cst_143 : f32 to vector<16x512xf32>
    %348 = arith.mulf %347, %346 : vector<16x512xf32>
    %cst_144 = arith.constant 0.707106769 : f32
    %349 = vector.broadcast %cst_144 : f32 to vector<16x512xf32>
    %350 = arith.mulf %346, %349 : vector<16x512xf32>
    %351 = math.erf %350 : vector<16x512xf32>
    %cst_145 = arith.constant 1.000000e+00 : f32
    %352 = vector.broadcast %cst_145 : f32 to vector<16x512xf32>
    %353 = arith.addf %352, %351 : vector<16x512xf32>
    %354 = arith.mulf %348, %353 : vector<16x512xf32>
    %c1_146 = arith.constant 1 : index
    %c0_147 = arith.constant 0 : index
    %c0_148 = arith.constant 0 : index
    %355 = vector.load %arg13[%c1_146, %c0_147, %c0_148] : memref<2x512x128xbf16, #tpu.memory_space<vmem>>, vector<1x512x128xbf16>
    %356 = vector.shape_cast %355 : vector<1x512x128xbf16> to vector<512x128xbf16>
    %c1_149 = arith.constant 1 : index
    %c0_150 = arith.constant 0 : index
    %c0_151 = arith.constant 0 : index
    %357 = vector.load %arg14[%c1_149, %c0_150, %c0_151] : memref<2x1x128xf32, #tpu.memory_space<vmem>>, vector<1x1x128xf32>
    %358 = vector.shape_cast %357 : vector<1x1x128xf32> to vector<1x128xf32>
    %359 = arith.truncf %354 : vector<16x512xf32> to vector<16x512xbf16>
    %cst_152 = arith.constant dense<0.000000e+00> : vector<16x128xf32>
    %360 = tpu.matmul %359, %356, %cst_152 {dimension_numbers = #tpu.dot_dimension_numbers<[1], [0], [0], [1], [0, 0, 1, 1], [], []>} : vector<16x512xbf16>, vector<512x128xbf16>, vector<16x128xf32> -> vector<16x128xf32>
    %361 = vector.broadcast %358 : vector<1x128xf32> to vector<16x128xf32>
    %362 = arith.addf %360, %361 : vector<16x128xf32>
    %363 = arith.addf %362, %338 : vector<16x128xf32>
    %c1_153 = arith.constant 1 : index
    %c0_154 = arith.constant 0 : index
    %c0_155 = arith.constant 0 : index
    %364 = vector.load %arg15[%c1_153, %c0_154, %c0_155] : memref<2x1x128xf32, #tpu.memory_space<vmem>>, vector<1x1x128xf32>
    %365 = vector.shape_cast %364 : vector<1x1x128xf32> to vector<1x128xf32>
    %c1_156 = arith.constant 1 : index
    %c0_157 = arith.constant 0 : index
    %c0_158 = arith.constant 0 : index
    %366 = vector.load %arg16[%c1_156, %c0_157, %c0_158] : memref<2x1x128xf32, #tpu.memory_space<vmem>>, vector<1x1x128xf32>
    %367 = vector.shape_cast %366 : vector<1x1x128xf32> to vector<1x128xf32>
    %cst_159 = arith.constant dense<0.000000e+00> : vector<16xf32>
    %368 = vector.multi_reduction <add>, %363, %cst_159 [1] : vector<16x128xf32> to vector<16xf32>
    %369 = vector.shape_cast %368 : vector<16xf32> to vector<16x1xf32>
    %cst_160 = arith.constant 1.280000e+02 : f32
    %370 = vector.broadcast %cst_160 : f32 to vector<16x1xf32>
    %371 = arith.divf %369, %370 : vector<16x1xf32>
    %372 = vector.broadcast %371 : vector<16x1xf32> to vector<16x128xf32>
    %373 = arith.subf %363, %372 : vector<16x128xf32>
    %374 = arith.mulf %373, %373 : vector<16x128xf32>
    %cst_161 = arith.constant dense<0.000000e+00> : vector<16xf32>
    %375 = vector.multi_reduction <add>, %374, %cst_161 [1] : vector<16x128xf32> to vector<16xf32>
    %376 = vector.shape_cast %375 : vector<16xf32> to vector<16x1xf32>
    %cst_162 = arith.constant 1.280000e+02 : f32
    %377 = vector.broadcast %cst_162 : f32 to vector<16x1xf32>
    %378 = arith.divf %376, %377 : vector<16x1xf32>
    %cst_163 = arith.constant 9.99999996E-13 : f32
    %379 = vector.broadcast %cst_163 : f32 to vector<16x1xf32>
    %380 = arith.addf %378, %379 : vector<16x1xf32>
    %381 = math.rsqrt %380 : vector<16x1xf32>
    %382 = vector.broadcast %381 : vector<16x1xf32> to vector<16x128xf32>
    %383 = arith.mulf %373, %382 : vector<16x128xf32>
    %384 = vector.broadcast %365 : vector<1x128xf32> to vector<16x128xf32>
    %385 = arith.mulf %383, %384 : vector<16x128xf32>
    %386 = vector.broadcast %367 : vector<1x128xf32> to vector<16x128xf32>
    %387 = arith.addf %385, %386 : vector<16x128xf32>
    %c0_164 = arith.constant 0 : index
    %c0_165 = arith.constant 0 : index
    %388 = vector.load %arg17[%c0_164, %c0_165] : memref<128x128xbf16, #tpu.memory_space<vmem>>, vector<128x128xbf16>
    %c0_166 = arith.constant 0 : index
    %c0_167 = arith.constant 0 : index
    %389 = vector.load %arg18[%c0_166, %c0_167] : memref<1x128xf32, #tpu.memory_space<vmem>>, vector<1x128xf32>
    %390 = arith.truncf %387 : vector<16x128xf32> to vector<16x128xbf16>
    %cst_168 = arith.constant dense<0.000000e+00> : vector<16x128xf32>
    %391 = tpu.matmul %390, %388, %cst_168 {dimension_numbers = #tpu.dot_dimension_numbers<[1], [0], [0], [1], [0, 0, 1, 1], [], []>} : vector<16x128xbf16>, vector<128x128xbf16>, vector<16x128xf32> -> vector<16x128xf32>
    %392 = vector.broadcast %389 : vector<1x128xf32> to vector<16x128xf32>
    %393 = arith.addf %391, %392 : vector<16x128xf32>
    %c0_169 = arith.constant 0 : index
    %c0_170 = arith.constant 0 : index
    %394 = vector.load %arg19[%c0_169, %c0_170] : memref<16x128xf32, #tpu.memory_space<vmem>>, vector<16x128xf32>
    tpu.vector_store %arg19[%c0_169, %c0_170], %393 {strides = array<i32>} : memref<16x128xf32, #tpu.memory_space<vmem>>, vector<16x128xf32>,
    return
  }
  func.func @transform_0(%arg0: i32) -> (i32, i32) {
    %c0_i32 = arith.constant 0 : i32
    %c0_i32_0 = arith.constant 0 : i32
    %c0_i32_1 = arith.constant 0 : i32
    return %c0_i32, %c0_i32_0 : i32, i32
  }
  func.func @transform_1(%arg0: i32) -> (i32, i32) {
    %c0_i32 = arith.constant 0 : i32
    %c0_i32_0 = arith.constant 0 : i32
    %c0_i32_1 = arith.constant 0 : i32
    return %c0_i32, %c0_i32_0 : i32, i32
  }
  func.func @transform_2(%arg0: i32) -> (i32, i32) {
    %c0_i32 = arith.constant 0 : i32
    %c0_i32_0 = arith.constant 0 : i32
    %c0_i32_1 = arith.constant 0 : i32
    return %c0_i32, %c0_i32_0 : i32, i32
  }
  func.func @transform_3(%arg0: i32) -> (i32, i32) {
    %c0_i32 = arith.constant 0 : i32
    %c0_i32_0 = arith.constant 0 : i32
    %c0_i32_1 = arith.constant 0 : i32
    return %c0_i32, %c0_i32_0 : i32, i32
  }
  func.func @transform_4(%arg0: i32) -> (i32, i32, i32) {
    %c0_i32 = arith.constant 0 : i32
    %c0_i32_0 = arith.constant 0 : i32
    %c0_i32_1 = arith.constant 0 : i32
    %c0_i32_2 = arith.constant 0 : i32
    return %c0_i32, %c0_i32_0, %c0_i32_1 : i32, i32, i32
  }
  func.func @transform_5(%arg0: i32) -> (i32, i32, i32) {
    %c0_i32 = arith.constant 0 : i32
    %c0_i32_0 = arith.constant 0 : i32
    %c0_i32_1 = arith.constant 0 : i32
    %c0_i32_2 = arith.constant 0 : i32
    return %c0_i32, %c0_i32_0, %c0_i32_1 : i32, i32, i32
  }
  func.func @transform_6(%arg0: i32) -> (i32, i32, i32) {
    %c0_i32 = arith.constant 0 : i32
    %c0_i32_0 = arith.constant 0 : i32
    %c0_i32_1 = arith.constant 0 : i32
    %c0_i32_2 = arith.constant 0 : i32
    return %c0_i32, %c0_i32_0, %c0_i32_1 : i32, i32, i32
  }
  func.func @transform_7(%arg0: i32) -> (i32, i32, i32) {
    %c0_i32 = arith.constant 0 : i32
    %c0_i32_0 = arith.constant 0 : i32
    %c0_i32_1 = arith.constant 0 : i32
    %c0_i32_2 = arith.constant 0 : i32
    return %c0_i32, %c0_i32_0, %c0_i32_1 : i32, i32, i32
  }
  func.func @transform_8(%arg0: i32) -> (i32, i32, i32) {
    %c0_i32 = arith.constant 0 : i32
    %c0_i32_0 = arith.constant 0 : i32
    %c0_i32_1 = arith.constant 0 : i32
    %c0_i32_2 = arith.constant 0 : i32
    return %c0_i32, %c0_i32_0, %c0_i32_1 : i32, i32, i32
  }
  func.func @transform_9(%arg0: i32) -> (i32, i32, i32) {
    %c0_i32 = arith.constant 0 : i32
    %c0_i32_0 = arith.constant 0 : i32
    %c0_i32_1 = arith.constant 0 : i32
    %c0_i32_2 = arith.constant 0 : i32
    return %c0_i32, %c0_i32_0, %c0_i32_1 : i32, i32, i32
  }
  func.func @transform_10(%arg0: i32) -> (i32, i32, i32) {
    %c0_i32 = arith.constant 0 : i32
    %c0_i32_0 = arith.constant 0 : i32
    %c0_i32_1 = arith.constant 0 : i32
    %c0_i32_2 = arith.constant 0 : i32
    return %c0_i32, %c0_i32_0, %c0_i32_1 : i32, i32, i32
  }
  func.func @transform_11(%arg0: i32) -> (i32, i32, i32) {
    %c0_i32 = arith.constant 0 : i32
    %c0_i32_0 = arith.constant 0 : i32
    %c0_i32_1 = arith.constant 0 : i32
    %c0_i32_2 = arith.constant 0 : i32
    return %c0_i32, %c0_i32_0, %c0_i32_1 : i32, i32, i32
  }
  func.func @transform_12(%arg0: i32) -> (i32, i32, i32) {
    %c0_i32 = arith.constant 0 : i32
    %c0_i32_0 = arith.constant 0 : i32
    %c0_i32_1 = arith.constant 0 : i32
    %c0_i32_2 = arith.constant 0 : i32
    return %c0_i32, %c0_i32_0, %c0_i32_1 : i32, i32, i32
  }
  func.func @transform_13(%arg0: i32) -> (i32, i32, i32) {
    %c0_i32 = arith.constant 0 : i32
    %c0_i32_0 = arith.constant 0 : i32
    %c0_i32_1 = arith.constant 0 : i32
    %c0_i32_2 = arith.constant 0 : i32
    return %c0_i32, %c0_i32_0, %c0_i32_1 : i32, i32, i32
  }
  func.func @transform_14(%arg0: i32) -> (i32, i32, i32) {
    %c0_i32 = arith.constant 0 : i32
    %c0_i32_0 = arith.constant 0 : i32
    %c0_i32_1 = arith.constant 0 : i32
    %c0_i32_2 = arith.constant 0 : i32
    return %c0_i32, %c0_i32_0, %c0_i32_1 : i32, i32, i32
  }
  func.func @transform_15(%arg0: i32) -> (i32, i32, i32) {
    %c0_i32 = arith.constant 0 : i32
    %c0_i32_0 = arith.constant 0 : i32
    %c0_i32_1 = arith.constant 0 : i32
    %c0_i32_2 = arith.constant 0 : i32
    return %c0_i32, %c0_i32_0, %c0_i32_1 : i32, i32, i32
  }
  func.func @transform_16(%arg0: i32) -> (i32, i32) {
    %c0_i32 = arith.constant 0 : i32
    %c0_i32_0 = arith.constant 0 : i32
    %c0_i32_1 = arith.constant 0 : i32
    return %c0_i32, %c0_i32_0 : i32, i32
  }
  func.func @transform_17(%arg0: i32) -> (i32, i32) {
    %c0_i32 = arith.constant 0 : i32
    %c0_i32_0 = arith.constant 0 : i32
    %c0_i32_1 = arith.constant 0 : i32
    return %c0_i32, %c0_i32_0 : i32, i32
  }
  func.func @transform_18(%arg0: i32) -> (i32, i32) {
    %c0_i32 = arith.constant 0 : i32
    %c0_i32_0 = arith.constant 0 : i32
    %c0_i32_1 = arith.constant 0 : i32
    return %c0_i32, %c0_i32_0 : i32, i32
  }
}

</mosaic_0001>

<bundles_post_ra>
// kernel: bert_encoder_forward.1
= control target key start
LH: loop header
LB: loop body
LE: loop exit
PB: predicated region body
PF: predicated region fallthrough
CT: control target
= control target key end

     0   :  { %s6172_s0 = inlined_call_operand.vmem [shape: f32[16,128], index: 0, kind: input, shape index: {}]   ;;  %s6173_s1 = inlined_call_operand.vmem [shape: f32[16,16], index: 1, kind: input, shape index: {}]   ;;  %s6174_s2 = inlined_call_operand.vmem [shape: f32[1,128], index: 2, kind: input, shape index: {}]   ;;  %s6175_s3 = inlined_call_operand.vmem [shape: f32[1,128], index: 3, kind: input, shape index: {}]   ;;  %s6176_s4 = inlined_call_operand.vmem [shape: bf16[2,128,384], index: 4, kind: input, shape index: {}]   ;;  %s6177_s5 = inlined_call_operand.vmem [shape: f32[2,1,384], index: 5, kind: input, shape index: {}]   ;;  %s6178_s6 = inlined_call_operand.vmem [shape: bf16[2,128,128], index: 6, kind: input, shape index: {}]   ;;  %s6179_s7 = inlined_call_operand.vmem [shape: f32[2,1,128], index: 7, kind: input, shape index: {}]   ;;  %s6180_s8 = inlined_call_operand.vmem [shape: f32[2,1,128], index: 8, kind: input, shape index: {}]   ;;  %s6181_s9 = inlined_call_operand.vmem [shape: f32[2,1,128], index: 9, kind: input, shape index: {}]   ;;  %s6182_s10 = inlined_call_operand.vmem [shape: bf16[2,128,512], index: 10, kind: input, shape index: {}]   ;;  %s6183_s11 = inlined_call_operand.vmem [shape: f32[2,1,512], index: 11, kind: input, shape index: {}]   ;;  %s6184_s12 = inlined_call_operand.vmem [shape: bf16[2,512,128], index: 12, kind: input, shape index: {}]   ;;  %s6185_s13 = inlined_call_operand.vmem [shape: f32[2,1,128], index: 13, kind: input, shape index: {}]   ;;  %s6186_s14 = inlined_call_operand.vmem [shape: f32[2,1,128], index: 14, kind: input, shape index: {}]   ;;  %s6187_s15 = inlined_call_operand.vmem [shape: f32[2,1,128], index: 15, kind: input, shape index: {}]   ;;  %s6188_s16 = inlined_call_operand.vmem [shape: bf16[128,128], index: 16, kind: input, shape index: {}]   ;;  %s6189_s17 = inlined_call_operand.vmem [shape: f32[1,128], index: 17, kind: input, shape index: {}]   ;;  %s6190_s18 = inlined_call_operand.hbm [shape: f32[16,128], index: 18, kind: output, shape index: {}]  }
   0x1   :  { %6193 = sst [smem:[#allocation5_spill]] %s6172_s0 }
   0x2   :  { %6194 = sst [smem:[#allocation6_spill]] %s6173_s1 }
   0x3   :  { %6195 = sst [smem:[#allocation7_spill]] %s6174_s2 }
   0x4   :  { %s6196_s29 = sld [smem:[#allocation5_spill]]  ;;  %v4626_v2 = vld [vmem:[%s6176_s4 + $0x4] ss:$12 sps:$4 sm:$0xff]   ;;  %v4628_v3 = vld [vmem:[%s6176_s4] ss:$12 sps:$4 sm:$0xff]   ;;  %v5016_v4 = vmov 0.0  }
   0x5   :  { %4397 = vmatprep.subr.bf16.mxu1 %v5016_v4  ;;  %v4629_v5 = vld [vmem:[%s6176_s4 + $0x8] ss:$12 sps:$4 sm:$0xff]   ;;  %284 = vmatprep.subr.bf16.mxu0 %v4626_v2 }
   0x6   :  { %v4630_v6 = vld [vmem:[%s6176_s4 + $0x1c] ss:$12 sps:$4 sm:$0xff]   ;;  %285 = vmatpush1.bf16.msra.mxu0 %v4628_v3  ;;  %4398 = vmatpush3.bf16.msra.mxu1 %v4629_v5 }
   0x7   :  { %286 = vmatprep.subr.bf16.mxu0 %v4630_v6  ;;  %4399 = vmatprep.subr.bf16.mxu1 %v5016_v4 }
   0xa   :  { %v61_v0 = vld [vmem:[%s6196_s29] sm:$0xff]  ;;  %v62_v1 = vld [vmem:[%s6196_s29 + $0x8] sm:$0xff] }
   0xb   :  { %65 = vadd.xlane.f32.xlu0 %v61_v0 }
   0xf   :  { %67 = vadd.xlane.f32.xlu0 %v62_v1 }
  0x10   :  { %23 = vsyncpa [#allocation3], 0  ;;  %v4632_v15 = vld [vmem:[%s6176_s4 + $0x18] ss:$12 sps:$4 sm:$0xff]   ;;  %v4633_v16 = vld [vmem:[%s6176_s4 + $0x20] ss:$12 sps:$4 sm:$0xff]   ;;  %v141_v53 = vlaneseq }
  0x11   :  { %287 = vmatpush1.bf16.msra.mxu0 %v4632_v15  ;;  %4400 = vmatpush3.bf16.msra.mxu1 %v4633_v16  ;;  %v4634_v17 = vld [vmem:[%s6176_s4 + $0x34] ss:$12 sps:$4 sm:$0xff]   ;;  %v4636_v18 = vld [vmem:[%s6176_s4 + $0x30] ss:$12 sps:$4 sm:$0xff]   ;;  %v4637_v19 = vld [vmem:[%s6176_s4 + $0x38] ss:$12 sps:$4 sm:$0xff]  }
  0x12   :  { %4401 = vmatprep.subr.bf16.mxu1 %v5016_v4  ;;  %288 = vmatprep.subr.bf16.mxu0 %v4634_v17  ;;  %v4638_v20 = vld [vmem:[%s6176_s4 + $0x4c] ss:$12 sps:$4 sm:$0xff]   ;;  %v4640_v21 = vld [vmem:[%s6176_s4 + $0x48] ss:$12 sps:$4 sm:$0xff]   ;;  %v4641_v22 = vld [vmem:[%s6176_s4 + $0x50] ss:$12 sps:$4 sm:$0xff]  }
  0x13   :  { %v4642_v23 = vld [vmem:[%s6176_s4 + $0x64] ss:$12 sps:$4 sm:$0xff]   ;;  %v4644_v24 = vld [vmem:[%s6176_s4 + $0x60] ss:$12 sps:$4 sm:$0xff]   ;;  %v4645_v25 = vld [vmem:[%s6176_s4 + $0x68] ss:$12 sps:$4 sm:$0xff]  }
  0x14   :  { %v4646_v26 = vld [vmem:[%s6176_s4 + $0x7c] ss:$12 sps:$4 sm:$0xff]   ;;  %v4648_v27 = vld [vmem:[%s6176_s4 + $0x78] ss:$12 sps:$4 sm:$0xff]   ;;  %v4649_v28 = vld [vmem:[%s6176_s4 + $0x80] ss:$12 sps:$4 sm:$0xff]  }
  0x15   :  { %289 = vmatpush1.bf16.msra.mxu0 %v4636_v18  ;;  %4402 = vmatpush3.bf16.msra.mxu1 %v4637_v19  ;;  %v4650_v29 = vld [vmem:[%s6176_s4 + $0x94] ss:$12 sps:$4 sm:$0xff]   ;;  %v5017_v30 = vmov 0   ;;  %vm5018_vm0 = vmmov 0   ;;  %v4652_v31 = vld [vmem:[%s6176_s4 + $0x90] ss:$12 sps:$4 sm:$0xff]  }
  0x16   :  { %4403 = vmatprep.subr.bf16.mxu1 %v5016_v4  ;;  %290 = vmatprep.subr.bf16.mxu0 %v4638_v20  ;;  %v4653_v32 = vld [vmem:[%s6176_s4 + $0x98] ss:$12 sps:$4 sm:$0xff]   ;;  %v4656_v34 = vld [vmem:[%s6176_s4 + $0xa8] ss:$12 sps:$4 sm:$0xff]   ;;  %v4657_v35 = vld [vmem:[%s6176_s4 + $0xb0] ss:$12 sps:$4 sm:$0xff]  }
  0x17   :  { %316 = vmatprep.mubr.bf16.mxu0 %v5017_v30  ;;  %4413 = vmatprep.mubr.msk.bf16.mxu1 %vm5018_vm0, %v5016_v4  ;;  %v4654_v33 = vld [vmem:[%s6176_s4 + $0xac] ss:$12 sps:$4 sm:$0xff]   ;;  %s6197_s2 = sld [smem:[#allocation7_spill]]  ;;  %v3836_v48 = vld [vmem:[%s6175_s3] ss:$0 sm:$0xff]  ;;  %v5237_v54 = vshrl.u32 %v141_v53, 7 }
  0x18   :  { %v138_v57 = vld [vmem:[%s6177_s5] sm:$0x7]  ;;  %vm387_vm1 = vcmask 261120   ;;  %s6198_s28 = sld [smem:[#allocation6_spill]]  ;;  %vm439_vm2 = vcmask 130048   ;;  %s5019_s0 = smov 96  }
  0x19   :  { %291 = vmatpush1.bf16.msra.mxu0 %v4640_v21  ;;  %4404 = vmatpush3.bf16.msra.mxu1 %v4641_v22  ;;  %v5240_v55 = vsub.s32 0, %v5237_v54  ;;  %v5243_v56 = vsub.s32 2, %v5237_v54  ;;  %v5249_v58 = vsub.s32 1, %v5237_v54  ;;  %s5020_s19 = smov 64   ;;  %s5021_s25 = smov 32  }
  0x1a   :  { %4405 = vmatprep.subr.bf16.mxu1 %v5016_v4  ;;  %292 = vmatprep.subr.bf16.mxu0 %v4642_v23  ;;  %s5022_s24 = smov [#allocation2]  }
  0x1b   :  { %v144_v59 = vrot.slane %v138_v57, %v5240_v55  ;;  %v152_v60 = vrot.slane %v138_v57, %v5243_v56  ;;  %v148_v63 = vrot.slane %v138_v57, %v5249_v58 }
  0x1d   :  { %293 = vmatpush1.bf16.msra.mxu0 %v4644_v24  ;;  %4406 = vmatpush3.bf16.msra.mxu1 %v4645_v25  ;;  %v3835_v44 = vld [vmem:[%s6197_s2] ss:$0 sm:$0xff] }
  0x1e   :  { %294 = vmatprep.subr.bf16.mxu0 %v4646_v26  ;;  %4407 = vmatprep.subr.bf16.mxu1 %v5016_v4  ;;  %v5272_v18 = vld [vmem:[%s6198_s28] sm:$0xff]  ;;  %v5277_v22 = vld [vmem:[%s6198_s28 + $0x8] sm:$0xff] }
  0x21   :  { %295 = vmatpush1.bf16.msra.mxu0 %v4648_v27  ;;  %4408 = vmatpush3.bf16.msra.mxu1 %v4649_v28 }
  0x22   :  { %296 = vmatprep.subr.bf16.mxu0 %v4650_v29  ;;  %4409 = vmatprep.subr.bf16.mxu1 %v5016_v4 }
  0x25   :  { %297 = vmatpush1.bf16.msra.mxu0 %v4652_v31  ;;  %4410 = vmatpush3.bf16.msra.mxu1 %v4653_v32 }
  0x26   :  { %298 = vmatprep.subr.bf16.mxu0 %v4654_v33  ;;  %4411 = vmatprep.subr.bf16.mxu1 %v5016_v4 }
  0x29   :  { %299 = vmatpush1.bf16.msra.mxu0 %v4656_v34  ;;  %4412 = vmatpush3.bf16.msra.mxu1 %v4657_v35 }
  0x2a   :  { %4417 = vmatprep.subr.bf16.mxu1 %v5016_v4  ;;  %4441 = vmatprep.subr.bf16.mxu0 %v5016_v4 }
  0x98   :  { %v66_v7 = vpop.xlane.xlu0 %65 }
  0x99   :  { %v70_v8 = vmul.f32 0.0078125, %v66_v7 }
  0x9b   :  { %v5140_v9 = vsub.f32 %v61_v0, %v70_v8 }
  0x9c   :  { %v68_v10 = vpop.xlane.xlu0 %67 }
  0x9d   :  { %v71_v11 = vmul.f32 0.0078125, %v68_v10  ;;  %v74_v12 = vmul.f32 %v5140_v9, %v5140_v9 }
  0x9f   :  { %v5144_v13 = vsub.f32 %v62_v1, %v71_v11  ;;  %76 = vadd.xlane.f32.xlu1 %v74_v12 }
  0xa1   :  { %v75_v14 = vmul.f32 %v5144_v13, %v5144_v13 }
  0xa3   :  { %78 = vadd.xlane.f32.xlu1 %v75_v14 }
 0x12c   :  { %v77_v36 = vpop.xlane.xlu1 %76 }
 0x12d   :  { %v80_v37 = vmul.f32 0.0078125, %v77_v36 }
 0x12f   :  { %v82_v38 = vadd.f32 1e-12, %v80_v37 }
 0x130   :  { %v79_v39 = vpop.xlane.xlu1 %78 }
 0x131   :  { %4874 = vrsqrt.f32 %v82_v38  ;;  %v81_v40 = vmul.f32 0.0078125, %v79_v39 }
 0x133   :  { %v83_v41 = vadd.f32 1e-12, %v81_v40 }
 0x135   :  { %4876 = vrsqrt.f32 %v83_v41 }
 0x13b   :  { %v4875_v42 = vpop.eup %4874 }
 0x13c   :  { %v86_v43 = vmul.f32 %v4875_v42, %v5140_v9 }
 0x13e   :  { %v94_v47 = vmul.f32 %v3835_v44, %v86_v43 }
 0x13f   :  { %v4877_v45 = vpop.eup %4876 }
 0x140   :  { %v87_v46 = vmul.f32 %v4877_v45, %v5144_v13  ;;  %v5227_v50 = vadd.f32 %v3836_v48, %v94_v47 }
 0x142   :  { %v95_v49 = vmul.f32 %v3835_v44, %v87_v46 }
 0x144   :  { %v5229_v51 = vadd.f32 %v3836_v48, %v95_v49 }
 0x146   :  { %v139_v52 = vpack.c.bf16 %v5229_v51, %v5227_v50 }
 0x148   :  { %317 = vmatmul.mubr.bf16.vlgmr.msra.gmra.mrb[0].mxu0 %v139_v52  ;;  %4414 = vmatmul.mubr.bf16.vlgmr.msra.gmra.mrb[0].mxu1 %v139_v52 }
 0x149   :  { %4419 = vmatprep.mubr.msk.bf16.mxu1 %vm5018_vm0, %v5016_v4  ;;  %4445 = vmatprep.mubr.msk.bf16.mxu0 %vm5018_vm0, %v5016_v4 }
 0x21b   :  { %v318_v61 = vpop.f32.mrb[0].mxu0  ;;  %v361_v62 = vpop.f32.mrb[0].mxu1 }
 0x21c   :  { %v320_v0 = vpop.f32.mrb[1].mxu0  ;;  %v4415_v1 = vpop.f32.mrb[1].mxu1  ;;  %v319_v5 = vadd.f32 %v318_v61, %v144_v59  ;;  %v362_v6 = vadd.f32 %v361_v62, %v152_v60 }
 0x21d   :  { %v322_v2 = vpop.f32.mrb[2].mxu0  ;;  %v364_v3 = vpop.f32.mrb[2].mxu1  ;;  %v321_v11 = vadd.f32 %v320_v0, %v148_v63 }
 0x21e   :  { %v323_v7 = vadd.f32 %v322_v2, %v144_v59  ;;  %v365_v8 = vadd.f32 %v364_v3, %v152_v60  ;;  %v324_v9 = vpop.f32.mrb[3].mxu0  ;;  %v4416_v10 = vpop.f32.mrb[3].mxu1 }
 0x21f   :  { %v325_v12 = vadd.f32 %v324_v9, %v148_v63 }
 0x220   :  { %v5254_v13 = vpack.c.bf16 %v323_v7, %v319_v5  ;;  %v5256_v14 = vpack.c.bf16 %v365_v8, %v362_v6 }
 0x221   :  { %v5258_v15 = vpack.c.bf16 %v325_v12, %v321_v11 }
 0x223   :  { %v392_v16 = vsel %vm387_vm1, %v5258_v15, 0 }
 0x224   :  { %4418 = vmatpush3.bf16.xpose.msra.mxu1 %v392_v16 }
 0x225   :  { %4423 = vmatprep.subr.bf16.mxu1 %v5016_v4 }
 0x22b   :  { %4420 = vmatmul.mubr.msk.bf16.vlgmr.msra.gmra.mrb[4].mxu1 %vm387_vm1, %v5254_v13 }
 0x22c   :  { %4424 = vmatpush3.bf16.msra.mxu1 %v5256_v14  ;;  %4425 = vmatprep.mubr.msk.bf16.mxu1 %vm5018_vm0, %v5016_v4 }
 0x22d   :  { %4429 = vmatprep.subr.bf16.mxu1 %v5016_v4 }
 0x2fe   :  { %v428_v17 = vpop.f32.mrb[4].mxu1 }
 0x2ff   :  { %v435_v19 = vmul.f32 0.17677669, %v428_v17  ;;  %v4421_v20 = vpop.f32.mrb[5].mxu1 }
 0x300   :  { %v431_v21 = vpop.f32.mrb[6].mxu1 }
 0x301   :  { %v436_v23 = vmul.f32 0.17677669, %v431_v21  ;;  %v4422_v24 = vpop.f32.mrb[7].mxu1  ;;  %v437_v25 = vadd.f32 %v435_v19, %v5272_v18 }
 0x302   :  { %v4661_v24 = vld [vmem:[%s6178_s6 + $0x18] sm:$0xff]  }
 0x303   :  { %v440_v26 = vsel %vm439_vm2, %v437_v25, -inf  ;;  %v438_v27 = vadd.f32 %v436_v23, %v5277_v22  ;;  %v4660_v23 = vld [vmem:[%s6178_s6 + $0x10] sm:$0xff]  }
 0x304   :  { %441 = vmax.xlane.f32.xlu0 %v440_v26  ;;  %4442 = vmatpush3.bf16.msra.mxu0 %v4660_v23 }
 0x305   :  { %v443_v28 = vsel %vm439_vm2, %v438_v27, -inf  ;;  %4443 = vmatprep.subr.bf16.mxu0 %v5016_v4 }
 0x306   :  { %444 = vmax.xlane.f32.xlu1 %v443_v28 }
 0x308   :  { %4444 = vmatpush3.bf16.msra.mxu0 %v4661_v24 }
 0x309   :  { %4457 = vmatprep.subr.bf16.mxu0 %v5016_v4 }
 0x391   :  { %v442_v29 = vpop.xlane.xlu0 %441 }
 0x392   :  { %v446_v31 = vsub.f32 %v437_v25, %v442_v29 }
 0x393   :  { %v445_v32 = vpop.xlane.xlu1 %444 }
 0x394   :  { %v448_v33 = vmul.f32 1.442695, %v446_v31  ;;  %v447_v34 = vsub.f32 %v438_v27, %v445_v32 }
 0x396   :  { %4878 = vpow2.f32 %v448_v33  ;;  %v450_v35 = vmul.f32 1.442695, %v447_v34  ;;  %v4658_v33 = vld [vmem:[%s6178_s6] sm:$0xff]  }
 0x398   :  { %4880 = vpow2.f32 %v450_v35  ;;  %v4659_v35 = vld [vmem:[%s6178_s6 + $0x8] sm:$0xff]  }
 0x3a0   :  { %v4879_v36 = vpop.eup %4878 }
 0x3a1   :  { %v452_v37 = vsel %vm439_vm2, %v4879_v36, 0.0 }
 0x3a2   :  { %v4881_v38 = vpop.eup %4880  ;;  %453 = vadd.xlane.f32.xlu0 %v452_v37 }
 0x3a3   :  { %v455_v39 = vsel %vm439_vm2, %v4881_v38, 0.0 }
 0x3a4   :  { %456 = vadd.xlane.f32.xlu1 %v455_v39 }
 0x3b5   :  { %509 = vrot.lane.b32.xlu1 %v5254_v13, %s5019_s0 }
 0x3b8   :  { %512 = vrot.lane.b32.xlu0 %v5258_v15, %s5019_s0 }
 0x42f   :  { %v454_v40 = vpop.xlane.xlu0 %453 }
 0x430   :  { %4882 = vrcp.f32 %v454_v40 }
 0x431   :  { %v457_v41 = vpop.xlane.xlu1 %456 }
 0x432   :  { %4884 = vrcp.f32 %v457_v41 }
 0x433   :  { %v513_v46 = vpop.permute.xlu0 %512 }
 0x434   :  { %v518_v48 = vsel %vm387_vm1, %v513_v46, 0 }
 0x435   :  { %v510_v49 = vpop.permute.xlu1 %509 }
 0x43a   :  { %v4883_v42 = vpop.eup %4882 }
 0x43b   :  { %v460_v44 = vmul.f32 %v4883_v42, %v4879_v36 }
 0x43c   :  { %v4885_v43 = vpop.eup %4884 }
 0x43d   :  { %v461_v45 = vmul.f32 %v4885_v43, %v4881_v38 }
 0x43f   :  { %v462_v47 = vpack.c.bf16 %v461_v45, %v460_v44 }
 0x441   :  { %4426 = vmatmul.mubr.msk.bf16.vlgmr.msra.gmra.mrb[8].mxu1 %vm439_vm2, %v462_v47 }
 0x442   :  { %4430 = vmatpush3.bf16.xpose.msra.mxu1 %v518_v48  ;;  %4431 = vmatprep.mubr.msk.bf16.mxu1 %vm5018_vm0, %v5016_v4 }
 0x443   :  { %4435 = vmatprep.subr.bf16.mxu1 %v5016_v4 }
 0x449   :  { %4432 = vmatmul.mubr.msk.bf16.vlgmr.msra.gmra.mrb[12].mxu1 %vm387_vm1, %v510_v49 }
 0x44a   :  { %4437 = vmatprep.mubr.msk.bf16.mxu1 %vm5018_vm0, %v5016_v4 }
 0x514   :  { %v500_v52 = vpop.f32.mrb[8].mxu1 }
 0x515   :  { %v4427_v53 = vpop.f32.mrb[9].mxu1 }
 0x516   :  { %v503_v57 = vpop.f32.mrb[10].mxu1 }
 0x517   :  { %v507_v59 = vpack.c.bf16 %v503_v57, %v500_v52  ;;  %v4428_v60 = vpop.f32.mrb[11].mxu1 }
 0x51c   :  { %v554_v61 = vpop.f32.mrb[12].mxu1 }
 0x51d   :  { %v561_v62 = vmul.f32 0.17677669, %v554_v61  ;;  %v4433_v63 = vpop.f32.mrb[13].mxu1 }
 0x51e   :  { %v557_v0 = vpop.f32.mrb[14].mxu1 }
 0x51f   :  { %v562_v1 = vmul.f32 0.17677669, %v557_v0  ;;  %v4434_v2 = vpop.f32.mrb[15].mxu1  ;;  %v563_v3 = vadd.f32 %v561_v62, %v5272_v18 }
 0x521   :  { %v565_v5 = vsel %vm439_vm2, %v563_v3, -inf  ;;  %v564_v6 = vadd.f32 %v562_v1, %v5277_v22 }
 0x522   :  { %566 = vmax.xlane.f32.xlu1 %v565_v5 }
 0x523   :  { %v568_v7 = vsel %vm439_vm2, %v564_v6, -inf }
 0x524   :  { %569 = vmax.xlane.f32.xlu0 %v568_v7 }
 0x5af   :  { %v567_v8 = vpop.xlane.xlu1 %566 }
 0x5b0   :  { %v571_v9 = vsub.f32 %v563_v3, %v567_v8 }
 0x5b1   :  { %v570_v10 = vpop.xlane.xlu0 %569 }
 0x5b2   :  { %v573_v11 = vmul.f32 1.442695, %v571_v9  ;;  %v572_v12 = vsub.f32 %v564_v6, %v570_v10 }
 0x5b4   :  { %4886 = vpow2.f32 %v573_v11  ;;  %v575_v16 = vmul.f32 1.442695, %v572_v12 }
 0x5b6   :  { %4888 = vpow2.f32 %v575_v16 }
 0x5be   :  { %v4887_v17 = vpop.eup %4886 }
 0x5bf   :  { %v577_v19 = vsel %vm439_vm2, %v4887_v17, 0.0 }
 0x5c0   :  { %v4889_v20 = vpop.eup %4888  ;;  %578 = vadd.xlane.f32.xlu0 %v577_v19 }
 0x5c1   :  { %v580_v21 = vsel %vm439_vm2, %v4889_v20, 0.0 }
 0x5c2   :  { %581 = vadd.xlane.f32.xlu1 %v580_v21 }
 0x5d3   :  { %751 = vrot.lane.b32.xlu1 %v5258_v15, %s5020_s19 }
 0x5d6   :  { %589 = vrot.lane.b32.xlu0 %v5256_v14, %s5019_s0 }
 0x5d7   :  { %749 = vrot.lane.b32.xlu1 %v5254_v13, %s5020_s19 }
 0x64d   :  { %v579_v25 = vpop.xlane.xlu0 %578 }
 0x64e   :  { %4890 = vrcp.f32 %v579_v25 }
 0x64f   :  { %v582_v26 = vpop.xlane.xlu1 %581 }
 0x650   :  { %4892 = vrcp.f32 %v582_v26 }
 0x651   :  { %v590_v27 = vpop.permute.xlu0 %589 }
 0x652   :  { %4436 = vmatpush3.bf16.msra.mxu1 %v590_v27 }
 0x653   :  { %4449 = vmatprep.subr.bf16.mxu1 %v5016_v4  ;;  %v752_v38 = vpop.permute.xlu1 %751 }
 0x654   :  { %v757_v42 = vsel %vm387_vm1, %v752_v38, 0 }
 0x657   :  { %v750_v47 = vpop.permute.xlu1 %749 }
 0x658   :  { %v4891_v28 = vpop.eup %4890 }
 0x659   :  { %v585_v31 = vmul.f32 %v4891_v28, %v4887_v17 }
 0x65a   :  { %v4893_v29 = vpop.eup %4892 }
 0x65b   :  { %v586_v32 = vmul.f32 %v4893_v29, %v4889_v20 }
 0x65d   :  { %v587_v34 = vpack.c.bf16 %v586_v32, %v585_v31 }
 0x65f   :  { %4438 = vmatmul.mubr.msk.bf16.vlgmr.msra.gmra.mrb[16].mxu1 %vm439_vm2, %v587_v34 }
 0x660   :  { %4450 = vmatpush3.bf16.msra.mxu1 %v4658_v33  ;;  %4453 = vmatprep.mubr.msk.bf16.mxu1 %vm5018_vm0, %v5016_v4  ;;  %v4663_v33 = vld [vmem:[%s6178_s6 + $0x28] sm:$0xff]  }
 0x661   :  { %4451 = vmatprep.subr.bf16.mxu1 %v5016_v4 }
 0x664   :  { %4452 = vmatpush3.bf16.msra.mxu1 %v4659_v35 }
 0x665   :  { %4463 = vmatprep.subr.bf16.mxu1 %v5016_v4 }
 0x667   :  { %4454 = vmatmul.mubr.msk.bf16.vlgmr.msra.gmra.mrb[20].mxu1 %vm387_vm1, %v507_v59 }
 0x668   :  { %4465 = vmatprep.mubr.msk.bf16.mxu1 %vm5018_vm0, %v5016_v4 }
 0x732   :  { %v629_v36 = vpop.f32.mrb[16].mxu1 }
 0x733   :  { %v4439_v37 = vpop.f32.mrb[17].mxu1 }
 0x734   :  { %v632_v39 = vpop.f32.mrb[18].mxu1 }
 0x735   :  { %v636_v40 = vpack.c.bf16 %v632_v39, %v629_v36  ;;  %v4440_v41 = vpop.f32.mrb[19].mxu1 }
 0x737   :  { %4446 = vmatmul.mubr.msk.bf16.vlgmr.msra.gmra.mrb[4].mxu0 %vm387_vm1, %v636_v40 }
 0x738   :  { %4458 = vmatpush3.bf16.xpose.msra.mxu0 %v757_v42  ;;  %4459 = vmatprep.mubr.msk.bf16.mxu0 %vm5018_vm0, %v5016_v4 }
 0x739   :  { %4469 = vmatprep.subr.bf16.mxu0 %v5016_v4 }
 0x73a   :  { %v742_v43 = vpop.f32.mrb[20].mxu1 }
 0x73b   :  { %v4455_v44 = vpop.f32.mrb[21].mxu1 }
 0x73c   :  { %v745_v45 = vpop.f32.mrb[22].mxu1 }
 0x73d   :  { %v4456_v46 = vpop.f32.mrb[23].mxu1 }
 0x73f   :  { %4460 = vmatmul.mubr.msk.bf16.vlgmr.msra.gmra.mrb[8].mxu0 %vm387_vm1, %v750_v47 }
 0x740   :  { %4473 = vmatprep.mubr.msk.bf16.mxu0 %vm5018_vm0, %v5016_v4 }
 0x80a   :  { %v686_v48 = vpop.f32.mrb[4].mxu0 }
 0x80b   :  { %v5340_v49 = vadd.f32 %v742_v43, %v686_v48  ;;  %v4447_v52 = vpop.f32.mrb[5].mxu0 }
 0x80c   :  { %v689_v53 = vpop.f32.mrb[6].mxu0 }
 0x80d   :  { %v5342_v57 = vadd.f32 %v745_v45, %v689_v53  ;;  %v4448_v59 = vpop.f32.mrb[7].mxu0 }
 0x812   :  { %v793_v60 = vpop.f32.mrb[8].mxu0 }
 0x813   :  { %v800_v61 = vmul.f32 0.17677669, %v793_v60  ;;  %v4461_v62 = vpop.f32.mrb[9].mxu0 }
 0x814   :  { %v796_v63 = vpop.f32.mrb[10].mxu0 }
 0x815   :  { %v801_v0 = vmul.f32 0.17677669, %v796_v63  ;;  %v4462_v1 = vpop.f32.mrb[11].mxu0  ;;  %v802_v2 = vadd.f32 %v800_v61, %v5272_v18 }
 0x817   :  { %v804_v3 = vsel %vm439_vm2, %v802_v2, -inf  ;;  %v803_v5 = vadd.f32 %v801_v0, %v5277_v22 }
 0x818   :  { %805 = vmax.xlane.f32.xlu1 %v804_v3 }
 0x819   :  { %v807_v6 = vsel %vm439_vm2, %v803_v5, -inf }
 0x81a   :  { %808 = vmax.xlane.f32.xlu0 %v807_v6 }
 0x829   :  { %827 = vrot.lane.b32.xlu1 %v5256_v14, %s5020_s19 }
 0x82d   :  { %933 = vrot.lane.b32.xlu1 %v5254_v13, %s5021_s25  ;;  %v4662_v13 = vld [vmem:[%s6178_s6 + $0x20] sm:$0xff]  }
 0x82e   :  { %4470 = vmatpush3.bf16.msra.mxu0 %v4662_v13 }
 0x82f   :  { %4471 = vmatprep.subr.bf16.mxu0 %v5016_v4 }
 0x832   :  { %4472 = vmatpush3.bf16.msra.mxu0 %v4663_v33 }
 0x833   :  { %4483 = vmatprep.subr.bf16.mxu0 %v5016_v4 }
 0x8a5   :  { %v806_v7 = vpop.xlane.xlu1 %805 }
 0x8a6   :  { %v810_v8 = vsub.f32 %v802_v2, %v806_v7 }
 0x8a7   :  { %v809_v9 = vpop.xlane.xlu0 %808 }
 0x8a8   :  { %v812_v10 = vmul.f32 1.442695, %v810_v8  ;;  %v811_v11 = vsub.f32 %v803_v5, %v809_v9 }
 0x8a9   :  { %v828_v12 = vpop.permute.xlu1 %827 }
 0x8aa   :  { %4894 = vpow2.f32 %v812_v10  ;;  %v814_v16 = vmul.f32 1.442695, %v811_v11  ;;  %4464 = vmatpush3.bf16.msra.mxu1 %v828_v12 }
 0x8ab   :  { %4477 = vmatprep.subr.bf16.mxu1 %v5016_v4 }
 0x8ac   :  { %4896 = vpow2.f32 %v814_v16 }
 0x8b4   :  { %v4895_v17 = vpop.eup %4894 }
 0x8b5   :  { %v816_v19 = vsel %vm439_vm2, %v4895_v17, 0.0 }
 0x8b6   :  { %v4897_v20 = vpop.eup %4896  ;;  %817 = vadd.xlane.f32.xlu0 %v816_v19 }
 0x8b7   :  { %v819_v21 = vsel %vm439_vm2, %v4897_v20, 0.0 }
 0x8ba   :  { %820 = vadd.xlane.f32.xlu0 %v819_v21 }
 0x8d0   :  { %935 = vrot.lane.b32.xlu0 %v5258_v15, %s5021_s25  ;;  %v934_v15 = vpop.permute.xlu1 %933 }
 0x943   :  { %v818_v23 = vpop.xlane.xlu0 %817 }
 0x944   :  { %4898 = vrcp.f32 %v818_v23 }
 0x947   :  { %v821_v24 = vpop.xlane.xlu0 %820 }
 0x948   :  { %4900 = vrcp.f32 %v821_v24 }
 0x94b   :  { %v936_v29 = vpop.permute.xlu0 %935 }
 0x94c   :  { %v941_v32 = vsel %vm387_vm1, %v936_v29, 0 }
 0x94e   :  { %v4899_v25 = vpop.eup %4898 }
 0x94f   :  { %v824_v27 = vmul.f32 %v4899_v25, %v4895_v17  ;;  %v3881_v25 = vld [vmem:[%s6179_s7] ss:$0 sm:$0xff] }
 0x952   :  { %v4901_v26 = vpop.eup %4900 }
 0x953   :  { %v825_v28 = vmul.f32 %v4901_v26, %v4897_v20 }
 0x955   :  { %v826_v31 = vpack.c.bf16 %v825_v28, %v824_v27 }
 0x957   :  { %4466 = vmatmul.mubr.msk.bf16.vlgmr.msra.gmra.mrb[24].mxu1 %vm439_vm2, %v826_v31 }
 0x958   :  { %4478 = vmatpush3.bf16.xpose.msra.mxu1 %v941_v32  ;;  %4479 = vmatprep.mubr.msk.bf16.mxu1 %vm5018_vm0, %v5016_v4 }
 0x959   :  { %4489 = vmatprep.subr.bf16.mxu1 %v5016_v4 }
 0x95f   :  { %4480 = vmatmul.mubr.msk.bf16.vlgmr.msra.gmra.mrb[28].mxu1 %vm387_vm1, %v934_v15 }
 0x960   :  { %4493 = vmatprep.mubr.msk.bf16.mxu1 %vm5018_vm0, %v5016_v4 }
 0xa2a   :  { %v867_v34 = vpop.f32.mrb[24].mxu1 }
 0xa2b   :  { %v4467_v35 = vpop.f32.mrb[25].mxu1 }
 0xa2c   :  { %v870_v36 = vpop.f32.mrb[26].mxu1  ;;  %v4666_v35 = vld [vmem:[%s6182_s10] ss:$16 sps:$4 sm:$0xff]  }
 0xa2d   :  { %v874_v37 = vpack.c.bf16 %v870_v36, %v867_v34  ;;  %v4468_v38 = vpop.f32.mrb[27].mxu1  ;;  %v4668_v36 = vld [vmem:[%s6182_s10 + $0x4] ss:$16 sps:$4 sm:$0xff]  }
 0xa2e   :  { %v4677_v38 = vld [vmem:[%s6182_s10 + $0x2c] ss:$16 sps:$4 sm:$0xff]  }
 0xa2f   :  { %4474 = vmatmul.mubr.msk.bf16.vlgmr.msra.gmra.mrb[12].mxu0 %vm387_vm1, %v874_v37  ;;  %v4669_v37 = vld [vmem:[%s6182_s10 + $0x8] ss:$16 sps:$4 sm:$0xff]  }
 0xa30   :  { %4485 = vmatprep.mubr.msk.bf16.mxu0 %vm5018_vm0, %v5016_v4 }
 0xa32   :  { %v977_v39 = vpop.f32.mrb[28].mxu1 }
 0xa33   :  { %v984_v40 = vmul.f32 0.17677669, %v977_v39  ;;  %v4481_v41 = vpop.f32.mrb[29].mxu1  ;;  %v4672_v39 = vld [vmem:[%s6182_s10 + $0x20] ss:$16 sps:$4 sm:$0xff]  }
 0xa34   :  { %v980_v42 = vpop.f32.mrb[30].mxu1 }
 0xa35   :  { %v985_v43 = vmul.f32 0.17677669, %v980_v42  ;;  %v4482_v44 = vpop.f32.mrb[31].mxu1  ;;  %v986_v45 = vadd.f32 %v984_v40, %v5272_v18  ;;  %v4675_v40 = vld [vmem:[%s6182_s10 + $0x28] ss:$16 sps:$4 sm:$0xff]  }
 0xa37   :  { %v988_v46 = vsel %vm439_vm2, %v986_v45, -inf  ;;  %v987_v47 = vadd.f32 %v985_v43, %v5277_v22  ;;  %v4664_v22 = vld [vmem:[%s6178_s6 + $0x30] sm:$0xff]  }
 0xa38   :  { %989 = vmax.xlane.f32.xlu1 %v988_v46  ;;  %4490 = vmatpush3.bf16.msra.mxu1 %v4664_v22  ;;  %v4690_v22 = vld [vmem:[%s6182_s10 + $0x80] ss:$16 sps:$4 sm:$0xff]  }
 0xa39   :  { %v991_v48 = vsel %vm439_vm2, %v987_v47, -inf  ;;  %4491 = vmatprep.subr.bf16.mxu1 %v5016_v4 }
 0xa3a   :  { %992 = vmax.xlane.f32.xlu0 %v991_v48 }
 0xac5   :  { %v990_v52 = vpop.xlane.xlu1 %989 }
 0xac6   :  { %v994_v53 = vsub.f32 %v986_v45, %v990_v52  ;;  %v4680_v52 = vld [vmem:[%s6182_s10 + $0x44] ss:$16 sps:$4 sm:$0xff]  }
 0xac7   :  { %v993_v59 = vpop.xlane.xlu0 %992 }
 0xac8   :  { %v996_v60 = vmul.f32 1.442695, %v994_v53  ;;  %v995_v61 = vsub.f32 %v987_v47, %v993_v59  ;;  %v4683_v53 = vld [vmem:[%s6182_s10 + $0x4c] ss:$16 sps:$4 sm:$0xff]   ;;  %v4678_v59 = vld [vmem:[%s6182_s10 + $0x40] ss:$16 sps:$4 sm:$0xff]  }
 0xaca   :  { %4902 = vpow2.f32 %v996_v60  ;;  %v998_v62 = vmul.f32 1.442695, %v995_v61  ;;  %v4681_v60 = vld [vmem:[%s6182_s10 + $0x48] ss:$16 sps:$4 sm:$0xff]   ;;  %v4686_v61 = vld [vmem:[%s6182_s10 + $0x64] ss:$16 sps:$4 sm:$0xff]  }
 0xacc   :  { %4904 = vpow2.f32 %v998_v62  ;;  %v4689_v62 = vld [vmem:[%s6182_s10 + $0x6c] ss:$16 sps:$4 sm:$0xff]  }
 0xad4   :  { %v4903_v63 = vpop.eup %4902 }
 0xad5   :  { %v1000_v0 = vsel %vm439_vm2, %v4903_v63, 0.0 }
 0xad6   :  { %v4905_v18 = vpop.eup %4904  ;;  %1001 = vadd.xlane.f32.xlu0 %v1000_v0  ;;  %v4687_v0 = vld [vmem:[%s6182_s10 + $0x68] ss:$16 sps:$4 sm:$0xff]  }
 0xad7   :  { %v1003_v1 = vsel %vm439_vm2, %v4905_v18, 0.0 }
 0xad8   :  { %1004 = vadd.xlane.f32.xlu1 %v1003_v1  ;;  %v4695_v1 = vld [vmem:[%s6182_s10 + $0x8c] ss:$16 sps:$4 sm:$0xff]  }
 0xaec   :  { %1011 = vrot.lane.b32.xlu0 %v5256_v14, %s5021_s25 }
 0xb02   :  { %v924_v2 = vpop.f32.mrb[12].mxu0 }
 0xb03   :  { %v931_v3 = vadd.f32 %v924_v2, %v5340_v49  ;;  %v4475_v5 = vpop.f32.mrb[13].mxu0  ;;  %v4665_v49 = vld [vmem:[%s6178_s6 + $0x38] sm:$0xff]  }
 0xb04   :  { %v927_v6 = vpop.f32.mrb[14].mxu0  ;;  %4492 = vmatpush3.bf16.msra.mxu1 %v4665_v49  ;;  %v4693_v2 = vld [vmem:[%s6182_s10 + $0x88] ss:$16 sps:$4 sm:$0xff]   ;;  %v4701_v5 = vld [vmem:[%s6182_s10 + $0xac] ss:$16 sps:$4 sm:$0xff]   ;;  %v4715_v49 = vld [vmem:[%s6184_s12 + $0xc0] sm:$0xff]  }
 0xb05   :  { %v932_v7 = vadd.f32 %v927_v6, %v5342_v57  ;;  %v4476_v8 = vpop.f32.mrb[15].mxu0  ;;  %v4696_v6 = vld [vmem:[%s6182_s10 + $0xa0] ss:$16 sps:$4 sm:$0xff]  }
 0xb06   :  { %v4704_v8 = vld [vmem:[%s6182_s10 + $0xc4] ss:$16 sps:$4 sm:$0xff]  }
 0xb63   :  { %v1002_v9 = vpop.xlane.xlu0 %1001 }
 0xb64   :  { %4906 = vrcp.f32 %v1002_v9  ;;  %v4707_v9 = vld [vmem:[%s6182_s10 + $0xcc] ss:$16 sps:$4 sm:$0xff]  }
 0xb65   :  { %v1005_v10 = vpop.xlane.xlu1 %1004 }
 0xb66   :  { %4908 = vrcp.f32 %v1005_v10  ;;  %v4702_v10 = vld [vmem:[%s6182_s10 + $0xc0] ss:$16 sps:$4 sm:$0xff]  }
 0xb67   :  { %v1012_v14 = vpop.permute.xlu0 %1011 }
 0xb68   :  { %4484 = vmatpush3.bf16.msra.mxu0 %v1012_v14  ;;  %v4705_v14 = vld [vmem:[%s6182_s10 + $0xc8] ss:$16 sps:$4 sm:$0xff]  }
 0xb69   :  { %1383 = vmatprep.subr.bf16.mxu0 %v4668_v36  ;;  %v4717_v36 = vld [vmem:[%s6184_s12 + $0x80] sm:$0xff]  }
 0xb6e   :  { %v4907_v11 = vpop.eup %4906 }
 0xb6f   :  { %v1008_v16 = vmul.f32 %v4907_v11, %v4903_v63  ;;  %v4684_v63 = vld [vmem:[%s6182_s10 + $0x60] ss:$16 sps:$4 sm:$0xff]   ;;  %v4710_v11 = vld [vmem:[%s6182_s10 + $0xe4] ss:$16 sps:$4 sm:$0xff]  }
 0xb70   :  { %v4909_v12 = vpop.eup %4908 }
 0xb71   :  { %v1009_v17 = vmul.f32 %v4909_v12, %v4905_v18  ;;  %v4692_v18 = vld [vmem:[%s6182_s10 + $0x84] ss:$16 sps:$4 sm:$0xff]   ;;  %v4713_v12 = vld [vmem:[%s6182_s10 + $0xec] ss:$16 sps:$4 sm:$0xff]  }
 0xb73   :  { %v1010_v19 = vpack.c.bf16 %v1009_v17, %v1008_v16  ;;  %v4708_v16 = vld [vmem:[%s6182_s10 + $0xe0] ss:$16 sps:$4 sm:$0xff]   ;;  %v4711_v17 = vld [vmem:[%s6182_s10 + $0xe8] ss:$16 sps:$4 sm:$0xff]  }
 0xb75   :  { %4486 = vmatmul.mubr.msk.bf16.vlgmr.msra.gmra.mrb[16].mxu0 %vm439_vm2, %v1010_v19  ;;  %v4714_v19 = vld [vmem:[%s6184_s12 + $0x40] sm:$0xff]  }
 0xb76   :  { %1415 = vmatprep.mubr.bf16.mxu0 %v5017_v30  ;;  %1384 = vmatpush1.bf16.msra.mxu0 %v4666_v35  ;;  %v4716_v35 = vld [vmem:[%s6184_s12] sm:$0xff]  }
 0xc48   :  { %v1051_v57 = vpop.f32.mrb[16].mxu0 }
 0xc49   :  { %v4487_v20 = vpop.f32.mrb[17].mxu0 }
 0xc4a   :  { %v1054_v21 = vpop.f32.mrb[18].mxu0 }
 0xc4b   :  { %v1058_v13 = vpack.c.bf16 %v1054_v21, %v1051_v57  ;;  %v4488_v23 = vpop.f32.mrb[19].mxu0 }
 0xc4d   :  { %4494 = vmatmul.mubr.msk.bf16.vlgmr.msra.gmra.mrb[32].mxu1 %vm387_vm1, %v1058_v13 }
 0xc4e   :  { %1458 = vmatprep.mubr.bf16.mxu1 %v5017_v30 }
 0xd20   :  { %v1108_v24 = vpop.f32.mrb[32].mxu1 }
 0xd21   :  { %v1115_v26 = vadd.f32 %v1108_v24, %v931_v3  ;;  %v4495_v27 = vpop.f32.mrb[33].mxu1  ;;  %v4698_v3 = vld [vmem:[%s6182_s10 + $0xa4] ss:$16 sps:$4 sm:$0xff]  }
 0xd22   :  { %v1111_v28 = vpop.f32.mrb[34].mxu1  ;;  %v3882_v27 = vld [vmem:[%s6180_s8] ss:$0 sm:$0xff] }
 0xd23   :  { %v1124_v29 = vadd.f32 %v3881_v25, %v1115_v26  ;;  %v1116_v31 = vadd.f32 %v1111_v28, %v932_v7  ;;  %v4496_v32 = vpop.f32.mrb[35].mxu1  ;;  %v4699_v7 = vld [vmem:[%s6182_s10 + $0xa8] ss:$16 sps:$4 sm:$0xff]  }
 0xd24   :  { %v3883_v32 = vld [vmem:[%s6181_s9] ss:$0 sm:$0xff] }
 0xd25   :  { %v1125_v15 = vadd.f32 %v3881_v25, %v1116_v31  ;;  %v1126_v33 = vadd.f32 %v1124_v29, %v5227_v50  ;;  %v4671_v50 = vld [vmem:[%s6182_s10 + $0xc] ss:$16 sps:$4 sm:$0xff]  }
 0xd26   :  { %1426 = vmatprep.subr.bf16.mxu1 %v4671_v50  ;;  %v4718_v50 = vld [vmem:[%s6184_s12 + $0x48] sm:$0xff]  }
 0xd27   :  { %1130 = vadd.xlane.f32.xlu1 %v1126_v33  ;;  %v1127_v34 = vadd.f32 %v1125_v15, %v5229_v51  ;;  %v4674_v51 = vld [vmem:[%s6182_s10 + $0x24] ss:$16 sps:$4 sm:$0xff]   ;;  %1427 = vmatpush1.bf16.msra.mxu1 %v4669_v37 }
 0xd28   :  { %1385 = vmatprep.subr.bf16.mxu0 %v4674_v51  ;;  %1428 = vmatprep.subr.bf16.mxu1 %v4677_v38  ;;  %v4719_v51 = vld [vmem:[%s6184_s12 + $0xc8] sm:$0xff]  }
 0xd29   :  { %1386 = vmatpush1.bf16.msra.mxu0 %v4672_v39  ;;  %v4720_v38 = vld [vmem:[%s6184_s12 + $0x8] sm:$0xff]  }
 0xd2a   :  { %1387 = vmatprep.subr.bf16.mxu0 %v4680_v52  ;;  %v4721_v39 = vld [vmem:[%s6184_s12 + $0x88] sm:$0xff]   ;;  %v4731_v52 = vld [vmem:[%s6184_s12 + $0xe0] sm:$0xff]  }
 0xd2b   :  { %1132 = vadd.xlane.f32.xlu1 %v1127_v34  ;;  %1429 = vmatpush1.bf16.msra.mxu1 %v4675_v40  ;;  %v4722_v40 = vld [vmem:[%s6184_s12 + $0x50] sm:$0xff]  }
 0xd2c   :  { %1430 = vmatprep.subr.bf16.mxu1 %v4683_v53  ;;  %v4732_v53 = vld [vmem:[%s6184_s12 + $0x20] sm:$0xff]  }
 0xd2d   :  { %1388 = vmatpush1.bf16.msra.mxu0 %v4678_v59  ;;  %v4733_v59 = vld [vmem:[%s6184_s12 + $0xa0] sm:$0xff]  }
 0xd2e   :  { %1389 = vmatprep.subr.bf16.mxu0 %v4686_v61  ;;  %v4735_v61 = vld [vmem:[%s6184_s12 + $0xe8] sm:$0xff]  }
 0xd2f   :  { %1431 = vmatpush1.bf16.msra.mxu1 %v4681_v60  ;;  %v4734_v60 = vld [vmem:[%s6184_s12 + $0x68] sm:$0xff]  }
 0xd30   :  { %1432 = vmatprep.subr.bf16.mxu1 %v4689_v62  ;;  %v4736_v62 = vld [vmem:[%s6184_s12 + $0x28] sm:$0xff]  }
 0xd31   :  { %1390 = vmatpush1.bf16.msra.mxu0 %v4684_v63  ;;  %v4737_v63 = vld [vmem:[%s6184_s12 + $0xa8] sm:$0xff]  }
 0xd32   :  { %1391 = vmatprep.subr.bf16.mxu0 %v4692_v18  ;;  %v4739_v18 = vld [vmem:[%s6184_s12 + $0xf0] sm:$0xff]  }
 0xd33   :  { %1433 = vmatpush1.bf16.msra.mxu1 %v4687_v0  ;;  %v4738_v0 = vld [vmem:[%s6184_s12 + $0x70] sm:$0xff]  }
 0xd34   :  { %1434 = vmatprep.subr.bf16.mxu1 %v4695_v1  ;;  %v4740_v1 = vld [vmem:[%s6184_s12 + $0x30] sm:$0xff]  }
 0xd35   :  { %1392 = vmatpush1.bf16.msra.mxu0 %v4690_v22  ;;  %v4741_v22 = vld [vmem:[%s6184_s12 + $0xb0] sm:$0xff]  }
 0xd36   :  { %1393 = vmatprep.subr.bf16.mxu0 %v4698_v3  ;;  %v4743_v3 = vld [vmem:[%s6184_s12 + $0xf8] sm:$0xff]  }
 0xd37   :  { %1435 = vmatpush1.bf16.msra.mxu1 %v4693_v2  ;;  %v4742_v2 = vld [vmem:[%s6184_s12 + $0x78] sm:$0xff]  }
 0xd38   :  { %1436 = vmatprep.subr.bf16.mxu1 %v4701_v5  ;;  %v4744_v5 = vld [vmem:[%s6184_s12 + $0x38] sm:$0xff]  }
 0xd39   :  { %1394 = vmatpush1.bf16.msra.mxu0 %v4696_v6  ;;  %v4745_v6 = vld [vmem:[%s6184_s12 + $0xb8] sm:$0xff]  }
 0xd3a   :  { %1395 = vmatprep.subr.bf16.mxu0 %v4704_v8  ;;  %v1217_v8 = vsub.s32 3, %v5237_v54 }
 0xd3b   :  { %1437 = vmatpush1.bf16.msra.mxu1 %v4699_v7  ;;  %v1200_v7 = vld [vmem:[%s6183_s11] sm:$0xf] }
 0xd3c   :  { %1438 = vmatprep.subr.bf16.mxu1 %v4707_v9  ;;  %v1206_v9 = vrot.slane %v1200_v7, %v5240_v55 }
 0xd3d   :  { %1396 = vmatpush1.bf16.msra.mxu0 %v4702_v10  ;;  %v1214_v10 = vrot.slane %v1200_v7, %v5243_v56 }
 0xd3e   :  { %1397 = vmatprep.subr.bf16.mxu0 %v4710_v11  ;;  %v1218_v11 = vrot.slane %v1200_v7, %v1217_v8 }
 0xd3f   :  { %1439 = vmatpush1.bf16.msra.mxu1 %v4705_v14  ;;  %v1210_v14 = vrot.slane %v1200_v7, %v5249_v58 }
 0xd40   :  { %1440 = vmatprep.subr.bf16.mxu1 %v4713_v12 }
 0xd41   :  { %1398 = vmatpush1.bf16.msra.mxu0 %v4708_v16 }
 0xd42   :  { %4263 = vmatprep.subr.bf16.mxu0 %v4714_v19 }
 0xd43   :  { %1441 = vmatpush1.bf16.msra.mxu1 %v4711_v17 }
 0xd44   :  { %4285 = vmatprep.subr.bf16.mxu1 %v4715_v49 }
 0xdb4   :  { %v1131_v41 = vpop.xlane.xlu1 %1130 }
 0xdb5   :  { %v1134_v42 = vmul.f32 0.0078125, %v1131_v41  ;;  %v4723_v41 = vld [vmem:[%s6184_s12 + $0xd0] sm:$0xff]  }
 0xdb7   :  { %v5426_v43 = vsub.f32 %v1126_v33, %v1134_v42  ;;  %v4724_v42 = vld [vmem:[%s6184_s12 + $0x10] sm:$0xff]  }
 0xdb8   :  { %v1133_v44 = vpop.xlane.xlu1 %1132 }
 0xdb9   :  { %v1135_v45 = vmul.f32 0.0078125, %v1133_v44  ;;  %v1138_v46 = vmul.f32 %v5426_v43, %v5426_v43  ;;  %v4726_v44 = vld [vmem:[%s6184_s12 + $0x58] sm:$0xff]  }
 0xdbb   :  { %v5430_v47 = vsub.f32 %v1127_v34, %v1135_v45  ;;  %1140 = vadd.xlane.f32.xlu1 %v1138_v46  ;;  %v4727_v45 = vld [vmem:[%s6184_s12 + $0xd8] sm:$0xff]  }
 0xdbc   :  { %v4728_v46 = vld [vmem:[%s6184_s12 + $0x18] sm:$0xff]  }
 0xdbd   :  { %v1139_v48 = vmul.f32 %v5430_v47, %v5430_v47 }
 0xdbf   :  { %1142 = vadd.xlane.f32.xlu1 %v1139_v48  ;;  %v4730_v48 = vld [vmem:[%s6184_s12 + $0x60] sm:$0xff]  }
 0xe48   :  { %v1141_v57 = vpop.xlane.xlu1 %1140 }
 0xe49   :  { %v1144_v20 = vmul.f32 0.0078125, %v1141_v57 }
 0xe4b   :  { %v1146_v21 = vadd.f32 1e-12, %v1144_v20 }
 0xe4c   :  { %v1143_v13 = vpop.xlane.xlu1 %1142 }
 0xe4d   :  { %4910 = vrsqrt.f32 %v1146_v21  ;;  %v1145_v23 = vmul.f32 0.0078125, %v1143_v13 }
 0xe4f   :  { %v1147_v24 = vadd.f32 1e-12, %v1145_v23 }
 0xe51   :  { %4912 = vrsqrt.f32 %v1147_v24 }
 0xe57   :  { %v4911_v25 = vpop.eup %4910 }
 0xe58   :  { %v1150_v26 = vmul.f32 %v4911_v25, %v5426_v43  ;;  %v4725_v43 = vld [vmem:[%s6184_s12 + $0x90] sm:$0xff]  }
 0xe5a   :  { %v1158_v31 = vmul.f32 %v3882_v27, %v1150_v26 }
 0xe5b   :  { %v4913_v28 = vpop.eup %4912 }
 0xe5c   :  { %v1151_v29 = vmul.f32 %v4913_v28, %v5430_v47  ;;  %v5520_v33 = vadd.f32 %v3883_v32, %v1158_v31  ;;  %v4729_v47 = vld [vmem:[%s6184_s12 + $0x98] sm:$0xff]  }
 0xe5e   :  { %v1159_v15 = vmul.f32 %v3882_v27, %v1151_v29 }
 0xe60   :  { %v5522_v34 = vadd.f32 %v3883_v32, %v1159_v15 }
 0xe62   :  { %v1201_v37 = vpack.c.bf16 %v5522_v34, %v5520_v33 }
 0xe64   :  { %1416 = vmatmul.mubr.bf16.vlgmr.msra.gmra.mrb[20].mxu0 %v1201_v37  ;;  %1459 = vmatmul.mubr.bf16.vlgmr.msra.gmra.mrb[36].mxu1 %v1201_v37 }
 0xe65   :  { %4264 = vmatpush3.bf16.msra.mxu0 %v4716_v35  ;;  %4286 = vmatpush3.bf16.msra.mxu1 %v4717_v36 }
 0xe66   :  { %4265 = vmatprep.subr.bf16.mxu0 %v4718_v50  ;;  %4287 = vmatprep.subr.bf16.mxu1 %v4719_v51 }
 0xe69   :  { %4266 = vmatpush3.bf16.msra.mxu0 %v4720_v38  ;;  %4288 = vmatpush3.bf16.msra.mxu1 %v4721_v39 }
 0xe6a   :  { %4267 = vmatprep.subr.bf16.mxu0 %v4722_v40  ;;  %4289 = vmatprep.subr.bf16.mxu1 %v4723_v41 }
 0xe6d   :  { %4268 = vmatpush3.bf16.msra.mxu0 %v4724_v42  ;;  %4290 = vmatpush3.bf16.msra.mxu1 %v4725_v43 }
 0xe6e   :  { %4269 = vmatprep.subr.bf16.mxu0 %v4726_v44  ;;  %4291 = vmatprep.subr.bf16.mxu1 %v4727_v45 }
 0xe71   :  { %4270 = vmatpush3.bf16.msra.mxu0 %v4728_v46  ;;  %4292 = vmatpush3.bf16.msra.mxu1 %v4729_v47 }
 0xe72   :  { %4271 = vmatprep.subr.bf16.mxu0 %v4730_v48  ;;  %4293 = vmatprep.subr.bf16.mxu1 %v4731_v52 }
 0xe75   :  { %4272 = vmatpush3.bf16.msra.mxu0 %v4732_v53  ;;  %4294 = vmatpush3.bf16.msra.mxu1 %v4733_v59 }
 0xe76   :  { %4273 = vmatprep.subr.bf16.mxu0 %v4734_v60  ;;  %4295 = vmatprep.subr.bf16.mxu1 %v4735_v61 }
 0xe79   :  { %4274 = vmatpush3.bf16.msra.mxu0 %v4736_v62  ;;  %4296 = vmatpush3.bf16.msra.mxu1 %v4737_v63 }
 0xe7a   :  { %4275 = vmatprep.subr.bf16.mxu0 %v4738_v0  ;;  %4297 = vmatprep.subr.bf16.mxu1 %v4739_v18 }
 0xe7d   :  { %4276 = vmatpush3.bf16.msra.mxu0 %v4740_v1  ;;  %4298 = vmatpush3.bf16.msra.mxu1 %v4741_v22 }
 0xe7e   :  { %4277 = vmatprep.subr.bf16.mxu0 %v4742_v2  ;;  %4299 = vmatprep.subr.bf16.mxu1 %v4743_v3 }
 0xe81   :  { %4278 = vmatpush3.bf16.msra.mxu0 %v4744_v5  ;;  %4300 = vmatpush3.bf16.msra.mxu1 %v4745_v6 }
 0xe82   :  { %4497 = vmatprep.subr.bf16.mxu1 %v5016_v4 }
 0xf37   :  { %v1417_v12 = vpop.f32.mrb[20].mxu0  ;;  %v1460_v16 = vpop.f32.mrb[36].mxu1 }
 0xf38   :  { %v1418_v17 = vadd.f32 %v1417_v12, %v1206_v9  ;;  %v1461_v19 = vadd.f32 %v1460_v16, %v1214_v10  ;;  %v1419_v49 = vpop.f32.mrb[21].mxu0  ;;  %v1462_v57 = vpop.f32.mrb[37].mxu1 }
 0xf39   :  { %v1420_v20 = vadd.f32 %v1419_v49, %v1210_v14  ;;  %v1463_v21 = vadd.f32 %v1462_v57, %v1218_v11  ;;  %v1421_v13 = vpop.f32.mrb[22].mxu0  ;;  %v1464_v23 = vpop.f32.mrb[38].mxu1 }
 0xf3a   :  { %v1477_v24 = vmul.f32 0.70710677, %v1418_v17  ;;  %v1479_v25 = vmul.f32 0.70710677, %v1461_v19  ;;  %v1422_v28 = vadd.f32 %v1421_v13, %v1206_v9  ;;  %v1465_v29 = vadd.f32 %v1464_v23, %v1214_v10  ;;  %v1423_v31 = vpop.f32.mrb[23].mxu0  ;;  %v1466_v32 = vpop.f32.mrb[39].mxu1 }
 0xf3b   :  { %v1478_v26 = vmul.f32 0.70710677, %v1420_v20  ;;  %v1480_v27 = vmul.f32 0.70710677, %v1463_v21  ;;  %v1424_v15 = vadd.f32 %v1423_v31, %v1210_v14  ;;  %v1467_v35 = vadd.f32 %v1466_v32, %v1218_v11 }
 0xf3c   :  { %4914 = verf.f32 %v1477_v24  ;;  %v1481_v36 = vmul.f32 0.70710677, %v1422_v28  ;;  %v1483_v37 = vmul.f32 0.70710677, %v1465_v29  ;;  %v1469_v44 = vmul.f32 0.5, %v1418_v17 }
 0xf3d   :  { %4916 = verf.f32 %v1479_v25  ;;  %v1482_v50 = vmul.f32 0.70710677, %v1424_v15  ;;  %v1484_v51 = vmul.f32 0.70710677, %v1467_v35  ;;  %v1471_v45 = vmul.f32 0.5, %v1461_v19 }
 0xf3e   :  { %4918 = verf.f32 %v1478_v26  ;;  %v1470_v48 = vmul.f32 0.5, %v1420_v20  ;;  %v1473_v53 = vmul.f32 0.5, %v1422_v28  ;;  %v1472_v61 = vmul.f32 0.5, %v1463_v21  ;;  %v3916_v21 = vld [vmem:[%s6185_s13] ss:$0 sm:$0xff] }
 0xf3f   :  { %4920 = verf.f32 %v1480_v27  ;;  %v1475_v63 = vmul.f32 0.5, %v1465_v29  ;;  %v1474_v2 = vmul.f32 0.5, %v1424_v15  ;;  %v1476_v7 = vmul.f32 0.5, %v1467_v35 }
 0xf40   :  { %4922 = verf.f32 %v1481_v36 }
 0xf41   :  { %4924 = verf.f32 %v1483_v37 }
 0xf42   :  { %4926 = verf.f32 %v1482_v50 }
 0xf43   :  { %4928 = verf.f32 %v1484_v51 }
 0xf46   :  { %v4915_v38 = vpop.eup %4914 }
 0xf47   :  { %v4917_v39 = vpop.eup %4916  ;;  %v1493_v42 = vadd.f32 1.0, %v4915_v38  ;;  %v4746_v38 = vld [vmem:[%s6176_s4 + $0xc0] ss:$12 sps:$4 sm:$0xff]  }
 0xf48   :  { %v4919_v40 = vpop.eup %4918  ;;  %v1495_v46 = vadd.f32 1.0, %v4917_v39  ;;  %v4748_v39 = vld [vmem:[%s6176_s4 + $0xc4] ss:$12 sps:$4 sm:$0xff]  }
 0xf49   :  { %v4921_v41 = vpop.eup %4920  ;;  %v1494_v52 = vadd.f32 1.0, %v4919_v40  ;;  %v1501_v1 = vmul.f32 %v1493_v42, %v1469_v44  ;;  %v4749_v40 = vld [vmem:[%s6176_s4 + $0xc8] ss:$12 sps:$4 sm:$0xff]   ;;  %2080 = vmatprep.subr.bf16.mxu0 %v4748_v39 }
 0xf4a   :  { %v4923_v43 = vpop.eup %4922  ;;  %v1496_v62 = vadd.f32 1.0, %v4921_v41  ;;  %v1503_v5 = vmul.f32 %v1495_v46, %v1471_v45 }
 0xf4b   :  { %v4925_v47 = vpop.eup %4924  ;;  %v1497_v59 = vadd.f32 1.0, %v4923_v43  ;;  %v1502_v10 = vmul.f32 %v1494_v52, %v1470_v48  ;;  %v4753_v52 = vld [vmem:[%s6176_s4 + $0xe0] ss:$12 sps:$4 sm:$0xff]  }
 0xf4c   :  { %v4927_v60 = vpop.eup %4926  ;;  %v1499_v0 = vadd.f32 1.0, %v4925_v47  ;;  %v1504_v12 = vmul.f32 %v1496_v62, %v1472_v61  ;;  %v4760_v61 = vld [vmem:[%s6176_s4 + $0x10c] ss:$12 sps:$4 sm:$0xff]   ;;  %v4758_v62 = vld [vmem:[%s6176_s4 + $0x108] ss:$12 sps:$4 sm:$0xff]  }
 0xf4d   :  { %v4929_v18 = vpop.eup %4928  ;;  %v1505_v22 = vmul.f32 %v1497_v59, %v1473_v53  ;;  %v1498_v3 = vadd.f32 1.0, %v4927_v60  ;;  %v4756_v53 = vld [vmem:[%s6176_s4 + $0xf4] ss:$12 sps:$4 sm:$0xff]   ;;  %v4754_v59 = vld [vmem:[%s6176_s4 + $0xf0] ss:$12 sps:$4 sm:$0xff]  }
 0xf4e   :  { %v1507_v6 = vmul.f32 %v1499_v0, %v1475_v63  ;;  %v1500_v9 = vadd.f32 1.0, %v4929_v18  ;;  %v4757_v60 = vld [vmem:[%s6176_s4 + $0xf8] ss:$12 sps:$4 sm:$0xff]   ;;  %v4761_v63 = vld [vmem:[%s6176_s4 + $0x110] ss:$12 sps:$4 sm:$0xff]  }
 0xf4f   :  { %v1574_v14 = vpack.c.bf16 %v1505_v22, %v1501_v1  ;;  %v1506_v11 = vmul.f32 %v1498_v3, %v1474_v2  ;;  %v4764_v0 = vld [vmem:[%s6176_s4 + $0x124] ss:$12 sps:$4 sm:$0xff]   ;;  %v4762_v18 = vld [vmem:[%s6176_s4 + $0x120] ss:$12 sps:$4 sm:$0xff]   ;;  %v4765_v1 = vld [vmem:[%s6176_s4 + $0x128] ss:$12 sps:$4 sm:$0xff]  }
 0xf50   :  { %v1576_v16 = vpack.c.bf16 %v1507_v6, %v1503_v5  ;;  %v1508_v17 = vmul.f32 %v1500_v9, %v1476_v7  ;;  %v4768_v22 = vld [vmem:[%s6176_s4 + $0x13c] ss:$12 sps:$4 sm:$0xff]   ;;  %v4766_v2 = vld [vmem:[%s6176_s4 + $0x138] ss:$12 sps:$4 sm:$0xff]   ;;  %v4769_v3 = vld [vmem:[%s6176_s4 + $0x140] ss:$12 sps:$4 sm:$0xff]  }
 0xf51   :  { %v1575_v19 = vpack.c.bf16 %v1506_v11, %v1502_v10  ;;  %v4772_v5 = vld [vmem:[%s6176_s4 + $0x154] ss:$12 sps:$4 sm:$0xff]   ;;  %v4770_v6 = vld [vmem:[%s6176_s4 + $0x150] ss:$12 sps:$4 sm:$0xff]   ;;  %v4773_v7 = vld [vmem:[%s6176_s4 + $0x158] ss:$12 sps:$4 sm:$0xff]  }
 0xf52   :  { %v1577_v49 = vpack.c.bf16 %v1508_v17, %v1504_v12  ;;  %v4776_v9 = vld [vmem:[%s6176_s4 + $0x16c] ss:$12 sps:$4 sm:$0xff]   ;;  %v4774_v10 = vld [vmem:[%s6176_s4 + $0x168] ss:$12 sps:$4 sm:$0xff]  }
 0xf53   :  { %1808 = vmatprep.mubr.bf16.mxu0 %v1575_v19 }
 0xf54   :  { %1849 = vmatprep.mubr.bf16.mxu1 %v1577_v49  ;;  %1809 = vmatmul.mubr.bf16.vlgmr.msra.gmra.mrb[24].mxu0 %v1574_v14  ;;  %v4777_v14 = vld [vmem:[%s6176_s4 + $0x170] ss:$12 sps:$4 sm:$0xff]  }
 0xf55   :  { %1850 = vmatmul.mubr.bf16.vlgmr.msra.gmra.mrb[40].mxu1 %v1576_v16  ;;  %2112 = vmatprep.mubr.bf16.mxu0 %v5017_v30 }
 0xf56   :  { %4513 = vmatprep.mubr.msk.bf16.mxu1 %vm5018_vm0, %v5016_v4  ;;  %4498 = vmatpush3.bf16.msra.mxu1 %v4749_v40 }
 0xf57   :  { %2081 = vmatpush1.bf16.msra.mxu0 %v4746_v38  ;;  %4499 = vmatprep.subr.bf16.mxu1 %v5016_v4 }
 0xf5a   :  { %4500 = vmatpush3.bf16.msra.mxu1 %v4753_v52 }
 0xf5b   :  { %4501 = vmatprep.subr.bf16.mxu1 %v5016_v4 }
 0xf5e   :  { %4502 = vmatpush3.bf16.msra.mxu1 %v4757_v60 }
 0xf5f   :  { %4503 = vmatprep.subr.bf16.mxu1 %v5016_v4 }
 0xf62   :  { %4504 = vmatpush3.bf16.msra.mxu1 %v4761_v63 }
 0xf63   :  { %4505 = vmatprep.subr.bf16.mxu1 %v5016_v4 }
 0xf66   :  { %4506 = vmatpush3.bf16.msra.mxu1 %v4765_v1 }
 0xf67   :  { %4507 = vmatprep.subr.bf16.mxu1 %v5016_v4 }
 0xf6a   :  { %4508 = vmatpush3.bf16.msra.mxu1 %v4769_v3 }
 0xf6b   :  { %4509 = vmatprep.subr.bf16.mxu1 %v5016_v4 }
 0xf6e   :  { %4510 = vmatpush3.bf16.msra.mxu1 %v4773_v7 }
 0xf6f   :  { %4511 = vmatprep.subr.bf16.mxu1 %v5016_v4 }
 0xf72   :  { %4512 = vmatpush3.bf16.msra.mxu1 %v4777_v14 }
 0xf73   :  { %4523 = vmatprep.subr.bf16.mxu1 %v5016_v4 }
0x1027   :  { %v4279_v57 = vpop.f32.mrb[24].mxu0 }
0x1028   :  { %v4301_v20 = vpop.f32.mrb[40].mxu1  ;;  %v4280_v13 = vpop.f32.mrb[25].mxu0 }
0x1029   :  { %v4281_v23 = vadd.f32 %v4280_v13, %v4279_v57  ;;  %v4302_v24 = vpop.f32.mrb[41].mxu1  ;;  %v4282_v25 = vpop.f32.mrb[26].mxu0 }
0x102a   :  { %v4303_v26 = vadd.f32 %v4302_v24, %v4301_v20  ;;  %v4304_v27 = vpop.f32.mrb[42].mxu1  ;;  %v4283_v28 = vpop.f32.mrb[27].mxu0 }
0x102b   :  { %v1811_v29 = vadd.f32 %v4281_v23, %v3916_v21  ;;  %v4284_v31 = vadd.f32 %v4283_v28, %v4282_v25  ;;  %v4305_v32 = vpop.f32.mrb[43].mxu1  ;;  %v3950_v25 = vld [vmem:[%s6187_s15] ss:$0 sm:$0xff] }
0x102c   :  { %v4306_v15 = vadd.f32 %v4305_v32, %v4304_v27 }
0x102d   :  { %v1852_v35 = vadd.f32 %v4303_v26, %v1811_v29  ;;  %v1814_v36 = vadd.f32 %v4284_v31, %v3916_v21  ;;  %v3949_v21 = vld [vmem:[%s6186_s14] ss:$0 sm:$0xff]  ;;  %v3983_v31 = vld [vmem:[%s6177_s5 + $0x3] sm:$0x7] }
0x102e   :  { %v1940_v32 = vrot.slane %v3983_v31, %v5240_v55 }
0x102f   :  { %v1855_v37 = vadd.f32 %v4306_v15, %v1814_v36  ;;  %v1858_v50 = vadd.f32 %v1852_v35, %v5520_v33  ;;  %v4752_v33 = vld [vmem:[%s6176_s4 + $0xdc] ss:$12 sps:$4 sm:$0xff]   ;;  %v1948_v15 = vrot.slane %v3983_v31, %v5243_v56 }
0x1030   :  { %2082 = vmatprep.subr.bf16.mxu0 %v4752_v33 }
0x1031   :  { %1862 = vadd.xlane.f32.xlu1 %v1858_v50  ;;  %v1859_v51 = vadd.f32 %v1855_v37, %v5522_v34  ;;  %v4750_v34 = vld [vmem:[%s6176_s4 + $0xd8] ss:$12 sps:$4 sm:$0xff]   ;;  %v1944_v37 = vrot.slane %v3983_v31, %v5249_v58 }
0x1032   :  { %2083 = vmatpush1.bf16.msra.mxu0 %v4750_v34 }
0x1033   :  { %2084 = vmatprep.subr.bf16.mxu0 %v4756_v53 }
0x1035   :  { %1864 = vadd.xlane.f32.xlu1 %v1859_v51 }
0x1036   :  { %2085 = vmatpush1.bf16.msra.mxu0 %v4754_v59 }
0x1037   :  { %2086 = vmatprep.subr.bf16.mxu0 %v4760_v61 }
0x103a   :  { %2087 = vmatpush1.bf16.msra.mxu0 %v4758_v62 }
0x103b   :  { %2088 = vmatprep.subr.bf16.mxu0 %v4764_v0 }
0x103e   :  { %2089 = vmatpush1.bf16.msra.mxu0 %v4762_v18 }
0x103f   :  { %2090 = vmatprep.subr.bf16.mxu0 %v4768_v22  ;;  %v5769_v22 = vld [vmem:[%s6198_s28] sm:$0xff] }
0x1042   :  { %2091 = vmatpush1.bf16.msra.mxu0 %v4766_v2 }
0x1043   :  { %2092 = vmatprep.subr.bf16.mxu0 %v4772_v5  ;;  %v5776_v5 = vld [vmem:[%s6198_s28 + $0x8] sm:$0xff] }
0x1046   :  { %2093 = vmatpush1.bf16.msra.mxu0 %v4770_v6 }
0x1047   :  { %2094 = vmatprep.subr.bf16.mxu0 %v4776_v9 }
0x104a   :  { %2095 = vmatpush1.bf16.msra.mxu0 %v4774_v10 }
0x104b   :  { %4517 = vmatprep.subr.bf16.mxu0 %v5016_v4 }
0x10be   :  { %v1863_v41 = vpop.xlane.xlu1 %1862 }
0x10bf   :  { %v1866_v42 = vmul.f32 0.0078125, %v1863_v41 }
0x10c1   :  { %v5650_v43 = vsub.f32 %v1858_v50, %v1866_v42 }
0x10c2   :  { %v1865_v44 = vpop.xlane.xlu1 %1864 }
0x10c3   :  { %v1867_v45 = vmul.f32 0.0078125, %v1865_v44  ;;  %v1870_v46 = vmul.f32 %v5650_v43, %v5650_v43 }
0x10c5   :  { %v1869_v47 = vsub.f32 %v1859_v51, %v1867_v45  ;;  %1872 = vadd.xlane.f32.xlu0 %v1870_v46 }
0x10c7   :  { %v1871_v48 = vmul.f32 %v1869_v47, %v1869_v47 }
0x10c9   :  { %1874 = vadd.xlane.f32.xlu1 %v1871_v48 }
0x1152   :  { %v1873_v11 = vpop.xlane.xlu0 %1872 }
0x1153   :  { %v1876_v12 = vmul.f32 0.0078125, %v1873_v11 }
0x1155   :  { %v1878_v16 = vadd.f32 1e-12, %v1876_v12 }
0x1156   :  { %v1875_v17 = vpop.xlane.xlu1 %1874 }
0x1157   :  { %4930 = vrsqrt.f32 %v1878_v16  ;;  %v1877_v19 = vmul.f32 0.0078125, %v1875_v17 }
0x1159   :  { %v1879_v49 = vadd.f32 1e-12, %v1877_v19 }
0x115b   :  { %4932 = vrsqrt.f32 %v1879_v49 }
0x1161   :  { %v4931_v57 = vpop.eup %4930 }
0x1162   :  { %v1882_v20 = vmul.f32 %v4931_v57, %v5650_v43 }
0x1164   :  { %v1890_v24 = vmul.f32 %v3949_v21, %v1882_v20 }
0x1165   :  { %v4933_v13 = vpop.eup %4932 }
0x1166   :  { %v1883_v23 = vmul.f32 %v4933_v13, %v1869_v47  ;;  %v5726_v27 = vadd.f32 %v3950_v25, %v1890_v24 }
0x1168   :  { %v1891_v26 = vmul.f32 %v3949_v21, %v1883_v23 }
0x116a   :  { %v5728_v28 = vadd.f32 %v3950_v25, %v1891_v26 }
0x116c   :  { %v1935_v29 = vpack.c.bf16 %v5728_v28, %v5726_v27 }
0x116e   :  { %2113 = vmatmul.mubr.bf16.vlgmr.msra.gmra.mrb[28].mxu0 %v1935_v29  ;;  %4514 = vmatmul.mubr.bf16.vlgmr.msra.gmra.mrb[44].mxu1 %v1935_v29 }
0x116f   :  { %4519 = vmatprep.mubr.msk.bf16.mxu0 %vm5018_vm0, %v5016_v4  ;;  %4525 = vmatprep.mubr.msk.bf16.mxu1 %vm5018_vm0, %v5016_v4 }
0x1241   :  { %v2114_v35 = vpop.f32.mrb[28].mxu0  ;;  %v2157_v36 = vpop.f32.mrb[44].mxu1 }
0x1242   :  { %v2116_v50 = vpop.f32.mrb[29].mxu0  ;;  %v4515_v51 = vpop.f32.mrb[45].mxu1  ;;  %v2115_v40 = vadd.f32 %v2114_v35, %v1940_v32  ;;  %v2158_v33 = vadd.f32 %v2157_v36, %v1948_v15 }
0x1243   :  { %v2118_v38 = vpop.f32.mrb[30].mxu0  ;;  %v2160_v39 = vpop.f32.mrb[46].mxu1  ;;  %v2117_v44 = vadd.f32 %v2116_v50, %v1944_v37 }
0x1244   :  { %v2119_v34 = vadd.f32 %v2118_v38, %v1940_v32  ;;  %v2161_v41 = vadd.f32 %v2160_v39, %v1948_v15  ;;  %v2120_v42 = vpop.f32.mrb[31].mxu0  ;;  %v4516_v43 = vpop.f32.mrb[47].mxu1 }
0x1245   :  { %v2121_v45 = vadd.f32 %v2120_v42, %v1944_v37 }
0x1246   :  { %v5742_v46 = vpack.c.bf16 %v2119_v34, %v2115_v40  ;;  %v5744_v47 = vpack.c.bf16 %v2161_v41, %v2158_v33 }
0x1247   :  { %v5746_v48 = vpack.c.bf16 %v2121_v45, %v2117_v44 }
0x1248   :  { %4524 = vmatpush3.bf16.msra.mxu1 %v5744_v47 }
0x1249   :  { %2307 = vrot.lane.b32.xlu1 %v5746_v48, %s5019_s0  ;;  %v2188_v52 = vsel %vm387_vm1, %v5746_v48, 0  ;;  %4535 = vmatprep.subr.bf16.mxu1 %v5016_v4 }
0x124a   :  { %4518 = vmatpush3.bf16.xpose.msra.mxu0 %v2188_v52 }
0x124b   :  { %4529 = vmatprep.subr.bf16.mxu0 %v5016_v4 }
0x124d   :  { %2304 = vrot.lane.b32.xlu1 %v5742_v46, %s5019_s0 }
0x1251   :  { %4520 = vmatmul.mubr.msk.bf16.vlgmr.msra.gmra.mrb[32].mxu0 %vm387_vm1, %v5742_v46 }
0x1252   :  { %4531 = vmatprep.mubr.msk.bf16.mxu0 %vm5018_vm0, %v5016_v4 }
0x12bb   :  { %v2308_v53 = vpop.permute.xlu1 %2307 }
0x12bc   :  { %v2313_v59 = vsel %vm387_vm1, %v2308_v53, 0  ;;  %v4780_v53 = vld [vmem:[%s6178_s6 + $0x50] sm:$0xff]  }
0x12bd   :  { %4530 = vmatpush3.bf16.xpose.msra.mxu0 %v2313_v59  ;;  %v4781_v59 = vld [vmem:[%s6178_s6 + $0x58] sm:$0xff]  }
0x12be   :  { %4541 = vmatprep.subr.bf16.mxu0 %v5016_v4 }
0x12bf   :  { %v2305_v60 = vpop.permute.xlu1 %2304 }
0x12c4   :  { %4532 = vmatmul.mubr.msk.bf16.vlgmr.msra.gmra.mrb[36].mxu0 %vm387_vm1, %v2305_v60 }
0x12c5   :  { %4545 = vmatprep.mubr.msk.bf16.mxu0 %vm5018_vm0, %v5016_v4  ;;  %4542 = vmatpush3.bf16.msra.mxu0 %v4780_v53 }
0x12c6   :  { %4543 = vmatprep.subr.bf16.mxu0 %v5016_v4 }
0x12c9   :  { %4544 = vmatpush3.bf16.msra.mxu0 %v4781_v59 }
0x12ca   :  { %4557 = vmatprep.subr.bf16.mxu0 %v5016_v4 }
0x1324   :  { %v2224_v61 = vpop.f32.mrb[32].mxu0 }
0x1325   :  { %v2231_v62 = vmul.f32 0.17677669, %v2224_v61  ;;  %v4521_v63 = vpop.f32.mrb[33].mxu0 }
0x1326   :  { %v2227_v0 = vpop.f32.mrb[34].mxu0 }
0x1327   :  { %v2232_v18 = vmul.f32 0.17677669, %v2227_v0  ;;  %v4522_v1 = vpop.f32.mrb[35].mxu0  ;;  %v2233_v2 = vadd.f32 %v5769_v22, %v2231_v62 }
0x1329   :  { %v2235_v3 = vsel %vm439_vm2, %v2233_v2, -inf  ;;  %v2234_v6 = vadd.f32 %v5776_v5, %v2232_v18 }
0x132a   :  { %2236 = vmax.xlane.f32.xlu1 %v2235_v3 }
0x132b   :  { %v2238_v7 = vsel %vm439_vm2, %v2234_v6, -inf }
0x132c   :  { %2239 = vmax.xlane.f32.xlu0 %v2238_v7 }
0x133b   :  { %2546 = vrot.lane.b32.xlu1 %v5746_v48, %s5020_s19 }
0x133f   :  { %2544 = vrot.lane.b32.xlu1 %v5742_v46, %s5020_s19 }
0x1397   :  { %v2349_v9 = vpop.f32.mrb[36].mxu0 }
0x1398   :  { %v2356_v10 = vmul.f32 0.17677669, %v2349_v9  ;;  %v4533_v14 = vpop.f32.mrb[37].mxu0 }
0x1399   :  { %v2352_v11 = vpop.f32.mrb[38].mxu0 }
0x139a   :  { %v2357_v12 = vmul.f32 0.17677669, %v2352_v11  ;;  %v4534_v16 = vpop.f32.mrb[39].mxu0  ;;  %v2358_v17 = vadd.f32 %v5769_v22, %v2356_v10 }
0x139c   :  { %v2360_v19 = vsel %vm439_vm2, %v2358_v17, -inf  ;;  %v2359_v49 = vadd.f32 %v5776_v5, %v2357_v12 }
0x139d   :  { %2361 = vmax.xlane.f32.xlu0 %v2360_v19 }
0x139e   :  { %v2363_v57 = vsel %vm439_vm2, %v2359_v49, -inf }
0x13a1   :  { %2364 = vmax.xlane.f32.xlu0 %v2363_v57 }
0x13b7   :  { %v2237_v20 = vpop.xlane.xlu1 %2236 }
0x13b8   :  { %v2241_v21 = vsub.f32 %v2233_v2, %v2237_v20  ;;  %v4778_v2 = vld [vmem:[%s6178_s6 + $0x40] sm:$0xff]  }
0x13b9   :  { %v2240_v13 = vpop.xlane.xlu0 %2239 }
0x13ba   :  { %v2243_v23 = vmul.f32 1.442695, %v2241_v21  ;;  %v2242_v24 = vsub.f32 %v2234_v6, %v2240_v13  ;;  %v4779_v6 = vld [vmem:[%s6178_s6 + $0x48] sm:$0xff]  }
0x13bc   :  { %4934 = vpow2.f32 %v2243_v23  ;;  %v2245_v25 = vmul.f32 1.442695, %v2242_v24 }
0x13be   :  { %4936 = vpow2.f32 %v2245_v25 }
0x13c6   :  { %v4935_v26 = vpop.eup %4934 }
0x13c7   :  { %v2247_v29 = vsel %vm439_vm2, %v4935_v26, 0.0 }
0x13c8   :  { %v4937_v31 = vpop.eup %4936  ;;  %2248 = vadd.xlane.f32.xlu0 %v2247_v29 }
0x13c9   :  { %v2250_v32 = vsel %vm439_vm2, %v4937_v31, 0.0 }
0x13cc   :  { %2251 = vadd.xlane.f32.xlu0 %v2250_v32 }
0x142a   :  { %v2362_v15 = vpop.xlane.xlu0 %2361 }
0x142b   :  { %v2366_v35 = vsub.f32 %v2358_v17, %v2362_v15  ;;  %v2547_v17 = vpop.permute.xlu1 %2546 }
0x142c   :  { %v2552_v20 = vsel %vm387_vm1, %v2547_v17, 0 }
0x142d   :  { %v2368_v36 = vmul.f32 1.442695, %v2366_v35 }
0x142e   :  { %v2365_v37 = vpop.xlane.xlu0 %2364 }
0x142f   :  { %4938 = vpow2.f32 %v2368_v36  ;;  %v2367_v50 = vsub.f32 %v2359_v49, %v2365_v37  ;;  %v2545_v21 = vpop.permute.xlu1 %2544 }
0x1431   :  { %v2370_v51 = vmul.f32 1.442695, %v2367_v50 }
0x1433   :  { %4940 = vpow2.f32 %v2370_v51 }
0x1439   :  { %v4939_v38 = vpop.eup %4938 }
0x143a   :  { %v2372_v39 = vsel %vm439_vm2, %v4939_v38, 0.0 }
0x143b   :  { %2373 = vadd.xlane.f32.xlu0 %v2372_v39 }
0x143d   :  { %v4941_v40 = vpop.eup %4940 }
0x143e   :  { %v2375_v33 = vsel %vm439_vm2, %v4941_v40, 0.0 }
0x143f   :  { %2376 = vadd.xlane.f32.xlu0 %v2375_v33 }
0x1455   :  { %2384 = vrot.lane.b32.xlu0 %v5744_v47, %s5019_s0  ;;  %v2249_v34 = vpop.xlane.xlu0 %2248  ;;  %s3824_s0 = sshll.u32 %s5022_s24, 4  ;;  %s3825_s0 = int_to_ptr.vmem [resolvable:$true] %s3824_s0 }
0x1456   :  { %4942 = vrcp.f32 %v2249_v34  ;;  %p4997_p1 = scmp.lt.s32.totalorder %s3825_s0, %s3825_s0 }
0x1459   :  { %v2252_v41 = vpop.xlane.xlu0 %2251 }
0x145a   :  { %4944 = vrcp.f32 %v2252_v41 }
0x1460   :  { %v4943_v42 = vpop.eup %4942 }
0x1461   :  { %v2255_v44 = vmul.f32 %v4943_v42, %v4935_v26 }
0x1464   :  { %v4945_v43 = vpop.eup %4944 }
0x1465   :  { %v2256_v45 = vmul.f32 %v4945_v43, %v4937_v31 }
0x1467   :  { %v2257_v52 = vpack.c.bf16 %v2256_v45, %v2255_v44 }
0x1469   :  { %4526 = vmatmul.mubr.msk.bf16.vlgmr.msra.gmra.mrb[48].mxu1 %vm439_vm2, %v2257_v52 }
0x146a   :  { %4537 = vmatprep.mubr.msk.bf16.mxu1 %vm5018_vm0, %v5016_v4 }
0x14c8   :  { %v2374_v60 = vpop.xlane.xlu0 %2373 }
0x14c9   :  { %4946 = vrcp.f32 %v2374_v60 }
0x14cc   :  { %v2377_v61 = vpop.xlane.xlu0 %2376 }
0x14cd   :  { %4948 = vrcp.f32 %v2377_v61 }
0x14d0   :  { %v2385_v62 = vpop.permute.xlu0 %2384 }
0x14d1   :  { %4536 = vmatpush3.bf16.msra.mxu1 %v2385_v62 }
0x14d2   :  { %4549 = vmatprep.subr.bf16.mxu1 %v5016_v4 }
0x14d3   :  { %v4947_v63 = vpop.eup %4946 }
0x14d4   :  { %v2380_v18 = vmul.f32 %v4947_v63, %v4939_v38 }
0x14d7   :  { %v4949_v0 = vpop.eup %4948 }
0x14d8   :  { %v2381_v1 = vmul.f32 %v4949_v0, %v4941_v40 }
0x14da   :  { %v2382_v3 = vpack.c.bf16 %v2381_v1, %v2380_v18 }
0x14dc   :  { %4538 = vmatmul.mubr.msk.bf16.vlgmr.msra.gmra.mrb[52].mxu1 %vm439_vm2, %v2382_v3 }
0x14dd   :  { %4550 = vmatpush3.bf16.msra.mxu1 %v4778_v2  ;;  %4553 = vmatprep.mubr.msk.bf16.mxu1 %vm5018_vm0, %v5016_v4 }
0x14de   :  { %4551 = vmatprep.subr.bf16.mxu1 %v5016_v4 }
0x14e1   :  { %4552 = vmatpush3.bf16.msra.mxu1 %v4779_v6 }
0x14e2   :  { %4563 = vmatprep.subr.bf16.mxu1 %v5016_v4 }
0x153c   :  { %v2295_v7 = vpop.f32.mrb[48].mxu1 }
0x153d   :  { %v4527_v9 = vpop.f32.mrb[49].mxu1 }
0x153e   :  { %v2298_v10 = vpop.f32.mrb[50].mxu1 }
0x153f   :  { %v2302_v14 = vpack.c.bf16 %v2298_v10, %v2295_v7  ;;  %v4528_v11 = vpop.f32.mrb[51].mxu1 }
0x1541   :  { %4554 = vmatmul.mubr.msk.bf16.vlgmr.msra.gmra.mrb[56].mxu1 %vm387_vm1, %v2302_v14  ;;  %v4783_v14 = vld [vmem:[%s6178_s6 + $0x68] sm:$0xff]  }
0x1542   :  { %4565 = vmatprep.mubr.msk.bf16.mxu1 %vm5018_vm0, %v5016_v4 }
0x15af   :  { %v2424_v12 = vpop.f32.mrb[52].mxu1 }
0x15b0   :  { %v4539_v16 = vpop.f32.mrb[53].mxu1 }
0x15b1   :  { %v2427_v19 = vpop.f32.mrb[54].mxu1 }
0x15b2   :  { %v2431_v49 = vpack.c.bf16 %v2427_v19, %v2424_v12  ;;  %v4540_v57 = vpop.f32.mrb[55].mxu1 }
0x15b4   :  { %4546 = vmatmul.mubr.msk.bf16.vlgmr.msra.gmra.mrb[40].mxu0 %vm387_vm1, %v2431_v49 }
0x15b5   :  { %4558 = vmatpush3.bf16.xpose.msra.mxu0 %v2552_v20  ;;  %4559 = vmatprep.mubr.msk.bf16.mxu0 %vm5018_vm0, %v5016_v4 }
0x15b6   :  { %4569 = vmatprep.subr.bf16.mxu0 %v5016_v4 }
0x15bc   :  { %4560 = vmatmul.mubr.msk.bf16.vlgmr.msra.gmra.mrb[44].mxu0 %vm387_vm1, %v2545_v21 }
0x15bd   :  { %4573 = vmatprep.mubr.msk.bf16.mxu0 %vm5018_vm0, %v5016_v4 }
0x1614   :  { %v2537_v13 = vpop.f32.mrb[56].mxu1 }
0x1615   :  { %v4555_v23 = vpop.f32.mrb[57].mxu1 }
0x1616   :  { %v2540_v24 = vpop.f32.mrb[58].mxu1 }
0x1617   :  { %v4556_v25 = vpop.f32.mrb[59].mxu1 }
0x1687   :  { %v2481_v26 = vpop.f32.mrb[40].mxu0 }
0x1688   :  { %v5828_v29 = vadd.f32 %v2537_v13, %v2481_v26  ;;  %v4547_v31 = vpop.f32.mrb[41].mxu0 }
0x1689   :  { %v2484_v32 = vpop.f32.mrb[42].mxu0 }
0x168a   :  { %v5830_v15 = vadd.f32 %v2540_v24, %v2484_v32  ;;  %v4548_v35 = vpop.f32.mrb[43].mxu0 }
0x168f   :  { %v2588_v36 = vpop.f32.mrb[44].mxu0 }
0x1690   :  { %v2595_v37 = vmul.f32 0.17677669, %v2588_v36  ;;  %v4561_v50 = vpop.f32.mrb[45].mxu0 }
0x1691   :  { %v2591_v51 = vpop.f32.mrb[46].mxu0 }
0x1692   :  { %v2596_v38 = vmul.f32 0.17677669, %v2591_v51  ;;  %v4562_v39 = vpop.f32.mrb[47].mxu0  ;;  %v2597_v40 = vadd.f32 %v5769_v22, %v2595_v37 }
0x1694   :  { %v2599_v33 = vsel %vm439_vm2, %v2597_v40, -inf  ;;  %v2598_v34 = vadd.f32 %v5776_v5, %v2596_v38 }
0x1695   :  { %2600 = vmax.xlane.f32.xlu0 %v2599_v33 }
0x1696   :  { %v2602_v41 = vsel %vm439_vm2, %v2598_v34, -inf }
0x1697   :  { %2603 = vmax.xlane.f32.xlu1 %v2602_v41 }
0x16a8   :  { %2730 = vrot.lane.b32.xlu1 %v5746_v48, %s5021_s25 }
0x16ac   :  { %2728 = vrot.lane.b32.xlu1 %v5742_v46, %s5021_s25  ;;  %v4782_v46 = vld [vmem:[%s6178_s6 + $0x60] sm:$0xff]  }
0x16ad   :  { %4570 = vmatpush3.bf16.msra.mxu0 %v4782_v46 }
0x16ae   :  { %4571 = vmatprep.subr.bf16.mxu0 %v5016_v4 }
0x16b1   :  { %4572 = vmatpush3.bf16.msra.mxu0 %v4783_v14 }
0x16b2   :  { %4583 = vmatprep.subr.bf16.mxu0 %v5016_v4 }
0x1722   :  { %v2601_v42 = vpop.xlane.xlu0 %2600 }
0x1723   :  { %v2605_v43 = vsub.f32 %v2597_v40, %v2601_v42 }
0x1724   :  { %v2604_v44 = vpop.xlane.xlu1 %2603 }
0x1725   :  { %v2607_v45 = vmul.f32 1.442695, %v2605_v43  ;;  %v2606_v52 = vsub.f32 %v2598_v34, %v2604_v44 }
0x1727   :  { %4950 = vpow2.f32 %v2607_v45  ;;  %v2609_v53 = vmul.f32 1.442695, %v2606_v52 }
0x1728   :  { %v2731_v6 = vpop.permute.xlu1 %2730 }
0x1729   :  { %4952 = vpow2.f32 %v2609_v53  ;;  %v2736_v9 = vsel %vm387_vm1, %v2731_v6, 0 }
0x172c   :  { %v2729_v10 = vpop.permute.xlu1 %2728 }
0x1731   :  { %v4951_v59 = vpop.eup %4950 }
0x1732   :  { %v2611_v60 = vsel %vm439_vm2, %v4951_v59, 0.0 }
0x1733   :  { %v4953_v61 = vpop.eup %4952  ;;  %2612 = vadd.xlane.f32.xlu0 %v2611_v60 }
0x1734   :  { %v2614_v62 = vsel %vm439_vm2, %v4953_v61, 0.0 }
0x1737   :  { %2615 = vadd.xlane.f32.xlu0 %v2614_v62 }
0x174d   :  { %2622 = vrot.lane.b32.xlu0 %v5744_v47, %s5020_s19 }
0x17c0   :  { %v2613_v48 = vpop.xlane.xlu0 %2612 }
0x17c1   :  { %4954 = vrcp.f32 %v2613_v48 }
0x17c4   :  { %v2616_v63 = vpop.xlane.xlu0 %2615 }
0x17c5   :  { %4956 = vrcp.f32 %v2616_v63 }
0x17c8   :  { %v2623_v0 = vpop.permute.xlu0 %2622 }
0x17c9   :  { %4564 = vmatpush3.bf16.msra.mxu1 %v2623_v0 }
0x17ca   :  { %4577 = vmatprep.subr.bf16.mxu1 %v5016_v4 }
0x17cb   :  { %v4955_v18 = vpop.eup %4954 }
0x17cc   :  { %v2619_v2 = vmul.f32 %v4955_v18, %v4951_v59 }
0x17cf   :  { %v4957_v1 = vpop.eup %4956 }
0x17d0   :  { %v2620_v3 = vmul.f32 %v4957_v1, %v4953_v61  ;;  %v4045_v1 = vld [vmem:[%s6179_s7 + $0x1] ss:$0 sm:$0xff] }
0x17d2   :  { %v2621_v7 = vpack.c.bf16 %v2620_v3, %v2619_v2 }
0x17d4   :  { %4566 = vmatmul.mubr.msk.bf16.vlgmr.msra.gmra.mrb[60].mxu1 %vm439_vm2, %v2621_v7 }
0x17d5   :  { %4578 = vmatpush3.bf16.xpose.msra.mxu1 %v2736_v9  ;;  %4579 = vmatprep.mubr.msk.bf16.mxu1 %vm5018_vm0, %v5016_v4 }
0x17d6   :  { %4589 = vmatprep.subr.bf16.mxu1 %v5016_v4 }
0x17dc   :  { %4580 = vmatmul.mubr.msk.bf16.vlgmr.msra.gmra.mrb[64].mxu1 %vm387_vm1, %v2729_v10 }
0x17dd   :  { %4593 = vmatprep.mubr.msk.bf16.mxu1 %vm5018_vm0, %v5016_v4 }
0x18a7   :  { %v2662_v11 = vpop.f32.mrb[60].mxu1 }
0x18a8   :  { %v4567_v12 = vpop.f32.mrb[61].mxu1 }
0x18a9   :  { %v2665_v16 = vpop.f32.mrb[62].mxu1 }
0x18aa   :  { %v2669_v17 = vpack.c.bf16 %v2665_v16, %v2662_v11  ;;  %v4568_v19 = vpop.f32.mrb[63].mxu1  ;;  %v4788_v16 = vld [vmem:[%s6182_s10 + $0x104] ss:$16 sps:$4 sm:$0xff]  }
0x18ab   :  { %v4797_v19 = vld [vmem:[%s6182_s10 + $0x12c] ss:$16 sps:$4 sm:$0xff]  }
0x18ac   :  { %4574 = vmatmul.mubr.msk.bf16.vlgmr.msra.gmra.mrb[48].mxu0 %vm387_vm1, %v2669_v17  ;;  %v4789_v17 = vld [vmem:[%s6182_s10 + $0x108] ss:$16 sps:$4 sm:$0xff]  }
0x18ad   :  { %4585 = vmatprep.mubr.msk.bf16.mxu0 %vm5018_vm0, %v5016_v4 }
0x18af   :  { %v2772_v49 = vpop.f32.mrb[64].mxu1 }
0x18b0   :  { %v2779_v57 = vmul.f32 0.17677669, %v2772_v49  ;;  %v4581_v20 = vpop.f32.mrb[65].mxu1  ;;  %v4792_v49 = vld [vmem:[%s6182_s10 + $0x120] ss:$16 sps:$4 sm:$0xff]  }
0x18b1   :  { %v2775_v21 = vpop.f32.mrb[66].mxu1 }
0x18b2   :  { %v2780_v13 = vmul.f32 0.17677669, %v2775_v21  ;;  %v4582_v23 = vpop.f32.mrb[67].mxu1  ;;  %v2781_v24 = vadd.f32 %v5769_v22, %v2779_v57  ;;  %v4795_v57 = vld [vmem:[%s6182_s10 + $0x128] ss:$16 sps:$4 sm:$0xff]  }
0x18b4   :  { %v2783_v25 = vsel %vm439_vm2, %v2781_v24, -inf  ;;  %v2782_v26 = vadd.f32 %v5776_v5, %v2780_v13 }
0x18b5   :  { %2784 = vmax.xlane.f32.xlu1 %v2783_v25 }
0x18b6   :  { %v2786_v31 = vsel %vm439_vm2, %v2782_v26, -inf }
0x18b7   :  { %2787 = vmax.xlane.f32.xlu0 %v2786_v31 }
0x18c6   :  { %2806 = vrot.lane.b32.xlu1 %v5744_v47, %s5021_s25  ;;  %v4784_v47 = vld [vmem:[%s6178_s6 + $0x70] sm:$0xff]  }
0x18c7   :  { %4590 = vmatpush3.bf16.msra.mxu1 %v4784_v47  ;;  %v4813_v47 = vld [vmem:[%s6182_s10 + $0x188] ss:$16 sps:$4 sm:$0xff]  }
0x18c8   :  { %4591 = vmatprep.subr.bf16.mxu1 %v5016_v4 }
0x1942   :  { %v2785_v32 = vpop.xlane.xlu1 %2784 }
0x1943   :  { %v2789_v35 = vsub.f32 %v2781_v24, %v2785_v32  ;;  %v4800_v32 = vld [vmem:[%s6182_s10 + $0x144] ss:$16 sps:$4 sm:$0xff]  }
0x1944   :  { %v2788_v36 = vpop.xlane.xlu0 %2787 }
0x1945   :  { %v2791_v37 = vmul.f32 1.442695, %v2789_v35  ;;  %v2790_v50 = vsub.f32 %v2782_v26, %v2788_v36  ;;  %v4803_v35 = vld [vmem:[%s6182_s10 + $0x14c] ss:$16 sps:$4 sm:$0xff]   ;;  %v4798_v36 = vld [vmem:[%s6182_s10 + $0x140] ss:$16 sps:$4 sm:$0xff]  }
0x1946   :  { %v2807_v51 = vpop.permute.xlu1 %2806 }
0x1947   :  { %4958 = vpow2.f32 %v2791_v37  ;;  %v2793_v38 = vmul.f32 1.442695, %v2790_v50  ;;  %4584 = vmatpush3.bf16.msra.mxu0 %v2807_v51  ;;  %v4801_v37 = vld [vmem:[%s6182_s10 + $0x148] ss:$16 sps:$4 sm:$0xff]   ;;  %v4806_v50 = vld [vmem:[%s6182_s10 + $0x164] ss:$16 sps:$4 sm:$0xff]  }
0x1948   :  { %3183 = vmatprep.subr.bf16.mxu0 %v4788_v16  ;;  %v4809_v51 = vld [vmem:[%s6182_s10 + $0x16c] ss:$16 sps:$4 sm:$0xff]   ;;  %v4837_v16 = vld [vmem:[%s6184_s12 + $0x180] sm:$0xff]  }
0x1949   :  { %4960 = vpow2.f32 %v2793_v38  ;;  %v4804_v38 = vld [vmem:[%s6182_s10 + $0x160] ss:$16 sps:$4 sm:$0xff]  }
0x1951   :  { %v4959_v22 = vpop.eup %4958 }
0x1952   :  { %v2795_v5 = vsel %vm439_vm2, %v4959_v22, 0.0 }
0x1953   :  { %v4961_v39 = vpop.eup %4960  ;;  %2796 = vadd.xlane.f32.xlu0 %v2795_v5  ;;  %v4812_v5 = vld [vmem:[%s6182_s10 + $0x184] ss:$16 sps:$4 sm:$0xff]  }
0x1954   :  { %v2798_v40 = vsel %vm439_vm2, %v4961_v39, 0.0 }
0x1957   :  { %2799 = vadd.xlane.f32.xlu0 %v2798_v40  ;;  %v4810_v40 = vld [vmem:[%s6182_s10 + $0x180] ss:$16 sps:$4 sm:$0xff]  }
0x197f   :  { %v2719_v33 = vpop.f32.mrb[48].mxu0 }
0x1980   :  { %v2726_v34 = vadd.f32 %v2719_v33, %v5828_v29  ;;  %v4575_v41 = vpop.f32.mrb[49].mxu0  ;;  %v4785_v29 = vld [vmem:[%s6178_s6 + $0x78] sm:$0xff]   ;;  %v4818_v33 = vld [vmem:[%s6182_s10 + $0x1a4] ss:$16 sps:$4 sm:$0xff]  }
0x1981   :  { %v2722_v42 = vpop.f32.mrb[50].mxu0  ;;  %4592 = vmatpush3.bf16.msra.mxu1 %v4785_v29  ;;  %v4816_v41 = vld [vmem:[%s6182_s10 + $0x1a0] ss:$16 sps:$4 sm:$0xff]  }
0x1982   :  { %v2727_v43 = vadd.f32 %v2722_v42, %v5830_v15  ;;  %v4576_v44 = vpop.f32.mrb[51].mxu0  ;;  %v4819_v42 = vld [vmem:[%s6182_s10 + $0x1a8] ss:$16 sps:$4 sm:$0xff]   ;;  %v4835_v29 = vld [vmem:[%s6184_s12 + $0x1c0] sm:$0xff]  }
0x1983   :  { %v4827_v44 = vld [vmem:[%s6182_s10 + $0x1cc] ss:$16 sps:$4 sm:$0xff]  }
0x19e0   :  { %v2797_v45 = vpop.xlane.xlu0 %2796 }
0x19e1   :  { %4962 = vrcp.f32 %v2797_v45  ;;  %v4822_v45 = vld [vmem:[%s6182_s10 + $0x1c0] ss:$16 sps:$4 sm:$0xff]  }
0x19e4   :  { %v2800_v52 = vpop.xlane.xlu0 %2799 }
0x19e5   :  { %4964 = vrcp.f32 %v2800_v52  ;;  %v4825_v52 = vld [vmem:[%s6182_s10 + $0x1c8] ss:$16 sps:$4 sm:$0xff]  }
0x19eb   :  { %v4963_v53 = vpop.eup %4962 }
0x19ec   :  { %v2803_v60 = vmul.f32 %v4963_v53, %v4959_v22  ;;  %v4807_v22 = vld [vmem:[%s6182_s10 + $0x168] ss:$16 sps:$4 sm:$0xff]   ;;  %v4830_v53 = vld [vmem:[%s6182_s10 + $0x1e4] ss:$16 sps:$4 sm:$0xff]  }
0x19ef   :  { %v4965_v59 = vpop.eup %4964 }
0x19f0   :  { %v2804_v61 = vmul.f32 %v4965_v59, %v4961_v39  ;;  %v4815_v39 = vld [vmem:[%s6182_s10 + $0x18c] ss:$16 sps:$4 sm:$0xff]  }
0x19f1   :  { %v4833_v59 = vld [vmem:[%s6182_s10 + $0x1ec] ss:$16 sps:$4 sm:$0xff]  }
0x19f2   :  { %v2805_v62 = vpack.c.bf16 %v2804_v61, %v2803_v60  ;;  %v4828_v60 = vld [vmem:[%s6182_s10 + $0x1e0] ss:$16 sps:$4 sm:$0xff]   ;;  %v4831_v61 = vld [vmem:[%s6182_s10 + $0x1e8] ss:$16 sps:$4 sm:$0xff]  }
0x19f4   :  { %4586 = vmatmul.mubr.msk.bf16.vlgmr.msra.gmra.mrb[52].mxu0 %vm439_vm2, %v2805_v62  ;;  %v4834_v62 = vld [vmem:[%s6184_s12 + $0x140] sm:$0xff]  }
0x19f5   :  { %3215 = vmatprep.mubr.bf16.mxu0 %v5017_v30 }
0x1ac7   :  { %v2846_v15 = vpop.f32.mrb[52].mxu0 }
0x1ac8   :  { %v4587_v46 = vpop.f32.mrb[53].mxu0 }
0x1ac9   :  { %v2849_v48 = vpop.f32.mrb[54].mxu0 }
0x1aca   :  { %v2853_v63 = vpack.c.bf16 %v2849_v48, %v2846_v15  ;;  %v4588_v0 = vpop.f32.mrb[55].mxu0 }
0x1acc   :  { %4594 = vmatmul.mubr.msk.bf16.vlgmr.msra.gmra.mrb[68].mxu1 %vm387_vm1, %v2853_v63 }
0x1acd   :  { %3258 = vmatprep.mubr.bf16.mxu1 %v5017_v30  ;;  %v4786_v30 = vld [vmem:[%s6182_s10 + $0x100] ss:$16 sps:$4 sm:$0xff]  }
0x1ace   :  { %3184 = vmatpush1.bf16.msra.mxu0 %v4786_v30  ;;  %v4836_v30 = vld [vmem:[%s6184_s12 + $0x100] sm:$0xff]  }
0x1b9f   :  { %v2903_v18 = vpop.f32.mrb[68].mxu1 }
0x1ba0   :  { %v2910_v2 = vadd.f32 %v2903_v18, %v2726_v34  ;;  %v4595_v3 = vpop.f32.mrb[69].mxu1  ;;  %v4821_v34 = vld [vmem:[%s6182_s10 + $0x1ac] ss:$16 sps:$4 sm:$0xff]  }
0x1ba1   :  { %v2906_v6 = vpop.f32.mrb[70].mxu1  ;;  %v4048_v3 = vld [vmem:[%s6180_s8 + $0x1] ss:$0 sm:$0xff] }
0x1ba2   :  { %v2920_v7 = vadd.f32 %v4045_v1, %v2910_v2  ;;  %v2911_v9 = vadd.f32 %v2906_v6, %v2727_v43  ;;  %v4596_v10 = vpop.f32.mrb[71].mxu1  ;;  %v4824_v43 = vld [vmem:[%s6182_s10 + $0x1c4] ss:$16 sps:$4 sm:$0xff]  }
0x1ba3   :  { %v4049_v10 = vld [vmem:[%s6181_s9 + $0x1] ss:$0 sm:$0xff] }
0x1ba4   :  { %v2921_v14 = vadd.f32 %v4045_v1, %v2911_v9  ;;  %v2922_v11 = vadd.f32 %v2920_v7, %v5726_v27  ;;  %v4791_v27 = vld [vmem:[%s6182_s10 + $0x10c] ss:$16 sps:$4 sm:$0xff]  }
0x1ba5   :  { %3226 = vmatprep.subr.bf16.mxu1 %v4791_v27  ;;  %v4838_v27 = vld [vmem:[%s6184_s12 + $0x148] sm:$0xff]  }
0x1ba6   :  { %2928 = vadd.xlane.f32.xlu0 %v2922_v11  ;;  %v2923_v12 = vadd.f32 %v2921_v14, %v5728_v28  ;;  %v4794_v28 = vld [vmem:[%s6182_s10 + $0x124] ss:$16 sps:$4 sm:$0xff]   ;;  %3227 = vmatpush1.bf16.msra.mxu1 %v4789_v17 }
0x1ba7   :  { %3185 = vmatprep.subr.bf16.mxu0 %v4794_v28  ;;  %3228 = vmatprep.subr.bf16.mxu1 %v4797_v19  ;;  %v4839_v28 = vld [vmem:[%s6184_s12 + $0x1c8] sm:$0xff]  }
0x1ba8   :  { %3186 = vmatpush1.bf16.msra.mxu0 %v4792_v49  ;;  %v4840_v19 = vld [vmem:[%s6184_s12 + $0x108] sm:$0xff]  }
0x1ba9   :  { %3187 = vmatprep.subr.bf16.mxu0 %v4800_v32  ;;  %v4841_v49 = vld [vmem:[%s6184_s12 + $0x188] sm:$0xff]   ;;  %v4851_v32 = vld [vmem:[%s6184_s12 + $0x1e0] sm:$0xff]  }
0x1baa   :  { %2930 = vadd.xlane.f32.xlu0 %v2923_v12  ;;  %3229 = vmatpush1.bf16.msra.mxu1 %v4795_v57  ;;  %v4842_v57 = vld [vmem:[%s6184_s12 + $0x150] sm:$0xff]  }
0x1bab   :  { %3230 = vmatprep.subr.bf16.mxu1 %v4803_v35  ;;  %v4852_v35 = vld [vmem:[%s6184_s12 + $0x120] sm:$0xff]  }
0x1bac   :  { %3188 = vmatpush1.bf16.msra.mxu0 %v4798_v36  ;;  %v4853_v36 = vld [vmem:[%s6184_s12 + $0x1a0] sm:$0xff]  }
0x1bad   :  { %3189 = vmatprep.subr.bf16.mxu0 %v4806_v50  ;;  %v4855_v50 = vld [vmem:[%s6184_s12 + $0x1e8] sm:$0xff]  }
0x1bae   :  { %3231 = vmatpush1.bf16.msra.mxu1 %v4801_v37  ;;  %v4854_v37 = vld [vmem:[%s6184_s12 + $0x168] sm:$0xff]  }
0x1baf   :  { %3232 = vmatprep.subr.bf16.mxu1 %v4809_v51  ;;  %v4856_v51 = vld [vmem:[%s6184_s12 + $0x128] sm:$0xff]  }
0x1bb0   :  { %3190 = vmatpush1.bf16.msra.mxu0 %v4804_v38  ;;  %v4857_v38 = vld [vmem:[%s6184_s12 + $0x1a8] sm:$0xff]  }
0x1bb1   :  { %3191 = vmatprep.subr.bf16.mxu0 %v4812_v5  ;;  %v4859_v5 = vld [vmem:[%s6184_s12 + $0x1f0] sm:$0xff]  }
0x1bb2   :  { %3233 = vmatpush1.bf16.msra.mxu1 %v4807_v22  ;;  %v4858_v22 = vld [vmem:[%s6184_s12 + $0x170] sm:$0xff]  }
0x1bb3   :  { %3234 = vmatprep.subr.bf16.mxu1 %v4815_v39  ;;  %v4860_v39 = vld [vmem:[%s6184_s12 + $0x130] sm:$0xff]  }
0x1bb4   :  { %3192 = vmatpush1.bf16.msra.mxu0 %v4810_v40  ;;  %v4861_v40 = vld [vmem:[%s6184_s12 + $0x1b0] sm:$0xff]  }
0x1bb5   :  { %3193 = vmatprep.subr.bf16.mxu0 %v4818_v33  ;;  %v4863_v33 = vld [vmem:[%s6184_s12 + $0x1f8] sm:$0xff]  }
0x1bb6   :  { %3235 = vmatpush1.bf16.msra.mxu1 %v4813_v47  ;;  %v4862_v47 = vld [vmem:[%s6184_s12 + $0x178] sm:$0xff]  }
0x1bb7   :  { %3236 = vmatprep.subr.bf16.mxu1 %v4821_v34  ;;  %v4864_v34 = vld [vmem:[%s6184_s12 + $0x138] sm:$0xff]  }
0x1bb8   :  { %3194 = vmatpush1.bf16.msra.mxu0 %v4816_v41  ;;  %v4865_v41 = vld [vmem:[%s6184_s12 + $0x1b8] sm:$0xff]  }
0x1bb9   :  { %3195 = vmatprep.subr.bf16.mxu0 %v4824_v43 }
0x1bba   :  { %3237 = vmatpush1.bf16.msra.mxu1 %v4819_v42  ;;  %v4082_v42 = vld [vmem:[%s6183_s11 + $0x4] sm:$0xf] }
0x1bbb   :  { %3238 = vmatprep.subr.bf16.mxu1 %v4827_v44  ;;  %v3006_v43 = vrot.slane %v4082_v42, %v5240_v55  ;;  %v3014_v44 = vrot.slane %v4082_v42, %v5243_v56 }
0x1bbc   :  { %3196 = vmatpush1.bf16.msra.mxu0 %v4822_v45  ;;  %v3010_v45 = vrot.slane %v4082_v42, %v5249_v58 }
0x1bbd   :  { %3197 = vmatprep.subr.bf16.mxu0 %v4830_v53 }
0x1bbe   :  { %3239 = vmatpush1.bf16.msra.mxu1 %v4825_v52  ;;  %v3018_v52 = vrot.slane %v4082_v42, %v1217_v8 }
0x1bbf   :  { %3240 = vmatprep.subr.bf16.mxu1 %v4833_v59 }
0x1bc0   :  { %3198 = vmatpush1.bf16.msra.mxu0 %v4828_v60 }
0x1bc1   :  { %4344 = vmatprep.subr.bf16.mxu0 %v4834_v62 }
0x1bc2   :  { %3241 = vmatpush1.bf16.msra.mxu1 %v4831_v61 }
0x1bc3   :  { %4366 = vmatprep.subr.bf16.mxu1 %v4835_v29 }
0x1c33   :  { %v2929_v20 = vpop.xlane.xlu0 %2928 }
0x1c34   :  { %v2932_v21 = vmul.f32 0.0078125, %v2929_v20  ;;  %v4843_v20 = vld [vmem:[%s6184_s12 + $0x1d0] sm:$0xff]  }
0x1c36   :  { %v5914_v13 = vsub.f32 %v2922_v11, %v2932_v21  ;;  %v4844_v21 = vld [vmem:[%s6184_s12 + $0x110] sm:$0xff]  }
0x1c37   :  { %v2931_v23 = vpop.xlane.xlu0 %2930 }
0x1c38   :  { %v2933_v24 = vmul.f32 0.0078125, %v2931_v23  ;;  %v2936_v25 = vmul.f32 %v5914_v13, %v5914_v13  ;;  %v4846_v23 = vld [vmem:[%s6184_s12 + $0x158] sm:$0xff]  }
0x1c3a   :  { %v5918_v26 = vsub.f32 %v2923_v12, %v2933_v24  ;;  %2938 = vadd.xlane.f32.xlu0 %v2936_v25  ;;  %v4847_v24 = vld [vmem:[%s6184_s12 + $0x1d8] sm:$0xff]  }
0x1c3b   :  { %v4848_v25 = vld [vmem:[%s6184_s12 + $0x118] sm:$0xff]  }
0x1c3c   :  { %v2937_v31 = vmul.f32 %v5918_v26, %v5918_v26 }
0x1c3e   :  { %2940 = vadd.xlane.f32.xlu0 %v2937_v31  ;;  %v4850_v31 = vld [vmem:[%s6184_s12 + $0x160] sm:$0xff]  }
0x1cc7   :  { %v2939_v15 = vpop.xlane.xlu0 %2938 }
0x1cc8   :  { %v2942_v46 = vmul.f32 0.0078125, %v2939_v15 }
0x1cca   :  { %v2944_v48 = vadd.f32 1e-12, %v2942_v46 }
0x1ccb   :  { %v2941_v63 = vpop.xlane.xlu0 %2940 }
0x1ccc   :  { %4966 = vrsqrt.f32 %v2944_v48  ;;  %v2943_v0 = vmul.f32 0.0078125, %v2941_v63 }
0x1cce   :  { %v2945_v18 = vadd.f32 1e-12, %v2943_v0 }
0x1cd0   :  { %4968 = vrsqrt.f32 %v2945_v18 }
0x1cd6   :  { %v4967_v1 = vpop.eup %4966 }
0x1cd7   :  { %v2948_v2 = vmul.f32 %v4967_v1, %v5914_v13  ;;  %v4845_v13 = vld [vmem:[%s6184_s12 + $0x190] sm:$0xff]  }
0x1cd9   :  { %v2956_v9 = vmul.f32 %v4048_v3, %v2948_v2 }
0x1cda   :  { %v4969_v6 = vpop.eup %4968 }
0x1cdb   :  { %v2949_v7 = vmul.f32 %v4969_v6, %v5918_v26  ;;  %v6008_v11 = vadd.f32 %v4049_v10, %v2956_v9  ;;  %v4849_v26 = vld [vmem:[%s6184_s12 + $0x198] sm:$0xff]  }
0x1cdd   :  { %v2957_v14 = vmul.f32 %v4048_v3, %v2949_v7 }
0x1cdf   :  { %v6010_v12 = vadd.f32 %v4049_v10, %v2957_v14 }
0x1ce1   :  { %v3001_v17 = vpack.c.bf16 %v6010_v12, %v6008_v11 }
0x1ce3   :  { %3216 = vmatmul.mubr.bf16.vlgmr.msra.gmra.mrb[56].mxu0 %v3001_v17  ;;  %3259 = vmatmul.mubr.bf16.vlgmr.msra.gmra.mrb[72].mxu1 %v3001_v17 }
0x1ce4   :  { %4345 = vmatpush3.bf16.msra.mxu0 %v4836_v30  ;;  %4367 = vmatpush3.bf16.msra.mxu1 %v4837_v16 }
0x1ce5   :  { %4346 = vmatprep.subr.bf16.mxu0 %v4838_v27  ;;  %4368 = vmatprep.subr.bf16.mxu1 %v4839_v28 }
0x1ce8   :  { %4347 = vmatpush3.bf16.msra.mxu0 %v4840_v19  ;;  %4369 = vmatpush3.bf16.msra.mxu1 %v4841_v49 }
0x1ce9   :  { %4348 = vmatprep.subr.bf16.mxu0 %v4842_v57  ;;  %4370 = vmatprep.subr.bf16.mxu1 %v4843_v20 }
0x1cec   :  { %4349 = vmatpush3.bf16.msra.mxu0 %v4844_v21  ;;  %4371 = vmatpush3.bf16.msra.mxu1 %v4845_v13 }
0x1ced   :  { %4350 = vmatprep.subr.bf16.mxu0 %v4846_v23  ;;  %4372 = vmatprep.subr.bf16.mxu1 %v4847_v24 }
0x1cf0   :  { %4351 = vmatpush3.bf16.msra.mxu0 %v4848_v25  ;;  %4373 = vmatpush3.bf16.msra.mxu1 %v4849_v26 }
0x1cf1   :  { %4352 = vmatprep.subr.bf16.mxu0 %v4850_v31  ;;  %4374 = vmatprep.subr.bf16.mxu1 %v4851_v32 }
0x1cf4   :  { %4353 = vmatpush3.bf16.msra.mxu0 %v4852_v35  ;;  %4375 = vmatpush3.bf16.msra.mxu1 %v4853_v36 }
0x1cf5   :  { %4354 = vmatprep.subr.bf16.mxu0 %v4854_v37  ;;  %4376 = vmatprep.subr.bf16.mxu1 %v4855_v50 }
0x1cf8   :  { %4355 = vmatpush3.bf16.msra.mxu0 %v4856_v51  ;;  %4377 = vmatpush3.bf16.msra.mxu1 %v4857_v38 }
0x1cf9   :  { %4356 = vmatprep.subr.bf16.mxu0 %v4858_v22  ;;  %4378 = vmatprep.subr.bf16.mxu1 %v4859_v5 }
0x1cfc   :  { %4357 = vmatpush3.bf16.msra.mxu0 %v4860_v39  ;;  %4379 = vmatpush3.bf16.msra.mxu1 %v4861_v40 }
0x1cfd   :  { %4358 = vmatprep.subr.bf16.mxu0 %v4862_v47  ;;  %4380 = vmatprep.subr.bf16.mxu1 %v4863_v33 }
0x1d00   :  { %4359 = vmatpush3.bf16.msra.mxu0 %v4864_v34  ;;  %4381 = vmatpush3.bf16.msra.mxu1 %v4865_v41 }
0x1d01   :  { %4597 = vmatprep.subr.bf16.mxu0 %v5016_v4 }
0x1db6   :  { %v3217_v53 = vpop.f32.mrb[56].mxu0  ;;  %v3260_v59 = vpop.f32.mrb[72].mxu1 }
0x1db7   :  { %v3218_v60 = vadd.f32 %v3217_v53, %v3006_v43  ;;  %v3261_v61 = vadd.f32 %v3260_v59, %v3014_v44  ;;  %v3219_v62 = vpop.f32.mrb[57].mxu0  ;;  %v3262_v29 = vpop.f32.mrb[73].mxu1  ;;  %v4180_v59 = vld [vmem:[%s6185_s13 + $0x1] ss:$0 sm:$0xff] }
0x1db8   :  { %v3220_v15 = vadd.f32 %v3219_v62, %v3010_v45  ;;  %v3263_v46 = vadd.f32 %v3262_v29, %v3018_v52  ;;  %v3221_v48 = vpop.f32.mrb[58].mxu0  ;;  %v3264_v63 = vpop.f32.mrb[74].mxu1 }
0x1db9   :  { %v3277_v0 = vmul.f32 0.70710677, %v3218_v60  ;;  %v3279_v18 = vmul.f32 0.70710677, %v3261_v61  ;;  %v3222_v56 = vadd.f32 %v3221_v48, %v3006_v43  ;;  %v3265_v58 = vadd.f32 %v3264_v63, %v3014_v44  ;;  %v3223_v2 = vpop.f32.mrb[59].mxu0  ;;  %v3266_v54 = vpop.f32.mrb[75].mxu1 }
0x1dba   :  { %v3278_v55 = vmul.f32 0.70710677, %v3220_v15  ;;  %v3280_v1 = vmul.f32 0.70710677, %v3263_v46  ;;  %v3224_v8 = vadd.f32 %v3223_v2, %v3010_v45  ;;  %v3267_v3 = vadd.f32 %v3266_v54, %v3018_v52 }
0x1dbb   :  { %4970 = verf.f32 %v3277_v0  ;;  %v3281_v6 = vmul.f32 0.70710677, %v3222_v56  ;;  %v3283_v7 = vmul.f32 0.70710677, %v3265_v58  ;;  %v3269_v19 = vmul.f32 0.5, %v3218_v60 }
0x1dbc   :  { %4972 = verf.f32 %v3279_v18  ;;  %v3282_v9 = vmul.f32 0.70710677, %v3224_v8  ;;  %v3284_v10 = vmul.f32 0.70710677, %v3267_v3  ;;  %v3271_v49 = vmul.f32 0.5, %v3261_v61 }
0x1dbd   :  { %4974 = verf.f32 %v3278_v55  ;;  %v3270_v21 = vmul.f32 0.5, %v3220_v15  ;;  %v3273_v23 = vmul.f32 0.5, %v3222_v56  ;;  %v3272_v26 = vmul.f32 0.5, %v3263_v46 }
0x1dbe   :  { %4976 = verf.f32 %v3280_v1  ;;  %v3275_v32 = vmul.f32 0.5, %v3265_v58  ;;  %v3274_v51 = vmul.f32 0.5, %v3224_v8  ;;  %v3276_v39 = vmul.f32 0.5, %v3267_v3  ;;  %v4866_v8 = vld [vmem:[%s6188_s16] sm:$0xff]  }
0x1dbf   :  { %4978 = verf.f32 %v3281_v6 }
0x1dc0   :  { %4980 = verf.f32 %v3283_v7 }
0x1dc1   :  { %4982 = verf.f32 %v3282_v9 }
0x1dc2   :  { %4984 = verf.f32 %v3284_v10 }
0x1dc5   :  { %v4971_v14 = vpop.eup %4970 }
0x1dc6   :  { %v4973_v30 = vpop.eup %4972  ;;  %v3293_v27 = vadd.f32 1.0, %v4971_v14 }
0x1dc7   :  { %v4975_v16 = vpop.eup %4974  ;;  %v3295_v57 = vadd.f32 1.0, %v4973_v30 }
0x1dc8   :  { %v4977_v17 = vpop.eup %4976  ;;  %v3294_v13 = vadd.f32 1.0, %v4975_v16  ;;  %v3301_v37 = vmul.f32 %v3293_v27, %v3269_v19  ;;  %v4868_v16 = vld [vmem:[%s6188_s16 + $0x10] sm:$0xff]   ;;  %v4870_v27 = vld [vmem:[%s6188_s16 + $0x20] sm:$0xff]  }
0x1dc9   :  { %v4979_v28 = vpop.eup %4978  ;;  %v3296_v31 = vadd.f32 1.0, %v4977_v17  ;;  %v3303_v22 = vmul.f32 %v3295_v57, %v3271_v49  ;;  %v4869_v17 = vld [vmem:[%s6188_s16 + $0x18] sm:$0xff]   ;;  %v4872_v19 = vld [vmem:[%s6188_s16 + $0x30] sm:$0xff]  }
0x1dca   :  { %v4981_v20 = vpop.eup %4980  ;;  %v3297_v24 = vadd.f32 1.0, %v4979_v28  ;;  %v3302_v47 = vmul.f32 %v3294_v13, %v3270_v21  ;;  %v4871_v28 = vld [vmem:[%s6188_s16 + $0x28] sm:$0xff]   ;;  %v4873_v49 = vld [vmem:[%s6188_s16 + $0x38] sm:$0xff]  }
0x1dcb   :  { %v4983_v25 = vpop.eup %4982  ;;  %v3299_v35 = vadd.f32 1.0, %v4981_v20  ;;  %v3304_v41 = vmul.f32 %v3296_v31, %v3272_v26  ;;  %v4215_v31 = vld [vmem:[%s6186_s14 + $0x1] ss:$0 sm:$0xff]  ;;  %s4992_s14 = scalar_lea.vmem %s3825_s0, 256 }
0x1dcc   :  { %v4985_v36 = vpop.eup %4984  ;;  %v3305_v50 = vmul.f32 %v3297_v24, %v3273_v23  ;;  %v3298_v38 = vadd.f32 1.0, %v4983_v25  ;;  %p4993_p0 = scmp.ne.s32.totalorder %s3825_s0, %s4992_s14  ;;  %p4998_p2 = scmp.lt.s32.totalorder %s4992_s14, %s4992_s14 }
0x1dcd   :  { %v3307_v5 = vmul.f32 %v3299_v35, %v3275_v32  ;;  %v3300_v40 = vadd.f32 1.0, %v4985_v36 }
0x1dce   :  { %v3376_v33 = vpack.c.bf16 %v3305_v50, %v3301_v37  ;;  %v3306_v34 = vmul.f32 %v3298_v38, %v3274_v51  ;;  %p4999_p3 = por %p4998_p2, %p4997_p1 }
0x1dcf   :  { %v3378_v42 = vpack.c.bf16 %v3307_v5, %v3303_v22  ;;  %v3308_v43 = vmul.f32 %v3300_v40, %v3276_v39  ;;  %v4217_v22 = vld [vmem:[%s6189_s17] ss:$0 sm:$0xff] }
0x1dd0   :  { %v3377_v44 = vpack.c.bf16 %v3306_v34, %v3302_v47  ;;  %p5000_p4 = pnand %p4999_p3, %p4993_p0 }
0x1dd1   :  { %v3379_v45 = vpack.c.bf16 %v3308_v43, %v3304_v41 }
0x1dd2   :  { %3610 = vmatprep.mubr.bf16.mxu0 %v3377_v44 }
0x1dd3   :  { %3651 = vmatprep.mubr.bf16.mxu1 %v3379_v45  ;;  %3611 = vmatmul.mubr.bf16.vlgmr.msra.gmra.mrb[60].mxu0 %v3376_v33 }
0x1dd4   :  { %3652 = vmatmul.mubr.bf16.vlgmr.msra.gmra.mrb[76].mxu1 %v3378_v42  ;;  %4613 = vmatprep.mubr.msk.bf16.mxu0 %vm5018_vm0, %v5016_v4 }
0x1dd5   :  { %4598 = vmatpush3.bf16.msra.mxu0 %v4866_v8 }
0x1dd6   :  { %4599 = vmatprep.subr.bf16.mxu0 %v5016_v4 }
0x1ea6   :  { %v4360_v52 = vpop.f32.mrb[60].mxu0 }
0x1ea7   :  { %v4382_v53 = vpop.f32.mrb[76].mxu1  ;;  %v4361_v60 = vpop.f32.mrb[61].mxu0 }
0x1ea8   :  { %v4362_v61 = vadd.f32 %v4361_v60, %v4360_v52  ;;  %v4383_v62 = vpop.f32.mrb[77].mxu1  ;;  %v4363_v29 = vpop.f32.mrb[62].mxu0 }
0x1ea9   :  { %v4384_v15 = vadd.f32 %v4383_v62, %v4382_v53  ;;  %v4385_v46 = vpop.f32.mrb[78].mxu1  ;;  %v4364_v48 = vpop.f32.mrb[63].mxu0 }
0x1eaa   :  { %v3613_v63 = vadd.f32 %v4362_v61, %v4180_v59  ;;  %v4365_v0 = vadd.f32 %v4364_v48, %v4363_v29  ;;  %v4386_v18 = vpop.f32.mrb[79].mxu1 }
0x1eab   :  { %v4387_v55 = vadd.f32 %v4386_v18, %v4385_v46 }
0x1eac   :  { %v3654_v1 = vadd.f32 %v4384_v15, %v3613_v63  ;;  %v3616_v56 = vadd.f32 %v4365_v0, %v4180_v59 }
0x1eae   :  { %v3657_v58 = vadd.f32 %v4387_v55, %v3616_v56  ;;  %v3660_v2 = vadd.f32 %v3654_v1, %v6008_v11 }
0x1eb0   :  { %3666 = vadd.xlane.f32.xlu1 %v3660_v2  ;;  %v3661_v54 = vadd.f32 %v3657_v58, %v6010_v12  ;;  %v4867_v12 = vld [vmem:[%s6188_s16 + $0x8] sm:$0xff]  }
0x1eb1   :  { %4600 = vmatpush3.bf16.msra.mxu0 %v4867_v12 }
0x1eb2   :  { %3668 = vadd.xlane.f32.xlu0 %v3661_v54  ;;  %4601 = vmatprep.subr.bf16.mxu0 %v5016_v4 }
0x1eb5   :  { %4602 = vmatpush3.bf16.msra.mxu0 %v4868_v16 }
0x1eb6   :  { %4603 = vmatprep.subr.bf16.mxu0 %v5016_v4 }
0x1eb9   :  { %4604 = vmatpush3.bf16.msra.mxu0 %v4869_v17 }
0x1eba   :  { %4605 = vmatprep.subr.bf16.mxu0 %v5016_v4 }
0x1ebd   :  { %4606 = vmatpush3.bf16.msra.mxu0 %v4870_v27 }
0x1ebe   :  { %4607 = vmatprep.subr.bf16.mxu0 %v5016_v4 }
0x1ec1   :  { %4608 = vmatpush3.bf16.msra.mxu0 %v4871_v28 }
0x1ec2   :  { %4609 = vmatprep.subr.bf16.mxu0 %v5016_v4 }
0x1ec5   :  { %4610 = vmatpush3.bf16.msra.mxu0 %v4872_v19 }
0x1ec6   :  { %4611 = vmatprep.subr.bf16.mxu0 %v5016_v4  ;;  %v4216_v4 = vld [vmem:[%s6187_s15 + $0x1] ss:$0 sm:$0xff] }
0x1ec9   :  { %4612 = vmatpush3.bf16.msra.mxu0 %v4873_v49 }
0x1f3d   :  { %v3667_v3 = vpop.xlane.xlu1 %3666 }
0x1f3e   :  { %v3670_v6 = vmul.f32 0.0078125, %v3667_v3 }
0x1f3f   :  { %v3669_v7 = vpop.xlane.xlu0 %3668 }
0x1f40   :  { %v3672_v9 = vsub.f32 %v3660_v2, %v3670_v6  ;;  %v3671_v10 = vmul.f32 0.0078125, %v3669_v7 }
0x1f42   :  { %v3673_v14 = vsub.f32 %v3661_v54, %v3671_v10  ;;  %v3674_v30 = vmul.f32 %v3672_v9, %v3672_v9 }
0x1f44   :  { %3676 = vadd.xlane.f32.xlu0 %v3674_v30  ;;  %v3675_v11 = vmul.f32 %v3673_v14, %v3673_v14 }
0x1f48   :  { %3678 = vadd.xlane.f32.xlu0 %v3675_v11 }
0x1fd1   :  { %v3677_v57 = vpop.xlane.xlu0 %3676 }
0x1fd2   :  { %v3680_v20 = vmul.f32 0.0078125, %v3677_v57 }
0x1fd4   :  { %v3682_v21 = vadd.f32 1e-12, %v3680_v20 }
0x1fd5   :  { %v3679_v13 = vpop.xlane.xlu0 %3678 }
0x1fd6   :  { %4986 = vrsqrt.f32 %v3682_v21  ;;  %v3681_v23 = vmul.f32 0.0078125, %v3679_v13 }
0x1fd8   :  { %v3683_v24 = vadd.f32 1e-12, %v3681_v23 }
0x1fda   :  { %4988 = vrsqrt.f32 %v3683_v24 }
0x1fe0   :  { %v4987_v25 = vpop.eup %4986 }
0x1fe1   :  { %v3686_v26 = vmul.f32 %v4987_v25, %v3672_v9 }
0x1fe3   :  { %v3694_v36 = vmul.f32 %v4215_v31, %v3686_v26 }
0x1fe4   :  { %v4989_v32 = vpop.eup %4988 }
0x1fe5   :  { %v3687_v35 = vmul.f32 %v4989_v32, %v3673_v14  ;;  %v3702_v50 = vadd.f32 %v4216_v4, %v3694_v36 }
0x1fe7   :  { %v3695_v37 = vmul.f32 %v4215_v31, %v3687_v35 }
0x1fe9   :  { %v3703_v51 = vadd.f32 %v4216_v4, %v3695_v37 }
0x1feb   :  { %v3721_v38 = vpack.c.bf16 %v3703_v51, %v3702_v50 }
0x1fed   :  { %4614 = vmatmul.mubr.bf16.vlgmr.msra.gmra.mrb[64].mxu0 %v3721_v38 }
0x20c0   :  { %v3810_v5 = vpop.f32.mrb[64].mxu0 }
0x20c1   :  { %v3811_v39 = vadd.f32 %v4217_v22, %v3810_v5  ;;  %v4615_v40 = vpop.f32.mrb[65].mxu0 }
0x20c2   :  { %v3813_v47 = vpop.f32.mrb[66].mxu0 }
0x20c3   :  { %3817 = vst [vmem:[#allocation2] sm:$0xff] %v3811_v39  ;;  %v3814_v33 = vadd.f32 %v4217_v22, %v3813_v47  ;;  %v4616_v34 = vpop.f32.mrb[67].mxu0 }
0x20c5   :  { %3818 = vst [vmem:[#allocation2 + $0x8] sm:$0xff] %v3814_v33 }
0x20c6   :  { %5003 = shalt.err (!%p5000_p4)
}
0x20c7   :  { %s5004_s7 = scalar_lea.hbm %s6190_s18, 256 }
0x20c8   :  { %p5005_p5 = scmp.ne.s32.totalorder %s6190_s18, %s5004_s7  ;;  %p5008_p6 = scmp.lt.u32.totalorder %s5004_s7, %s6190_s18 }
0x20ca   :  { %p5010_p7 = pnand %p5008_p6, %p5005_p5 }
0x20cc   :  { %5013 = shalt.err (!%p5010_p7)
}
0x20cd   :  { %s5023_s26 = smov 128   ;;  %s5024_s27 = smov 8  }
0x20ce   :  { %3830 = dma.vmem_to_hbm [thread:$0]  %s3825_s0, 256, %s6190_s18, [#allocation3], %s5023_s26, %s5023_s26, %s5024_s27  }
0x20cf   :  { %5014 = dma.done.wait [#allocation3], 256  }
0x20d0   :  { %5015 = vsyncadd [#allocation3], 4294967040 }
0x20d1   :  { %3834 = vsyncpa [#allocation3], 1 }

</bundles_post_ra>
